<compile_context>
chip_gen: v7x
topology: tpu7x:2x2x1
jax: 0.10.0
libtpu: 0.0.40
codegen_flags: <defaults>
</compile_context>

<pallas_src>
import jax
import jax.numpy as jnp
from jax import lax
from jax.experimental import pallas as pl
from jax.experimental.pallas import tpu as pltpu

# ---- hyper-params (consistent with the module) ----
B, T, C = 2, 16, 32           # batch, seq (== block_size), n_embd
BT = B * T                    # 32 flattened rows
N_HEAD = 4
HD = C // N_HEAD              # 8
N_HIDDEN = 4 * C              # 128 (SASMLP hidden, llama_mlp=False)
FUSED = N_HIDDEN + 2 * C      # 192  [h1 | q | k] fused projection width
NW = N_HEAD * BT              # 128  score-slab width (all heads side by side)

# learned scalars at their __init__ values (folded into packed constants)
ALPHA, BETA, GAMMA = 1.0, 0.1, 0.1
BETA_SA, BETA_FF = 1.0, 0.2
C_ATT = BETA_SA * BETA        # scale applied to the softmax weights in-kernel
LN_EPS = 1e-5
SCALE = 1.0 / (HD ** 0.5)
INV_SQRT2 = 0.7071067811865476
NEG_INF = -1e30               # finite additive mask (robust: no -inf in kernel)


def block_kernel(x_ref, w_ref, c_ref, o_ref):
    x = x_ref[...]                                        # (BT, C) f32

    # ---- weight blob layout: rows 0:C w_fused | C b_fused | C+1 b_proj | C+2 ln_w | C+3 ln_b
    ln_w = w_ref[C + 2:C + 3, :C]                         # (1, C)
    ln_b = w_ref[C + 3:C + 4, :C]

    # ---- SASLayerNorm (per row, eps=1e-5) ----
    mu = jnp.mean(x, axis=-1, keepdims=True)
    xc = x - mu
    var = jnp.mean(xc * xc, axis=-1, keepdims=True)
    nx = xc * lax.rsqrt(var + LN_EPS) * ln_w + ln_b       # (BT, C)

    # ---- fused projection [c_fc | W_q | W_k]: one MXU push, N=192 ----
    proj = jnp.dot(nx, w_ref[0:C, :],
                   preferred_element_type=jnp.float32) + w_ref[C:C + 1, :]
    h1 = proj[:, :N_HIDDEN]                               # (BT, 128)
    q = proj[:, N_HIDDEN:N_HIDDEN + C]                    # (BT, 32)
    k = proj[:, N_HIDDEN + C:FUSED]                       # (BT, 32)

    # ---- constant blob slices (precomputed on host) ----
    add_mask = c_ref[0:BT, :]                             # (32,128) block-causal, 0 / -1e30
    shaped_c = c_ref[BT:2 * BT, :]                        # (32,128) BETA_SA*(ALPHA*Id - GAMMA*MC), tiled x4
    seg_ones = c_ref[2 * BT:2 * BT + NW, :]               # (128,128) block-diag ones (segment sums)
    hmask_v = c_ref[2 * BT + NW:2 * BT + 2 * NW, 0:C]     # (128,32) per-head column selector
    w_proj = c_ref[2 * BT + NW:2 * BT + 2 * NW, C:2 * C]  # (128,32) BETA_FF * c_proj weight
    b_proj = w_ref[C + 1:C + 2, :C]                       # (1,32)   BETA_FF * c_proj bias

    # ---- shaped attention, all heads in one lane-dense slab ----
    # K stack: K_stack[h*BT + j, c] = k[j, c] * (c is in head h)
    k_stack = jnp.concatenate([k, k, k, k], axis=0) * hmask_v          # (128, 32)
    # scores[i, h*BT + j] = q_h[i] . k_h[j]   (single MXU push, N=128)
    scores = lax.dot_general(q, k_stack, (((1,), (1,)), ((), ())),
                             preferred_element_type=jnp.float32) * SCALE + add_mask
    m = jnp.max(scores, axis=-1, keepdims=True)           # global row max (softmax is
    e = jnp.exp(scores - m)                               #   invariant per segment)
    denom = jnp.dot(e, seg_ones, preferred_element_type=jnp.float32)   # per-segment sums,
    #                                                     # broadcast across each segment's lanes
    # S_comb segment h = BETA_SA*BETA*att_h + BETA_SA*(ALPHA*Id - GAMMA*MC)
    s_comb = (C_ATT * e) / denom + shaped_c               # (32, 128)

    # V stack: V_stack[h*BT + j, c] = norm_x[j, c] * (c is in head h)  (use_v=False -> v = norm_x)
    v_stack = jnp.concatenate([nx, nx, nx, nx], axis=0) * hmask_v      # (128, 32)
    attn = jnp.dot(s_comb, v_stack, preferred_element_type=jnp.float32)  # (32,32), K=128
    # 'attn' already includes the beta_SA scale and the alpha*Id / -gamma*MC terms.

    # ---- SASMLP: exact GELU via erf polynomial (A&S 7.1.26, |err|<=1.5e-7) ----
    z = h1 * INV_SQRT2
    az = jnp.abs(z)
    t = 1.0 / (1.0 + 0.3275911 * az)
    poly = t * (0.254829592 + t * (-0.284496736 + t * (1.421413741
                + t * (-1.453152027 + t * 1.061405429))))
    erf_abs = 1.0 - poly * jnp.exp(-az * az)
    erf_z = jnp.where(z >= 0.0, erf_abs, -erf_abs)
    g = 0.5 * h1 * (1.0 + erf_z)
    mlp = jnp.dot(g, w_proj, preferred_element_type=jnp.float32) + b_proj  # BETA_FF folded in

    # ---- residual combine (o_ref aliases x_ref; x already loaded above) ----
    o_ref[...] = x + attn + mlp


def simplified_transformer_block(x, packed):
    w_blob, c_blob = packed
    x2d = x.reshape(BT, C)
    vmem = pl.BlockSpec(memory_space=pltpu.MemorySpace.VMEM)
    out2d = pl.pallas_call(
        block_kernel,
        out_shape=jax.ShapeDtypeStruct((BT, C), jnp.float32),
        in_specs=[vmem, vmem, vmem],          # x, weight blob, constant blob
        out_specs=vmem,
        input_output_aliases={0: 0},          # residual written in place over x
    )(x2d, w_blob, c_blob)
    return out2d.reshape(B, T, C)


def make_params(key):
    """Raw parameters, matching the PyTorch module's initialization."""
    k1, k2, k3, k4, k5, k6 = jax.random.split(key, 6)
    # c_attn: (2*C, C) PyTorch layout; rows [C:2C] (k slice) and the matching
    # bias half are zeroed by custom_variable_initialization().
    w_attn = 0.02 * jax.random.normal(k1, (2 * C, C), jnp.float32)
    w_attn = w_attn.at[C:2 * C, :].set(0.0)
    b_attn = 0.02 * jax.random.normal(k2, (2 * C,), jnp.float32)
    b_attn = b_attn.at[C:2 * C].set(0.0)
    wq = w_attn[:C].T                      # (C, C), y = x @ Wq + bq
    wk = w_attn[C:2 * C].T
    bq = b_attn[:C]
    bk = b_attn[C:2 * C]

    wfc = (0.02 * jax.random.normal(k3, (N_HIDDEN, C), jnp.float32)).T    # (C, 4C)
    bfc = 0.02 * jax.random.normal(k4, (N_HIDDEN,), jnp.float32)
    wproj = (0.02 * jax.random.normal(k5, (C, N_HIDDEN), jnp.float32)).T  # (4C, C)
    bproj = 0.02 * jax.random.normal(k6, (C,), jnp.float32)

    ln_w = jnp.ones((C,), jnp.float32)
    ln_b = jnp.zeros((C,), jnp.float32)
    return (ln_w, ln_b, wq, bq, wk, bk, wfc, bfc, wproj, bproj)


def pack_params(raw):
    """Pack parameters + all attention constants into 2 arrays (3 DMAs incl. x)."""
    (ln_w, ln_b, wq, bq, wk, bk, wfc, bfc, wproj, bproj) = raw

    # ---- weight blob (36, 192): [w_fused; b_fused; b_proj_eff; ln_w; ln_b] ----
    w_fused = jnp.concatenate([wfc, wq, wk], axis=1)                  # (C, 192)
    b_fused = jnp.concatenate([bfc, bq, bk])                          # (192,)
    w_blob = jnp.zeros((C + 4, FUSED), jnp.float32)
    w_blob = w_blob.at[0:C, :].set(w_fused)
    w_blob = w_blob.at[C, :].set(b_fused)
    w_blob = w_blob.at[C + 1, :C].set(BETA_FF * bproj)
    w_blob = w_blob.at[C + 2, :C].set(ln_w)
    w_blob = w_blob.at[C + 3, :C].set(ln_b)

    # ---- constant blob (320, 128) ----
    r = jnp.arange(BT)
    same_batch = (r[:, None] // T) == (r[None, :] // T)
    causal = same_batch & ((r[None, :] % T) <= (r[:, None] % T))      # block-diag causal
    add_mask_bd = jnp.where(causal, 0.0, NEG_INF).astype(jnp.float32)
    # MC = softmax(1e4 * tril) -> uniform causal averaging 1/(t+1) per batch block
    mc_bd = jnp.where(causal, 1.0 / ((r[:, None] % T).astype(jnp.float32) + 1.0), 0.0)
    id_bd = jnp.eye(BT, dtype=jnp.float32)                            # Id = softmax(1e4*eye)
    shaped_bd = BETA_SA * (ALPHA * id_bd - GAMMA * mc_bd)

    seg = jnp.arange(NW)
    ch = jnp.arange(C)
    hmask_v = ((seg[:, None] // BT) == (ch[None, :] // HD)).astype(jnp.float32)   # (128, 32)
    seg_ones = ((seg[:, None] // BT) == (seg[None, :] // BT)).astype(jnp.float32) # (128,128)

    c_blob = jnp.zeros((2 * BT + 2 * NW, NW), jnp.float32)            # (320, 128)
    c_blob = c_blob.at[0:BT, :].set(jnp.tile(add_mask_bd, (1, N_HEAD)))
    c_blob = c_blob.at[BT:2 * BT, :].set(jnp.tile(shaped_bd, (1, N_HEAD)))
    c_blob = c_blob.at[2 * BT:2 * BT + NW, :].set(seg_ones)
    c_blob = c_blob.at[2 * BT + NW:2 * BT + 2 * NW, 0:C].set(hmask_v)
    c_blob = c_blob.at[2 * BT + NW:2 * BT + 2 * NW, C:2 * C].set(BETA_FF * wproj)
    return (w_blob, c_blob)


def reference(x, raw):
    """Pure-JAX reference mirroring the PyTorch forward (eval, dropout=0)."""
    (ln_w, ln_b, wq, bq, wk, bk, wfc, bfc, wproj, bproj) = raw
    hp = lax.Precision.HIGHEST
    mu = jnp.mean(x, axis=-1, keepdims=True)
    var = jnp.mean((x - mu) ** 2, axis=-1, keepdims=True)
    nx = (x - mu) / jnp.sqrt(var + LN_EPS) * ln_w + ln_b

    q = jnp.dot(nx, wq, precision=hp) + bq
    k = jnp.dot(nx, wk, precision=hp) + bk
    qh = q.reshape(B, T, N_HEAD, HD).transpose(0, 2, 1, 3)
    kh = k.reshape(B, T, N_HEAD, HD).transpose(0, 2, 1, 3)
    vh = nx.reshape(B, T, N_HEAD, HD).transpose(0, 2, 1, 3)
    s = jnp.einsum('bhqd,bhkd->bhqk', qh, kh, precision=hp) * SCALE
    row = lax.broadcasted_iota(jnp.int32, (T, T), 0)
    col = lax.broadcasted_iota(jnp.int32, (T, T), 1)
    causal = col <= row
    s = jnp.where(causal, s, -jnp.inf)
    att = jax.nn.softmax(s, axis=-1)
    mc = jnp.where(causal, 1.0 / (row.astype(jnp.float32) + 1.0), 0.0)
    idm = jnp.eye(T, dtype=jnp.float32)
    shaped = BETA * att + ALPHA * idm - GAMMA * mc
    y = jnp.einsum('bhqk,bhkd->bhqd', shaped, vh, precision=hp)
    attn_out = y.transpose(0, 2, 1, 3).reshape(B, T, C)

    h1 = jnp.dot(nx, wfc, precision=hp) + bfc
    g = 0.5 * h1 * (1.0 + lax.erf(h1 * INV_SQRT2))        # exact GELU
    mlp_out = jnp.dot(g, wproj, precision=hp) + bproj
    return x + BETA_SA * attn_out + BETA_FF * mlp_out


if __name__ == "__main__":
    # keep the (host-side) reference matmuls in full f32 precision
    jax.config.update("jax_default_matmul_precision", "highest")

    key = jax.random.PRNGKey(0)
    kx, kp = jax.random.split(key)
    x = jax.random.normal(kx, (B, T, C), jnp.float32)

    # 1) module-faithful init (c_attn k-slice zeroed by custom_variable_initialization)
    raw = make_params(kp)
    ref = reference(x, raw)
    out = jax.block_until_ready(simplified_transformer_block(x, pack_params(raw)))
    assert out.shape == (B, T, C)
    err = float(jnp.max(jnp.abs(out - ref)))
    assert jnp.allclose(out, ref, atol=2e-4, rtol=2e-4), err

    # 2) same forward with a non-degenerate k projection, to also exercise the
    #    fused score-slab / softmax path with non-trivial attention weights.
    raw2 = list(raw)
    raw2[4] = 0.02 * jax.random.normal(jax.random.PRNGKey(7), (C, C), jnp.float32)  # wk
    raw2[5] = 0.02 * jax.random.normal(jax.random.PRNGKey(8), (C,), jnp.float32)    # bk
    raw2 = tuple(raw2)
    ref2 = reference(x, raw2)
    out2 = jax.block_until_ready(simplified_transformer_block(x, pack_params(raw2)))
    err2 = float(jnp.max(jnp.abs(out2 - ref2)))
    assert jnp.allclose(out2, ref2, atol=2e-4, rtol=2e-4), err2

    print("KERNEL_OK")
</pallas_src>

<mosaic_0001>
module attributes {stable_mosaic.version = 11 : i64} {
  func.func @block_kernel(%arg0: memref<32x32xf32, #tpu.memory_space<vmem>>, %arg1: memref<36x192xf32, #tpu.memory_space<vmem>>, %arg2: memref<320x128xf32, #tpu.memory_space<vmem>>, %arg3: memref<32x32xf32, #tpu.memory_space<vmem>>) attributes {dimension_semantics = [], scalar_prefetch = 0 : i64, scratch_operands = 0 : i64, tpu.core_type = #tpu.core_type<tc>} {
    %c0 = arith.constant 0 : index
    %c0_0 = arith.constant 0 : index
    %0 = vector.load %arg0[%c0, %c0_0] : memref<32x32xf32, #tpu.memory_space<vmem>>, vector<32x32xf32>
    %c34 = arith.constant 34 : index
    %c0_1 = arith.constant 0 : index
    %1 = vector.load %arg1[%c34, %c0_1] : memref<36x192xf32, #tpu.memory_space<vmem>>, vector<1x32xf32>
    %c35 = arith.constant 35 : index
    %c0_2 = arith.constant 0 : index
    %2 = vector.load %arg1[%c35, %c0_2] : memref<36x192xf32, #tpu.memory_space<vmem>>, vector<1x32xf32>
    %cst = arith.constant dense<0.000000e+00> : vector<32xf32>
    %3 = vector.multi_reduction <add>, %0, %cst [1] : vector<32x32xf32> to vector<32xf32>
    %4 = vector.shape_cast %3 : vector<32xf32> to vector<32x1xf32>
    %cst_3 = arith.constant 3.200000e+01 : f32
    %5 = vector.broadcast %cst_3 : f32 to vector<32x1xf32>
    %6 = arith.divf %4, %5 : vector<32x1xf32>
    %7 = vector.broadcast %6 : vector<32x1xf32> to vector<32x32xf32>
    %8 = arith.subf %0, %7 : vector<32x32xf32>
    %9 = arith.mulf %8, %8 : vector<32x32xf32>
    %cst_4 = arith.constant dense<0.000000e+00> : vector<32xf32>
    %10 = vector.multi_reduction <add>, %9, %cst_4 [1] : vector<32x32xf32> to vector<32xf32>
    %11 = vector.shape_cast %10 : vector<32xf32> to vector<32x1xf32>
    %cst_5 = arith.constant 3.200000e+01 : f32
    %12 = vector.broadcast %cst_5 : f32 to vector<32x1xf32>
    %13 = arith.divf %11, %12 : vector<32x1xf32>
    %cst_6 = arith.constant 9.99999974E-6 : f32
    %14 = vector.broadcast %cst_6 : f32 to vector<32x1xf32>
    %15 = arith.addf %13, %14 : vector<32x1xf32>
    %16 = math.rsqrt %15 : vector<32x1xf32>
    %17 = vector.broadcast %16 : vector<32x1xf32> to vector<32x32xf32>
    %18 = arith.mulf %8, %17 : vector<32x32xf32>
    %19 = vector.broadcast %1 : vector<1x32xf32> to vector<32x32xf32>
    %20 = arith.mulf %18, %19 : vector<32x32xf32>
    %21 = vector.broadcast %2 : vector<1x32xf32> to vector<32x32xf32>
    %22 = arith.addf %20, %21 : vector<32x32xf32>
    %c0_7 = arith.constant 0 : index
    %c0_8 = arith.constant 0 : index
    %23 = vector.load %arg1[%c0_7, %c0_8] : memref<36x192xf32, #tpu.memory_space<vmem>>, vector<32x192xf32>
    %cst_9 = arith.constant dense<0.000000e+00> : vector<32x192xf32>
    %24 = tpu.matmul %22, %23, %cst_9 {dimension_numbers = #tpu.dot_dimension_numbers<[1], [0], [0], [1], [0, 0, 1, 1], [], []>, precision = #tpu.contract_precision<fp32>} : vector<32x32xf32>, vector<32x192xf32>, vector<32x192xf32> -> vector<32x192xf32>
    %c32 = arith.constant 32 : index
    %c0_10 = arith.constant 0 : index
    %25 = vector.load %arg1[%c32, %c0_10] : memref<36x192xf32, #tpu.memory_space<vmem>>, vector<1x192xf32>
    %26 = vector.broadcast %25 : vector<1x192xf32> to vector<32x192xf32>
    %27 = arith.addf %24, %26 : vector<32x192xf32>
    %28 = vector.extract_strided_slice %27 {offsets = [0, 0], sizes = [32, 128], strides = [1, 1]} : vector<32x192xf32> to vector<32x128xf32>
    %29 = vector.extract_strided_slice %27 {offsets = [0, 128], sizes = [32, 32], strides = [1, 1]} : vector<32x192xf32> to vector<32x32xf32>
    %30 = vector.extract_strided_slice %27 {offsets = [0, 160], sizes = [32, 32], strides = [1, 1]} : vector<32x192xf32> to vector<32x32xf32>
    %c0_11 = arith.constant 0 : index
    %c0_12 = arith.constant 0 : index
    %31 = vector.load %arg2[%c0_11, %c0_12] : memref<320x128xf32, #tpu.memory_space<vmem>>, vector<32x128xf32>
    %c32_13 = arith.constant 32 : index
    %c0_14 = arith.constant 0 : index
    %32 = vector.load %arg2[%c32_13, %c0_14] : memref<320x128xf32, #tpu.memory_space<vmem>>, vector<32x128xf32>
    %c64 = arith.constant 64 : index
    %c0_15 = arith.constant 0 : index
    %33 = vector.load %arg2[%c64, %c0_15] : memref<320x128xf32, #tpu.memory_space<vmem>>, vector<128x128xf32>
    %c192 = arith.constant 192 : index
    %c0_16 = arith.constant 0 : index
    %34 = vector.load %arg2[%c192, %c0_16] : memref<320x128xf32, #tpu.memory_space<vmem>>, vector<128x32xf32>
    %c192_17 = arith.constant 192 : index
    %c32_18 = arith.constant 32 : index
    %35 = vector.load %arg2[%c192_17, %c32_18] : memref<320x128xf32, #tpu.memory_space<vmem>>, vector<128x32xf32>
    %c33 = arith.constant 33 : index
    %c0_19 = arith.constant 0 : index
    %36 = vector.load %arg1[%c33, %c0_19] : memref<36x192xf32, #tpu.memory_space<vmem>>, vector<1x32xf32>
    %37 = tpu.concatenate %30, %30, %30, %30 in 0 : vector<32x32xf32>, vector<32x32xf32>, vector<32x32xf32>, vector<32x32xf32> -> vector<128x32xf32>
    %38 = arith.mulf %37, %34 : vector<128x32xf32>
    %cst_20 = arith.constant dense<0.000000e+00> : vector<32x128xf32>
    %39 = tpu.matmul %29, %38, %cst_20 {dimension_numbers = #tpu.dot_dimension_numbers<[1], [1], [0], [0], [0, 0, 1, 0], [], []>, precision = #tpu.contract_precision<fp32>} : vector<32x32xf32>, vector<128x32xf32>, vector<32x128xf32> -> vector<32x128xf32>
    %cst_21 = arith.constant 0.353553385 : f32
    %40 = vector.broadcast %cst_21 : f32 to vector<32x128xf32>
    %41 = arith.mulf %39, %40 : vector<32x128xf32>
    %42 = arith.addf %41, %31 : vector<32x128xf32>
    %cst_22 = arith.constant dense<0xFF800000> : vector<32xf32>
    %43 = vector.multi_reduction <maximumf>, %42, %cst_22 [1] : vector<32x128xf32> to vector<32xf32>
    %44 = vector.shape_cast %43 : vector<32xf32> to vector<32x1xf32>
    %45 = vector.broadcast %44 : vector<32x1xf32> to vector<32x128xf32>
    %46 = arith.subf %42, %45 : vector<32x128xf32>
    %47 = math.exp %46 : vector<32x128xf32>
    %cst_23 = arith.constant dense<0.000000e+00> : vector<32x128xf32>
    %48 = tpu.matmul %47, %33, %cst_23 {dimension_numbers = #tpu.dot_dimension_numbers<[1], [0], [0], [1], [0, 0, 1, 1], [], []>, precision = #tpu.contract_precision<fp32>} : vector<32x128xf32>, vector<128x128xf32>, vector<32x128xf32> -> vector<32x128xf32>
    %cst_24 = arith.constant 1.000000e-01 : f32
    %49 = vector.broadcast %cst_24 : f32 to vector<32x128xf32>
    %50 = arith.mulf %49, %47 : vector<32x128xf32>
    %51 = arith.divf %50, %48 : vector<32x128xf32>
    %52 = arith.addf %51, %32 : vector<32x128xf32>
    %53 = tpu.concatenate %22, %22, %22, %22 in 0 : vector<32x32xf32>, vector<32x32xf32>, vector<32x32xf32>, vector<32x32xf32> -> vector<128x32xf32>
    %54 = arith.mulf %53, %34 : vector<128x32xf32>
    %cst_25 = arith.constant dense<0.000000e+00> : vector<32x32xf32>
    %55 = tpu.matmul %52, %54, %cst_25 {dimension_numbers = #tpu.dot_dimension_numbers<[1], [0], [0], [1], [0, 0, 1, 1], [], []>, precision = #tpu.contract_precision<fp32>} : vector<32x128xf32>, vector<128x32xf32>, vector<32x32xf32> -> vector<32x32xf32>
    %cst_26 = arith.constant 0.707106769 : f32
    %56 = vector.broadcast %cst_26 : f32 to vector<32x128xf32>
    %57 = arith.mulf %28, %56 : vector<32x128xf32>
    %58 = math.absf %57 : vector<32x128xf32>
    %cst_27 = arith.constant 0.327591091 : f32
    %59 = vector.broadcast %cst_27 : f32 to vector<32x128xf32>
    %60 = arith.mulf %59, %58 : vector<32x128xf32>
    %cst_28 = arith.constant 1.000000e+00 : f32
    %61 = vector.broadcast %cst_28 : f32 to vector<32x128xf32>
    %62 = arith.addf %61, %60 : vector<32x128xf32>
    %cst_29 = arith.constant 1.000000e+00 : f32
    %63 = vector.broadcast %cst_29 : f32 to vector<32x128xf32>
    %64 = arith.divf %63, %62 : vector<32x128xf32>
    %cst_30 = arith.constant 1.06140542 : f32
    %65 = vector.broadcast %cst_30 : f32 to vector<32x128xf32>
    %66 = arith.mulf %64, %65 : vector<32x128xf32>
    %cst_31 = arith.constant -1.45315206 : f32
    %67 = vector.broadcast %cst_31 : f32 to vector<32x128xf32>
    %68 = arith.addf %67, %66 : vector<32x128xf32>
    %69 = arith.mulf %64, %68 : vector<32x128xf32>
    %cst_32 = arith.constant 1.42141378 : f32
    %70 = vector.broadcast %cst_32 : f32 to vector<32x128xf32>
    %71 = arith.addf %70, %69 : vector<32x128xf32>
    %72 = arith.mulf %64, %71 : vector<32x128xf32>
    %cst_33 = arith.constant -0.284496725 : f32
    %73 = vector.broadcast %cst_33 : f32 to vector<32x128xf32>
    %74 = arith.addf %73, %72 : vector<32x128xf32>
    %75 = arith.mulf %64, %74 : vector<32x128xf32>
    %cst_34 = arith.constant 0.254829586 : f32
    %76 = vector.broadcast %cst_34 : f32 to vector<32x128xf32>
    %77 = arith.addf %76, %75 : vector<32x128xf32>
    %78 = arith.mulf %64, %77 : vector<32x128xf32>
    %cst_35 = arith.constant 0.000000e+00 : f32
    %79 = vector.broadcast %cst_35 : f32 to vector<32x128xf32>
    %80 = arith.subf %79, %58 : vector<32x128xf32>
    %81 = arith.mulf %80, %58 : vector<32x128xf32>
    %82 = math.exp %81 : vector<32x128xf32>
    %83 = arith.mulf %78, %82 : vector<32x128xf32>
    %cst_36 = arith.constant 1.000000e+00 : f32
    %84 = vector.broadcast %cst_36 : f32 to vector<32x128xf32>
    %85 = arith.subf %84, %83 : vector<32x128xf32>
    %cst_37 = arith.constant 0.000000e+00 : f32
    %86 = vector.broadcast %cst_37 : f32 to vector<32x128xf32>
    %87 = arith.cmpf oge, %57, %86 : vector<32x128xf32>
    %cst_38 = arith.constant 0.000000e+00 : f32
    %88 = vector.broadcast %cst_38 : f32 to vector<32x128xf32>
    %89 = arith.subf %88, %85 : vector<32x128xf32>
    %90 = arith.select %87, %85, %89 : vector<32x128xi1>, vector<32x128xf32>
    %cst_39 = arith.constant 5.000000e-01 : f32
    %91 = vector.broadcast %cst_39 : f32 to vector<32x128xf32>
    %92 = arith.mulf %91, %28 : vector<32x128xf32>
    %cst_40 = arith.constant 1.000000e+00 : f32
    %93 = vector.broadcast %cst_40 : f32 to vector<32x128xf32>
    %94 = arith.addf %93, %90 : vector<32x128xf32>
    %95 = arith.mulf %92, %94 : vector<32x128xf32>
    %cst_41 = arith.constant dense<0.000000e+00> : vector<32x32xf32>
    %96 = tpu.matmul %95, %35, %cst_41 {dimension_numbers = #tpu.dot_dimension_numbers<[1], [0], [0], [1], [0, 0, 1, 1], [], []>, precision = #tpu.contract_precision<fp32>} : vector<32x128xf32>, vector<128x32xf32>, vector<32x32xf32> -> vector<32x32xf32>
    %97 = vector.broadcast %36 : vector<1x32xf32> to vector<32x32xf32>
    %98 = arith.addf %96, %97 : vector<32x32xf32>
    %99 = arith.addf %0, %55 : vector<32x32xf32>
    %100 = arith.addf %99, %98 : vector<32x32xf32>
    %c0_42 = arith.constant 0 : index
    %c0_43 = arith.constant 0 : index
    %101 = vector.load %arg3[%c0_42, %c0_43] : memref<32x32xf32, #tpu.memory_space<vmem>>, vector<32x32xf32>
    tpu.vector_store %arg3[%c0_42, %c0_43], %100 {strides = array<i32>} : memref<32x32xf32, #tpu.memory_space<vmem>>, vector<32x32xf32>,
    return
  }
}

</mosaic_0001>

<bundles_post_ra>
// kernel: tpu_custom_call.1
= control target key start
LH: loop header
LB: loop body
LE: loop exit
PB: predicated region body
PF: predicated region fallthrough
CT: control target
= control target key end

     0   :  { %8 = vsyncpa [#allocation3], 0  ;;  %s8837_s0 = inlined_call_operand.hbm [shape: f32[32,32], index: 0, kind: input, shape index: {}, may-alias: {0,3}]   ;;  %s8838_s1 = inlined_call_operand.hbm [shape: f32[36,192], index: 1, kind: input, shape index: {}]   ;;  %s8839_s2 = inlined_call_operand.hbm [shape: f32[320,128], index: 2, kind: input, shape index: {}]   ;;  %s8840_s3 = inlined_call_operand.hbm [shape: f32[32,32], index: 3, kind: output, shape index: {}, may-alias: {0,3}]  }
   0x1   :  { %9 = vsyncpa [#allocation6], 0 }
   0x2   :  { %10 = vsyncpa [#allocation4], 0  ;;  %s6899_s12 = smov [#allocation5]   ;;  %s6805_s16 = scalar_lea.hbm %s8838_s1, 1280 }
   0x3   :  { %s28_s13 = sshll.u32 %s6899_s12, 4  ;;  %p6806_p0 = scmp.ne.s32.totalorder %s8838_s1, %s6805_s16  ;;  %s29_s13 = int_to_ptr.vmem [resolvable:$true] %s28_s13 }
   0x4   :  { %p6809_p1 = scmp.lt.u32.totalorder %s6805_s16, %s8838_s1 }
   0x6   :  { %p6811_p2 = pnand %p6809_p1, %p6806_p0 }
   0x8   :  { %6814 = shalt.err (!%p6811_p2)
}
   0x9   :  { %s6815_s21 = scalar_lea.vmem %s29_s13, 1280  ;;  %p6820_p4 = scmp.lt.s32.totalorder %s29_s13, %s29_s13 }
   0xa   :  { %p6816_p3 = scmp.ne.s32.totalorder %s29_s13, %s6815_s21  ;;  %p6821_p5 = scmp.lt.s32.totalorder %s6815_s21, %s6815_s21 }
   0xc   :  { %p6822_p6 = por %p6821_p5, %p6820_p4 }
   0xe   :  { %p6823_p7 = pnand %p6822_p6, %p6816_p3 }
  0x10   :  { %6826 = shalt.err (!%p6823_p7)
}
  0x11   :  { %s6900_s22 = smov 256   ;;  %s6901_s23 = smov 16  }
  0x12   :  { %34 = dma.hbm_to_vmem [thread:$0]  %s8838_s1, 1280, %s29_s13, [#allocation6], %s6900_s22, %s6900_s22, %s6901_s23  }
  0x13   :  { %s6902_s26 = smov [#allocation2]   ;;  %s6827_s30 = scalar_lea.hbm %s8837_s0, 512 }
  0x14   :  { %s16_s27 = sshll.u32 %s6902_s26, 4  ;;  %p6828_p8 = scmp.ne.s32.totalorder %s8837_s0, %s6827_s30  ;;  %s17_s27 = int_to_ptr.vmem [resolvable:$true] %s16_s27 }
  0x15   :  { %p6831_p9 = scmp.lt.u32.totalorder %s6827_s30, %s8837_s0 }
  0x17   :  { %p6833_p10 = pnand %p6831_p9, %p6828_p8 }
  0x19   :  { %6836 = shalt.err (!%p6833_p10)
}
  0x1a   :  { %s6837_s8 = scalar_lea.vmem %s17_s27, 512  ;;  %p6842_p12 = scmp.lt.s32.totalorder %s17_s27, %s17_s27 }
  0x1b   :  { %p6838_p11 = scmp.ne.s32.totalorder %s17_s27, %s6837_s8  ;;  %p6843_p13 = scmp.lt.s32.totalorder %s6837_s8, %s6837_s8 }
  0x1d   :  { %p6844_p0 = por %p6843_p13, %p6842_p12 }
  0x1f   :  { %p6845_p1 = pnand %p6844_p0, %p6838_p11 }
  0x21   :  { %6848 = shalt.err (!%p6845_p1)
}
  0x22   :  { %s6903_s1 = smov 128   ;;  %s6904_s9 = smov 8  }
  0x23   :  { %22 = dma.hbm_to_vmem [thread:$0]  %s8837_s0, 512, %s17_s27, [#allocation3], %s6903_s1, %s6903_s1, %s6904_s9  }
  0x24   :  { %s6905_s12 = smov [#allocation7]   ;;  %s6849_s16 = scalar_lea.hbm %s8839_s2, 5120 }
  0x25   :  { %s40_s13 = sshll.u32 %s6905_s12, 4  ;;  %p6850_p2 = scmp.ne.s32.totalorder %s8839_s2, %s6849_s16  ;;  %s41_s13 = int_to_ptr.vmem [resolvable:$true] %s40_s13 }
  0x26   :  { %p6853_p3 = scmp.lt.u32.totalorder %s6849_s16, %s8839_s2 }
  0x28   :  { %p6855_p4 = pnand %p6853_p3, %p6850_p2 }
  0x2a   :  { %6858 = shalt.err (!%p6855_p4)
}
  0x2b   :  { %s6859_s21 = scalar_lea.vmem %s41_s13, 5120  ;;  %p6864_p6 = scmp.lt.s32.totalorder %s41_s13, %s41_s13 }
  0x2c   :  { %p6860_p5 = scmp.ne.s32.totalorder %s41_s13, %s6859_s21  ;;  %p6865_p7 = scmp.lt.s32.totalorder %s6859_s21, %s6859_s21 }
  0x2e   :  { %p6866_p8 = por %p6865_p7, %p6864_p6 }
  0x30   :  { %p6867_p9 = pnand %p6866_p8, %p6860_p5 }
  0x32   :  { %6870 = shalt.err (!%p6867_p9)
}
  0x33   :  { %46 = dma.hbm_to_vmem [thread:$0]  %s8839_s2, 5120, %s41_s13, [#allocation6], %s6903_s1, %s6903_s1, %s6904_s9  }
  0x34   :  { %6893 = dma.done.wait [#allocation3], 512  }
  0x35   :  { %6894 = vsyncadd [#allocation3], 4294966784 }
  0x36   :  { %6895 = dma.done.wait [#allocation6], 6400  }
  0x37   :  { %6896 = vsyncadd [#allocation6], 4294960896  ;;  %vm62_vm0 = vcmask 261120   ;;  %v56_v0 = vld [vmem:[#allocation2] sm:$0xff]  ;;  %v58_v1 = vld [vmem:[#allocation2 + $0x10] sm:$0xff]  ;;  %s6907_s2 = smov 32  }
  0x38   :  { %v57_v2 = vld [vmem:[#allocation2 + $0x8] sm:$0xff]  ;;  %v63_v3 = vsel %vm62_vm0, %v56_v0, 0.0  ;;  %v69_v4 = vsel %vm62_vm0, %v58_v1, 0.0  ;;  %v59_v5 = vld [vmem:[#allocation2 + $0x18] sm:$0xff]  ;;  %v124_v32 = vld [vmem:[#allocation5] sm:$0xff]  ;;  %s6908_s23 = smov 96  }
  0x39   :  { %64 = vadd.xlane.f32.xlu0 %v63_v3  ;;  %70 = vadd.xlane.f32.xlu1 %v69_v4  ;;  %v66_v6 = vsel %vm62_vm0, %v57_v2, 0.0  ;;  %v72_v7 = vsel %vm62_vm0, %v59_v5, 0.0  ;;  %v125_v28 = vld [vmem:[#allocation5 + $0x8] sm:$0xff]  ;;  %v127_v29 = vld [vmem:[#allocation5 + $0x18] sm:$0xff]  ;;  %v126_v33 = vld [vmem:[#allocation5 + $0x10] sm:$0xff]  ;;  %v159_v34 = vand.u32 4294901760, %v124_v32 }
  0x3a   :  { %v157_v30 = vand.u32 4294901760, %v125_v28  ;;  %v161_v31 = vand.u32 4294901760, %v127_v29  ;;  %v163_v35 = vand.u32 4294901760, %v126_v33  ;;  %v129_v40 = vld [vmem:[#allocation5 + $0x28] sm:$0xff]  ;;  %v131_v41 = vld [vmem:[#allocation5 + $0x38] sm:$0xff]  ;;  %v128_v46 = vld [vmem:[#allocation5 + $0x20] sm:$0xff] }
  0x3b   :  { %v7000_v38 = vsub.f32 %v124_v32, %v159_v34  ;;  %v165_v44 = vand.u32 4294901760, %v129_v40  ;;  %v169_v45 = vand.u32 4294901760, %v131_v41  ;;  %v130_v47 = vld [vmem:[#allocation5 + $0x30] sm:$0xff]  ;;  %v167_v50 = vand.u32 4294901760, %v128_v46  ;;  %s6909_s24 = smov [#allocation8]  }
  0x3c   :  { %v6996_v36 = vsub.f32 %v125_v28, %v157_v30  ;;  %v6998_v37 = vsub.f32 %v127_v29, %v161_v31  ;;  %v7002_v39 = vsub.f32 %v126_v33, %v163_v35  ;;  %v171_v51 = vand.u32 4294901760, %v130_v47  ;;  %v7058_v33 = vld [vmem:[#allocation7 + $0xc8] sm:$0xff]  ;;  %s4373_s25 = sshll.u32 %s6909_s24, 4  ;;  %s4374_s25 = int_to_ptr.vmem [resolvable:$true] %s4373_s25 }
  0x3d   :  { %67 = vadd.xlane.f32.xlu0 %v66_v6  ;;  %73 = vadd.xlane.f32.xlu1 %v72_v7  ;;  %v282_v48 = vand.u32 4294901760, %v7000_v38  ;;  %v7010_v54 = vsub.f32 %v129_v40, %v165_v44  ;;  %v7012_v55 = vsub.f32 %v131_v41, %v169_v45  ;;  %v7016_v58 = vsub.f32 %v128_v46, %v167_v50  ;;  %v7070_v40 = vld [vmem:[#allocation7 + $0xf0] sm:$0xff]  ;;  %v7076_v41 = vld [vmem:[#allocation7 + $0xe8] sm:$0xff]  ;;  %v883_v46 = vld [vmem:[#allocation7 + $0x120] sm:$0xff]  ;;  %s6871_s26 = scalar_lea.vmem %s4374_s25, 512  ;;  %p6876_p11 = scmp.lt.s32.totalorder %s4374_s25, %s4374_s25 }
  0x3e   :  { %v276_v42 = vand.u32 4294901760, %v6996_v36  ;;  %v288_v43 = vand.u32 4294901760, %v6998_v37  ;;  %v294_v49 = vand.u32 4294901760, %v7002_v39  ;;  %v7018_v59 = vsub.f32 %v130_v47, %v171_v51  ;;  %v7094_v47 = vld [vmem:[#allocation7 + $0x118] sm:$0xff]  ;;  %p6872_p10 = scmp.ne.s32.totalorder %s4374_s25, %s6871_s26  ;;  %p6877_p12 = scmp.lt.s32.totalorder %s6871_s26, %s6871_s26 }
  0x3f   :  { %v283_v56 = vsub.f32 %v7000_v38, %v282_v48  ;;  %v300_v62 = vand.u32 4294901760, %v7010_v54  ;;  %v312_v63 = vand.u32 4294901760, %v7012_v55 }
  0x40   :  { %v277_v52 = vsub.f32 %v6996_v36, %v276_v42  ;;  %v289_v53 = vsub.f32 %v6998_v37, %v288_v43  ;;  %v295_v57 = vsub.f32 %v7002_v39, %v294_v49  ;;  %v318_v3 = vand.u32 4294901760, %v7018_v59  ;;  %p6878_p13 = por %p6877_p12, %p6876_p11 }
  0x41   :  { %v313_v6 = vsub.f32 %v7012_v55, %v312_v63  ;;  %v5800_v28 = vpack.c.bf16 %v7018_v59, %v7016_v58  ;;  %v7050_v29 = vpack.c.bf16 %v288_v43, %v276_v42  ;;  %v879_v42 = vld [vmem:[#allocation7 + $0x100] sm:$0xff]  ;;  %v7081_v43 = vld [vmem:[#allocation7 + $0xf8] sm:$0xff] }
  0x42   :  { %v278_v60 = vand.u32 4294901760, %v277_v52  ;;  %v290_v61 = vand.u32 4294901760, %v289_v53  ;;  %p6879_p0 = pnand %p6878_p13, %p6872_p10 }
  0x44   :  { %v5786_v4 = vpack.c.bf16 %v290_v61, %v278_v60  ;;  %v7106_v61 = vld [vmem:[#allocation7 + $0x138] sm:$0xff] }
  0x46   :  { %5787 = vmatprep.subr.bf16.mxu0 %v5786_v4  ;;  %v60_v4 = vld [vmem:[#allocation5 + $0x42] ss:$0 sm:$0xff] }
  0xc6   :  { %v65_v8 = vpop.xlane.xlu0 %64  ;;  %v71_v9 = vpop.xlane.xlu1 %70 }
  0xc7   :  { %v76_v10 = vmul.f32 0.03125, %v65_v8  ;;  %v78_v11 = vmul.f32 0.03125, %v71_v9  ;;  %v319_v9 = vsub.f32 %v7018_v59, %v318_v3 }
  0xc9   :  { %v6976_v12 = vsub.f32 %v56_v0, %v76_v10  ;;  %v6978_v13 = vsub.f32 %v58_v1, %v78_v11  ;;  %v284_v0 = vand.u32 4294901760, %v283_v56  ;;  %v296_v1 = vand.u32 4294901760, %v295_v57 }
  0xca   :  { %v68_v14 = vpop.xlane.xlu0 %67  ;;  %v74_v15 = vpop.xlane.xlu1 %73  ;;  %v314_v11 = vand.u32 4294901760, %v313_v6  ;;  %v61_v6 = vld [vmem:[#allocation5 + $0x43] ss:$0 sm:$0xff] }
  0xcb   :  { %v77_v16 = vmul.f32 0.03125, %v68_v14  ;;  %v79_v17 = vmul.f32 0.03125, %v74_v15  ;;  %v84_v18 = vmul.f32 %v6976_v12, %v6976_v12  ;;  %v86_v19 = vmul.f32 %v6978_v13, %v6978_v13 }
  0xcc   :  { %v5788_v7 = vpack.c.bf16 %v296_v1, %v284_v0  ;;  %v320_v15 = vand.u32 4294901760, %v319_v9 }
  0xcd   :  { %v6984_v20 = vsub.f32 %v57_v2, %v77_v16  ;;  %v6986_v21 = vsub.f32 %v59_v5, %v79_v17  ;;  %v88_v22 = vsel %vm62_vm0, %v84_v18, 0.0  ;;  %v94_v23 = vsel %vm62_vm0, %v86_v19, 0.0 }
  0xce   :  { %89 = vadd.xlane.f32.xlu0 %v88_v22  ;;  %v306_v2 = vand.u32 4294901760, %v7016_v58  ;;  %v301_v5 = vsub.f32 %v7010_v54, %v300_v62  ;;  %5789 = vmatpush1.bf16.msra.mxu0 %v5788_v7  ;;  %v7028_v18 = vpack.c.bf16 %v161_v31, %v157_v30  ;;  %v8852_v19 = vmov 0.0  }
  0xcf   :  { %v85_v24 = vmul.f32 %v6984_v20, %v6984_v20  ;;  %v87_v25 = vmul.f32 %v6986_v21, %v6986_v21  ;;  %378 = vmatprep.mubr.f32.mxu0 %v8852_v19  ;;  %v7031_v22 = vpack.c.bf16 %v163_v35, %v159_v34  ;;  %229 = vmatprep.mubr.f32.mxu1 %v8852_v19  ;;  %v871_v34 = vld [vmem:[#allocation7 + $0xc0] sm:$0xff]  ;;  %v7063_v35 = vld [vmem:[#allocation7 + $0xd0] sm:$0xff] }
  0xd0   :  { %v307_v8 = vsub.f32 %v7016_v58, %v306_v2  ;;  %v302_v10 = vand.u32 4294901760, %v301_v5  ;;  %5779 = vmatprep.subr.bf16.mxu1 %v7028_v18  ;;  %v7052_v30 = vpack.c.bf16 %v294_v49, %v282_v48  ;;  %v7054_v31 = vpack.c.bf16 %v312_v63, %v300_v62  ;;  %v7096_v48 = vld [vmem:[#allocation7 + $0x130] sm:$0xff] }
  0xd1   :  { %v91_v26 = vsel %vm62_vm0, %v85_v24, 0.0  ;;  %v97_v27 = vsel %vm62_vm0, %v87_v25, 0.0  ;;  %5781 = vmatpush1.bf16.msra.mxu1 %v7031_v22  ;;  %v5796_v24 = vpack.c.bf16 %v7002_v39, %v7000_v38  ;;  %v7040_v25 = vpack.c.bf16 %v169_v45, %v165_v44  ;;  %v7083_v44 = vld [vmem:[#allocation7 + $0x110] sm:$0xff]  ;;  %v7089_v45 = vld [vmem:[#allocation7 + $0x108] sm:$0xff] }
  0xd2   :  { %95 = vadd.xlane.f32.xlu0 %v94_v23  ;;  %92 = vadd.xlane.f32.xlu1 %v91_v26  ;;  %v308_v14 = vand.u32 4294901760, %v307_v8  ;;  %v5790_v16 = vpack.c.bf16 %v314_v11, %v302_v10  ;;  %v5794_v23 = vpack.c.bf16 %v6998_v37, %v6996_v36  ;;  %v7042_v26 = vpack.c.bf16 %v171_v51, %v167_v50  ;;  %v875_v36 = vld [vmem:[#allocation7 + $0xe0] sm:$0xff]  ;;  %v7068_v37 = vld [vmem:[#allocation7 + $0xd8] sm:$0xff]  ;;  %v7102_v51 = vld [vmem:[#allocation7 + $0x128] sm:$0xff] }
  0xd3   :  { %5783 = vmatprep.subr.bf16.mxu1 %v7040_v25  ;;  %v7056_v32 = vpack.c.bf16 %v318_v3, %v306_v2 }
  0xd4   :  { %v5792_v17 = vpack.c.bf16 %v320_v15, %v308_v14  ;;  %5791 = vmatprep.subr.bf16.mxu0 %v5790_v16 }
  0xd5   :  { %5785 = vmatpush1.bf16.msra.mxu1 %v7042_v26 }
  0xd6   :  { %98 = vadd.xlane.f32.xlu1 %v97_v27  ;;  %5793 = vmatpush1.bf16.msra.mxu0 %v5792_v17  ;;  %v5798_v27 = vpack.c.bf16 %v7012_v55, %v7010_v54 }
  0xd7   :  { %5795 = vmatprep.subr.bf16.mxu0 %v5794_v23 }
  0xe7   :  { %906 = vrot.lane.b32.xlu1 %v7058_v33, %s6907_s2 }
  0xe8   :  { %904 = vrot.lane.b32.xlu0 %v871_v34, %s6907_s2 }
  0xeb   :  { %908 = vrot.lane.b32.xlu1 %v7063_v35, %s6907_s2 }
  0xec   :  { %912 = vrot.lane.b32.xlu0 %v875_v36, %s6907_s2 }
  0xef   :  { %910 = vrot.lane.b32.xlu1 %v7068_v37, %s6907_s2 }
  0xf0   :  { %916 = vrot.lane.b32.xlu0 %v7070_v40, %s6907_s2 }
  0xf3   :  { %914 = vrot.lane.b32.xlu1 %v7076_v41, %s6907_s2 }
  0xf4   :  { %920 = vrot.lane.b32.xlu0 %v879_v42, %s6907_s2 }
  0xf7   :  { %918 = vrot.lane.b32.xlu1 %v7081_v43, %s6907_s2 }
  0xf8   :  { %924 = vrot.lane.b32.xlu0 %v7083_v44, %s6907_s2 }
  0xfb   :  { %922 = vrot.lane.b32.xlu1 %v7089_v45, %s6907_s2 }
  0xfc   :  { %928 = vrot.lane.b32.xlu0 %v883_v46, %s6907_s2 }
  0xff   :  { %926 = vrot.lane.b32.xlu1 %v7094_v47, %s6907_s2 }
 0x100   :  { %932 = vrot.lane.b32.xlu0 %v7096_v48, %s6907_s2 }
 0x103   :  { %930 = vrot.lane.b32.xlu1 %v7102_v51, %s6907_s2 }
 0x107   :  { %934 = vrot.lane.b32.xlu1 %v7106_v61, %s6907_s2 }
 0x15b   :  { %v90_v49 = vpop.xlane.xlu0 %89 }
 0x15c   :  { %v100_v50 = vmul.f32 0.03125, %v90_v49 }
 0x15e   :  { %v104_v52 = vadd.f32 1e-05, %v100_v50 }
 0x15f   :  { %v93_v53 = vpop.xlane.xlu1 %92  ;;  %v96_v56 = vpop.xlane.xlu0 %95 }
 0x160   :  { %6745 = vrsqrt.f32 %v104_v52  ;;  %v101_v57 = vmul.f32 0.03125, %v93_v53  ;;  %v102_v60 = vmul.f32 0.03125, %v96_v56 }
 0x162   :  { %v105_v62 = vadd.f32 1e-05, %v101_v57  ;;  %v106_v63 = vadd.f32 1e-05, %v102_v60 }
 0x163   :  { %v99_v0 = vpop.xlane.xlu1 %98 }
 0x164   :  { %6747 = vrsqrt.f32 %v105_v62  ;;  %v103_v1 = vmul.f32 0.03125, %v99_v0 }
 0x165   :  { %6749 = vrsqrt.f32 %v106_v63 }
 0x166   :  { %v107_v2 = vadd.f32 1e-05, %v103_v1 }
 0x168   :  { %6751 = vrsqrt.f32 %v107_v2 }
 0x16a   :  { %v6746_v3 = vpop.eup %6745 }
 0x16b   :  { %v112_v5 = vmul.f32 %v6746_v3, %v6976_v12 }
 0x16d   :  { %v116_v7 = vmul.f32 %v112_v5, %v60_v4 }
 0x16e   :  { %v6748_v8 = vpop.eup %6747 }
 0x16f   :  { %v6750_v9 = vpop.eup %6749  ;;  %v120_v10 = vadd.f32 %v116_v7, %v61_v6  ;;  %v113_v11 = vmul.f32 %v6748_v8, %v6984_v20 }
 0x170   :  { %v114_v14 = vmul.f32 %v6750_v9, %v6978_v13 }
 0x171   :  { %v117_v15 = vmul.f32 %v113_v11, %v60_v4  ;;  %v146_v16 = vsel %vm62_vm0, %v120_v10, 0  ;;  %v2644_v17 = vmul.f32 %v871_v34, %v120_v10  ;;  %v7114_v23 = vmul.f32 %v875_v36, %v120_v10 }
 0x172   :  { %v6752_v49 = vpop.eup %6751  ;;  %v118_v50 = vmul.f32 %v114_v14, %v60_v4  ;;  %v7116_v52 = vand.u32 4294901760, %v146_v16  ;;  %v7118_v12 = vmul.f32 %v879_v42, %v120_v10  ;;  %v7120_v53 = vmul.f32 %v883_v46, %v120_v10 }
 0x173   :  { %v7122_v56 = vadd.f32 %v117_v15, %v61_v6  ;;  %v115_v20 = vmul.f32 %v6752_v49, %v6986_v21  ;;  %v2661_v57 = vand.u32 4294901760, %v2644_v17  ;;  %v2673_v13 = vand.u32 4294901760, %v7114_v23 }
 0x174   :  { %v7126_v60 = vadd.f32 %v118_v50, %v61_v6  ;;  %380 = vmatmul.mubr.f32.vlgmr.msra.gmra.mrb[0].mxu0 %v7116_v52  ;;  %v7130_v34 = vsub.f32 %v146_v16, %v7116_v52  ;;  %v2685_v36 = vand.u32 4294901760, %v7118_v12  ;;  %v2697_v42 = vand.u32 4294901760, %v7120_v53 }
 0x175   :  { %v119_v46 = vmul.f32 %v115_v20, %v60_v4  ;;  %5797 = vmatpush1.bf16.msra.mxu0 %v5796_v24  ;;  %385 = vmatprep.mubr.f32.mxu0 %v8852_v19  ;;  %v149_v21 = vsel %vm62_vm0, %v7122_v56, 0  ;;  %v2645_v62 = vmul.f32 %v7058_v33, %v7122_v56  ;;  %v7142_v63 = vsub.f32 %v2644_v17, %v2661_v57 }
 0x176   :  { %v7144_v0 = vand.u32 4294901760, %v149_v21  ;;  %5799 = vmatprep.subr.bf16.mxu0 %v5798_v27  ;;  %v8850_v1 = vand.u32 4294901760, %v7130_v34  ;;  %v152_v38 = vsel %vm62_vm0, %v7126_v60, 0  ;;  %v2646_v39 = vmul.f32 %v7063_v35, %v7126_v60 }
 0x177   :  { %v7154_v24 = vadd.f32 %v119_v46, %v61_v6  ;;  %v7156_v2 = vand.u32 4294901760, %v152_v38  ;;  %v2664_v33 = vand.u32 4294901760, %v2645_v62  ;;  %v7159_v3 = vsub.f32 %v7114_v23, %v2673_v13 }
 0x178   :  { %387 = vmatmul.mubr.f32.gmra.mrb[2].mxu0 %v7144_v0  ;;  %v233_v54 = vsub.f32 %v7130_v34, %v8850_v1  ;;  %v7166_v55 = vsub.f32 %v149_v21, %v7144_v0  ;;  %v2667_v27 = vand.u32 4294901760, %v2646_v39  ;;  %v2650_v35 = vmul.f32 %v7070_v40, %v7126_v60 }
 0x179   :  { %392 = vmatprep.mubr.f32.mxu0 %v8852_v19  ;;  %5801 = vmatpush1.bf16.msra.mxu0 %v5800_v28  ;;  %v155_v4 = vsel %vm62_vm0, %v7154_v24, 0  ;;  %v7177_v5 = vsub.f32 %v152_v38, %v7156_v2  ;;  %v7179_v6 = vsub.f32 %v2645_v62, %v2664_v33  ;;  %v7181_v7 = vpack.c.bf16 %v2664_v33, %v2661_v57 }
 0x17a   :  { %v234_v8 = vand.u32 4294901760, %v233_v54  ;;  %v8843_v9 = vand.u32 4294901760, %v7166_v55  ;;  %v7184_v40 = vand.u32 4294901760, %v155_v4  ;;  %5803 = vmatprep.subr.bf16.mxu0 %v7028_v18  ;;  %v7187_v10 = vsub.f32 %v2646_v39, %v2667_v27 }
 0x17b   :  { %v8842_v58 = vand.u32 4294901760, %v7177_v5  ;;  %v2647_v59 = vmul.f32 %v7068_v37, %v7154_v24  ;;  %v2679_v28 = vand.u32 4294901760, %v2650_v35  ;;  %v2649_v11 = vmul.f32 %v7076_v41, %v7122_v56 }
 0x17c   :  { %235 = vmatmul.mubr.f32.vlgmr.msra.gmra.mrb[0].mxu1 %v234_v8  ;;  %394 = vmatmul.mubr.f32.gmra.mrb[4].mxu0 %v7156_v2  ;;  %v244_v14 = vsub.f32 %v7166_v55, %v8843_v9  ;;  %v7199_v15 = vsub.f32 %v155_v4, %v7184_v40  ;;  %v7204_v16 = vsub.f32 %v7118_v12, %v2685_v36  ;;  %v8849_v37 = vand.u32 4294901760, %v7142_v63 }
 0x17d   :  { %240 = vmatprep.mubr.f32.mxu1 %v8852_v19  ;;  %399 = vmatprep.mubr.f32.mxu0 %v8852_v19  ;;  %v255_v41 = vsub.f32 %v7177_v5, %v8842_v58  ;;  %v2670_v17 = vand.u32 4294901760, %v2647_v59  ;;  %v7212_v23 = vsub.f32 %v2650_v35, %v2679_v28  ;;  %v2676_v49 = vand.u32 4294901760, %v2649_v11 }
 0x17e   :  { %v245_v50 = vand.u32 4294901760, %v244_v14  ;;  %v8841_v20 = vand.u32 4294901760, %v7199_v15  ;;  %v2651_v57 = vmul.f32 %v7081_v43, %v7154_v24  ;;  %v2654_v46 = vmul.f32 %v7083_v44, %v7126_v60 }
 0x17f   :  { %v256_v21 = vand.u32 4294901760, %v255_v41  ;;  %v7219_v62 = vpack.c.bf16 %v2670_v17, %v2667_v27  ;;  %v7221_v38 = vsub.f32 %v2647_v59, %v2670_v17  ;;  %v7223_v39 = vpack.c.bf16 %v2676_v49, %v2673_v13 }
 0x180   :  { %246 = vmatmul.mubr.f32.gmra.mrb[2].mxu1 %v245_v50  ;;  %401 = vmatmul.mubr.f32.gmra.mrb[6].mxu0 %v7184_v40  ;;  %v266_v33 = vsub.f32 %v7199_v15, %v8841_v20  ;;  %v7229_v54 = vsub.f32 %v2649_v11, %v2676_v49  ;;  %v2682_v43 = vand.u32 4294901760, %v2651_v57  ;;  %v2691_v35 = vand.u32 4294901760, %v2654_v46 }
 0x181   :  { %251 = vmatprep.mubr.f32.mxu1 %v8852_v19  ;;  %487 = vmatprep.mubr.f32.mxu0 %v8852_v19  ;;  %v2653_v44 = vmul.f32 %v7089_v45, %v7122_v56  ;;  %v7238_v13 = vsub.f32 %v7120_v53, %v2697_v42  ;;  %v2655_v27 = vmul.f32 %v7094_v47, %v7154_v24  ;;  %v8848_v4 = vand.u32 4294901760, %v7179_v6 }
 0x182   :  { %v267_v8 = vand.u32 4294901760, %v266_v33  ;;  %v7243_v59 = vpack.c.bf16 %v2682_v43, %v2679_v28  ;;  %v7245_v11 = vsub.f32 %v2651_v57, %v2682_v43  ;;  %v7247_v14 = vsub.f32 %v2654_v46, %v2691_v35 }
 0x183   :  { %v2688_v41 = vand.u32 4294901760, %v2653_v44  ;;  %v2694_v17 = vand.u32 4294901760, %v2655_v27  ;;  %v2657_v45 = vmul.f32 %v7102_v51, %v7122_v56  ;;  %v2658_v49 = vmul.f32 %v7096_v48, %v7126_v60 }
 0x184   :  { %257 = vmatmul.mubr.f32.gmra.mrb[4].mxu1 %v256_v21  ;;  %490 = vmatmul.mubr.f32.vlgmr.msra.gmra.mrb[0].mxu0 %v7130_v34  ;;  %v2659_v47 = vmul.f32 %v7106_v61, %v7154_v24  ;;  %v2785_v28 = vsub.f32 %v7142_v63, %v8849_v37  ;;  %v2792_v50 = vsub.f32 %v7179_v6, %v8848_v4  ;;  %v8847_v57 = vand.u32 4294901760, %v7187_v10 }
 0x185   :  { %5805 = vmatpush1.bf16.msra.mxu0 %v7031_v22  ;;  %262 = vmatprep.mubr.f32.mxu1 %v8852_v19  ;;  %v7267_v48 = vpack.c.bf16 %v2688_v41, %v2685_v36  ;;  %v7269_v51 = vsub.f32 %v2653_v44, %v2688_v41  ;;  %v7271_v61 = vpack.c.bf16 %v2694_v17, %v2691_v35  ;;  %v2700_v56 = vand.u32 4294901760, %v2657_v45 }
 0x186   :  { %495 = vmatprep.mubr.f32.mxu0 %v8852_v19  ;;  %5807 = vmatprep.subr.bf16.mxu0 %v7040_v25  ;;  %v7275_v60 = vsub.f32 %v2655_v27, %v2694_v17  ;;  %v2703_v24 = vand.u32 4294901760, %v2658_v49  ;;  %v2706_v46 = vand.u32 4294901760, %v2659_v47  ;;  %v2786_v21 = vand.u32 4294901760, %v2785_v28 }
 0x187   :  { %8968 = vst [vmem:[#allocation12_spill] sm:$0xff] %v7267_v48  ;;  %8969 = vst [vmem:[#allocation13_spill] sm:$0xff] %v7271_v61  ;;  %v7279_v33 = vpack.c.bf16 %v2700_v56, %v2697_v42  ;;  %v7281_v12 = vsub.f32 %v2657_v45, %v2700_v56  ;;  %v2793_v36 = vand.u32 4294901760, %v2792_v50  ;;  %v2799_v43 = vsub.f32 %v7187_v10, %v8847_v57 }
 0x188   :  { %268 = vmatmul.mubr.f32.gmra.mrb[6].mxu1 %v267_v8  ;;  %498 = vmatmul.mubr.f32.gmra.mrb[2].mxu0 %v7166_v55  ;;  %v7287_v35 = vsub.f32 %v2658_v49, %v2703_v24  ;;  %v7289_v44 = vpack.c.bf16 %v2706_v46, %v2703_v24  ;;  %v7291_v27 = vsub.f32 %v2659_v47, %v2706_v46  ;;  %v8846_v53 = vand.u32 4294901760, %v7221_v38 }
 0x189   :  { %8970 = vst [vmem:[#allocation14_spill] sm:$0xff] %v7279_v33  ;;  %503 = vmatprep.mubr.f32.mxu0 %v8852_v19  ;;  %5809 = vmatpush1.bf16.msra.mxu0 %v7042_v26  ;;  %v7296_v42 = vpack.c.bf16 %v2793_v36, %v2786_v21  ;;  %v2800_v41 = vand.u32 4294901760, %v2799_v43  ;;  %v8845_v17 = vand.u32 4294901760, %v7159_v3  ;;  %v8844_v8 = vand.u32 4294901760, %v7229_v54 }
 0x18a   :  { %8971 = vst [vmem:[#allocation15_spill] sm:$0xff] %v7289_v44  ;;  %5811 = vmatprep.subr.bf16.mxu0 %v7050_v29  ;;  %v2806_v45 = vsub.f32 %v7221_v38, %v8846_v53  ;;  %v2826_v49 = vand.u32 4294901760, %v7212_v23  ;;  %v2833_v47 = vand.u32 4294901760, %v7245_v11  ;;  %v2840_v28 = vand.u32 4294901760, %v7204_v16 }
 0x18b   :  { %8972 = vst [vmem:[#allocation16_spill] sm:$0xff] %v7296_v42  ;;  %v2813_v50 = vsub.f32 %v7159_v3, %v8845_v17  ;;  %v2820_v56 = vsub.f32 %v7229_v54, %v8844_v8  ;;  %v2847_v29 = vand.u32 4294901760, %v7269_v51  ;;  %v2854_v24 = vand.u32 4294901760, %v7247_v14 }
 0x18c   :  { %506 = vmatmul.mubr.f32.gmra.mrb[4].mxu0 %v7177_v5  ;;  %v2807_v46 = vand.u32 4294901760, %v2806_v45  ;;  %v2827_v21 = vsub.f32 %v7212_v23, %v2826_v49  ;;  %v2834_v36 = vsub.f32 %v7245_v11, %v2833_v47  ;;  %v2841_v43 = vsub.f32 %v7204_v16, %v2840_v28 }
 0x18d   :  { %511 = vmatprep.mubr.f32.mxu0 %v8852_v19  ;;  %v2814_v20 = vand.u32 4294901760, %v2813_v50  ;;  %v2821_v58 = vand.u32 4294901760, %v2820_v56  ;;  %v2848_v9 = vsub.f32 %v7269_v51, %v2847_v29  ;;  %v2855_v8 = vsub.f32 %v7247_v14, %v2854_v24 }
 0x18e   :  { %v7322_v17 = vpack.c.bf16 %v2807_v46, %v2800_v41  ;;  %v2828_v53 = vand.u32 4294901760, %v2827_v21  ;;  %v2835_v57 = vand.u32 4294901760, %v2834_v36  ;;  %v2842_v4 = vand.u32 4294901760, %v2841_v43 }
 0x18f   :  { %v7324_v45 = vpack.c.bf16 %v2821_v58, %v2814_v20  ;;  %v2849_v37 = vand.u32 4294901760, %v2848_v9  ;;  %v2856_v1 = vand.u32 4294901760, %v2855_v8  ;;  %v2861_v42 = vand.u32 4294901760, %v7275_v60 }
 0x190   :  { %8973 = vst [vmem:[#allocation17_spill] sm:$0xff] %v7322_v17  ;;  %514 = vmatmul.mubr.f32.gmra.mrb[6].mxu0 %v7199_v15  ;;  %v7328_v19 = vpack.c.bf16 %v2835_v57, %v2828_v53  ;;  %v2868_v50 = vand.u32 4294901760, %v7238_v13  ;;  %v2875_v56 = vand.u32 4294901760, %v7281_v12  ;;  %v2882_v41 = vand.u32 4294901760, %v7287_v35 }
 0x191   :  { %8974 = vst [vmem:[#allocation18_spill] sm:$0xff] %v7324_v45  ;;  %v8976_v46 = vmov 0.0   ;;  %v7334_v21 = vpack.c.bf16 %v2849_v37, %v2842_v4  ;;  %v2862_v58 = vsub.f32 %v7275_v60, %v2861_v42  ;;  %v2889_v9 = vand.u32 4294901760, %v7291_v27 }
 0x192   :  { %8975 = vst [vmem:[#allocation19_spill] sm:$0xff] %v7328_v19  ;;  %592 = vmatprep.mubr.f32.mxu0 %v8976_v46  ;;  %v7340_v20 = vpack.c.bf16 %v7179_v6, %v7142_v63  ;;  %v2869_v57 = vsub.f32 %v7238_v13, %v2868_v50  ;;  %v2876_v53 = vsub.f32 %v7281_v12, %v2875_v56 }
 0x193   :  { %8977 = vst [vmem:[#allocation20_spill] sm:$0xff] %v7334_v21  ;;  %v2883_v8 = vsub.f32 %v7287_v35, %v2882_v41  ;;  %v7347_v36 = vpack.c.bf16 %v7221_v38, %v7187_v10  ;;  %v2863_v37 = vand.u32 4294901760, %v2862_v58  ;;  %v2890_v4 = vsub.f32 %v7291_v27, %v2889_v9 }
 0x194   :  { %8978 = vst [vmem:[#allocation21_spill] sm:$0xff] %v7340_v20  ;;  %v7352_v43 = vpack.c.bf16 %v7229_v54, %v7159_v3  ;;  %v7356_v20 = vpack.c.bf16 %v7245_v11, %v7212_v23  ;;  %v8982_v21 = vand.u32 4294901760, %v7130_v34  ;;  %v2870_v19 = vand.u32 4294901760, %v2869_v57 }
 0x195   :  { %8979 = vst [vmem:[#allocation22_spill] sm:$0xff] %v7347_v36  ;;  %v2877_v45 = vand.u32 4294901760, %v2876_v53  ;;  %v2884_v17 = vand.u32 4294901760, %v2883_v8  ;;  %v7362_v36 = vpack.c.bf16 %v7269_v51, %v7204_v16  ;;  %v7366_v58 = vpack.c.bf16 %v2863_v37, %v2856_v1 }
 0x196   :  { %8980 = vst [vmem:[#allocation23_spill] sm:$0xff] %v7352_v43  ;;  %8981 = vst [vmem:[#allocation24_spill] sm:$0xff] %v7356_v20  ;;  %596 = vmatmul.mubr.f32.vlgmr.msra.gmra.mrb[0].mxu0 %v8982_v21  ;;  %v2891_v43 = vand.u32 4294901760, %v2890_v4  ;;  %v7370_v23 = vpack.c.bf16 %v7275_v60, %v7247_v14  ;;  %v7374_v34 = vpack.c.bf16 %v7281_v12, %v7238_v13  ;;  %v8989_v1 = vand.u32 4294901760, %v7142_v63 }
 0x197   :  { %8983 = vst [vmem:[#allocation25_spill] sm:$0xff] %v7362_v36  ;;  %5813 = vmatpush1.bf16.msra.mxu0 %v7052_v30  ;;  %601 = vmatprep.mubr.f32.mxu0 %v8976_v46  ;;  %8984 = vst [vmem:[#allocation26_spill] sm:$0xff] %v7366_v58  ;;  %v7377_v11 = vpack.c.bf16 %v2877_v45, %v2870_v19  ;;  %v7381_v30 = vpack.c.bf16 %v7291_v27, %v7287_v35  ;;  %v8990_v16 = vand.u32 4294901760, %v7179_v6 }
 0x198   :  { %8985 = vst [vmem:[#allocation27_spill] sm:$0xff] %v7370_v23  ;;  %8986 = vst [vmem:[#allocation28_spill] sm:$0xff] %v7374_v34  ;;  %5815 = vmatprep.subr.bf16.mxu0 %v7054_v31  ;;  %v8992_v14 = vand.u32 4294901760, %v7187_v10  ;;  %v8993_v60 = vand.u32 4294901760, %v7221_v38  ;;  %v7395_v12 = vpack.c.bf16 %v2891_v43, %v2884_v17  ;;  %v8996_v19 = vand.u32 4294901760, %v7159_v3 }
 0x199   :  { %8987 = vst [vmem:[#allocation29_spill] sm:$0xff] %v7377_v11  ;;  %8988 = vst [vmem:[#allocation30_spill] sm:$0xff] %v7381_v30  ;;  %v7387_v51 = vpack.c.bf16 %v8990_v16, %v8989_v1  ;;  %v8997_v31 = vand.u32 4294901760, %v7229_v54  ;;  %v7403_v27 = vpack.c.bf16 %v2833_v47, %v2826_v49  ;;  %v7405_v63 = vpack.c.bf16 %v2847_v29, %v2840_v28  ;;  %v907_v47 = vpop.permute.xlu1 %906 }
 0x19a   :  { %v7393_v13 = vpack.c.bf16 %v8993_v60, %v8992_v14  ;;  %8995 = vst [vmem:[#allocation33_spill] sm:$0xff] %v7395_v12  ;;  %v9001_v6 = vand.u32 4294901760, %v7166_v55  ;;  %v7409_v10 = vpack.c.bf16 %v2861_v42, %v2854_v24  ;;  %v7411_v38 = vpack.c.bf16 %v2875_v56, %v2868_v50  ;;  %v905_v56 = vpop.permute.xlu0 %904 }
 0x19b   :  { %8991 = vst [vmem:[#allocation31_spill] sm:$0xff] %v7387_v51  ;;  %v7401_v35 = vpack.c.bf16 %v8997_v31, %v8996_v19  ;;  %8999 = vst [vmem:[#allocation35_spill] sm:$0xff] %v7403_v27  ;;  %v7413_v45 = vpack.c.bf16 %v2889_v9, %v2882_v41  ;;  %5817 = vmatpush1.bf16.msra.mxu0 %v7056_v32  ;;  %v9005_v3 = vand.u32 4294901760, %v7177_v5  ;;  %v9006_v55 = vand.u32 4294901760, %v7199_v15 }
 0x19c   :  { %8994 = vst [vmem:[#allocation32_spill] sm:$0xff] %v7393_v13  ;;  %9000 = vst [vmem:[#allocation36_spill] sm:$0xff] %v7405_v63  ;;  %605 = vmatmul.mubr.f32.gmra.mrb[2].mxu0 %v9001_v6  ;;  %5819 = vmatprep.subr.bf16.mxu0 %v7028_v18  ;;  %v135_v54 = vlaneseq }
 0x19d   :  { %8998 = vst [vmem:[#allocation34_spill] sm:$0xff] %v7401_v35  ;;  %9002 = vst [vmem:[#allocation37_spill] sm:$0xff] %v7409_v10  ;;  %610 = vmatprep.mubr.f32.mxu0 %v8976_v46  ;;  %v909_v29 = vpop.permute.xlu1 %908 }
 0x19e   :  { %9003 = vst [vmem:[#allocation38_spill] sm:$0xff] %v7411_v38  ;;  %9004 = vst [vmem:[#allocation39_spill] sm:$0xff] %v7413_v45  ;;  %v136_v42 = vshrl.u32 %v135_v54, 7  ;;  %v913_v60 = vpop.permute.xlu0 %912 }
 0x1a0   :  { %614 = vmatmul.mubr.f32.gmra.mrb[4].mxu0 %v9005_v3  ;;  %v137_v17 = vsub.s32 0, %v136_v42  ;;  %v141_v49 = vsub.s32 1, %v136_v42 }
 0x1a1   :  { %619 = vmatprep.mubr.f32.mxu0 %v8976_v46  ;;  %v911_v53 = vpop.permute.xlu1 %910 }
 0x1a4   :  { %623 = vmatmul.mubr.f32.gmra.mrb[6].mxu0 %v9006_v55 }
 0x1a5   :  { %717 = vmatprep.mubr.f32.mxu0 %v8976_v46 }
 0x1a8   :  { %719 = vmatmul.mubr.f32.vlgmr.msra.gmra.mrb[0].mxu0 %v7116_v52 }
 0x1a9   :  { %5821 = vmatpush1.bf16.msra.mxu0 %v7031_v22  ;;  %724 = vmatprep.mubr.f32.mxu0 %v8976_v46 }
 0x1aa   :  { %5823 = vmatprep.subr.bf16.mxu0 %v7040_v25 }
 0x1ac   :  { %726 = vmatmul.mubr.f32.gmra.mrb[2].mxu0 %v7144_v0 }
 0x1ad   :  { %731 = vmatprep.mubr.f32.mxu0 %v8976_v46  ;;  %5825 = vmatpush1.bf16.msra.mxu0 %v7042_v26 }
 0x1b0   :  { %733 = vmatmul.mubr.f32.gmra.mrb[4].mxu0 %v7156_v2 }
 0x1b1   :  { %738 = vmatprep.mubr.f32.mxu0 %v8976_v46 }
 0x1b4   :  { %740 = vmatmul.mubr.f32.gmra.mrb[6].mxu0 %v7184_v40 }
 0x1b5   :  { %818 = vmatprep.mubr.f32.mxu0 %v8976_v46 }
 0x1b8   :  { %820 = vmatmul.mubr.f32.vlgmr.msra.gmra.mrb[0].mxu0 %v7116_v52 }
 0x1b9   :  { %825 = vmatprep.mubr.f32.mxu0 %v8976_v46 }
 0x1bc   :  { %827 = vmatmul.mubr.f32.gmra.mrb[2].mxu0 %v7144_v0  ;;  %v133_v0 = vld [vmem:[#allocation5 + $0x40] ss:$8 sm:$0x3] }
 0x1bd   :  { %832 = vmatprep.mubr.f32.mxu0 %v8976_v46  ;;  %v138_v28 = vrot.slane %v133_v0, %v137_v17 }
 0x1c0   :  { %834 = vmatmul.mubr.f32.gmra.mrb[4].mxu0 %v7156_v2  ;;  %v142_v2 = vrot.slane %v133_v0, %v141_v49 }
 0x1c1   :  { %839 = vmatprep.mubr.f32.mxu0 %v8976_v46 }
 0x1c4   :  { %841 = vmatmul.mubr.f32.gmra.mrb[6].mxu0 %v7184_v40 }
 0x24f   :  { %v236_v18 = vpop.f32.mrb[0].mxu1 }
 0x250   :  { %v238_v22 = vpop.f32.mrb[1].mxu1  ;;  %v237_v24 = vadd.f32 %v236_v18, %v138_v28 }
 0x251   :  { %v239_v50 = vadd.f32 %v238_v22, %v142_v2  ;;  %v915_v22 = vpop.permute.xlu1 %914 }
 0x253   :  { %v247_v25 = vpop.f32.mrb[2].mxu1 }
 0x254   :  { %v249_v26 = vpop.f32.mrb[3].mxu1  ;;  %v248_v9 = vadd.f32 %v247_v25, %v138_v28 }
 0x255   :  { %v250_v57 = vadd.f32 %v249_v26, %v142_v2 }
 0x257   :  { %v258_v32 = vpop.f32.mrb[4].mxu1 }
 0x258   :  { %v260_v5 = vpop.f32.mrb[5].mxu1  ;;  %v259_v19 = vadd.f32 %v258_v32, %v138_v28 }
 0x259   :  { %v261_v31 = vadd.f32 %v260_v5, %v142_v2  ;;  %v917_v5 = vpop.permute.xlu0 %916 }
 0x25b   :  { %v269_v15 = vpop.f32.mrb[6].mxu1 }
 0x25c   :  { %v271_v52 = vpop.f32.mrb[7].mxu1  ;;  %v270_v54 = vadd.f32 %v269_v15, %v138_v28 }
 0x25d   :  { %v272_v42 = vadd.f32 %v271_v52, %v142_v2  ;;  %v921_v2 = vpop.permute.xlu0 %920 }
 0x28b   :  { %v821_v40 = vpop.f32.mrb[0].mxu0 }
 0x28c   :  { %v7442_v41 = vadd.f32 %v821_v40, %v237_v24  ;;  %v823_v46 = vpop.f32.mrb[1].mxu0 }
 0x28d   :  { %v6597_v21 = vadd.f32 %v823_v46, %v239_v50  ;;  %v919_v50 = vpop.permute.xlu1 %918 }
 0x28e   :  { %9007 = vst [vmem:[#allocation40_spill] sm:$0xff] %v7442_v41 }
 0x28f   :  { %v828_v8 = vpop.f32.mrb[2].mxu0  ;;  %v952_v37 = vmul.f32 %v6597_v21, %v905_v56  ;;  %v1017_v4 = vsel %vm62_vm0, %v6597_v21, 0  ;;  %v956_v28 = vmul.f32 %v6597_v21, %v913_v60 }
 0x290   :  { %v7445_v43 = vadd.f32 %v828_v8, %v248_v9  ;;  %v830_v1 = vpop.f32.mrb[3].mxu0  ;;  %v7447_v16 = vand.u32 4294901760, %v1017_v4  ;;  %v925_v9 = vpop.permute.xlu0 %924 }
 0x291   :  { %v7449_v14 = vadd.f32 %v830_v1, %v250_v57  ;;  %984 = vrot.lane.b32.xlu0 %v952_v37, %s6908_s23 }
 0x292   :  { %9008 = vst [vmem:[#allocation41_spill] sm:$0xff] %v7445_v43  ;;  %v7454_v55 = vsub.f32 %v1017_v4, %v7447_v16 }
 0x293   :  { %v835_v6 = vpop.f32.mrb[4].mxu0  ;;  %v953_v3 = vmul.f32 %v7449_v14, %v907_v47  ;;  %v957_v56 = vmul.f32 %v7449_v14, %v915_v22 }
 0x294   :  { %v837_v18 = vpop.f32.mrb[5].mxu0  ;;  %v7456_v25 = vadd.f32 %v835_v6, %v259_v19  ;;  %v8861_v32 = vand.u32 4294901760, %v7454_v55  ;;  %v929_v1 = vpop.permute.xlu0 %928 }
 0x295   :  { %v7458_v26 = vadd.f32 %v837_v18, %v261_v31  ;;  %986 = vrot.lane.b32.xlu1 %v953_v3, %s6908_s23  ;;  %v964_v19 = vmul.f32 %v6597_v21, %v929_v1 }
 0x296   :  { %9009 = vst [vmem:[#allocation42_spill] sm:$0xff] %v7456_v25  ;;  %v1144_v40 = vsub.f32 %v7454_v55, %v8861_v32 }
 0x297   :  { %v842_v17 = vpop.f32.mrb[6].mxu0  ;;  %v954_v24 = vmul.f32 %v7458_v26, %v909_v29  ;;  %v923_v29 = vpop.permute.xlu1 %922  ;;  %v958_v46 = vmul.f32 %v7458_v26, %v917_v5  ;;  %v962_v4 = vmul.f32 %v7458_v26, %v925_v9 }
 0x298   :  { %v7462_v0 = vadd.f32 %v842_v17, %v270_v54  ;;  %v844_v49 = vpop.f32.mrb[7].mxu0  ;;  %v1145_v52 = vand.u32 4294901760, %v1144_v40  ;;  %v961_v37 = vmul.f32 %v7449_v14, %v923_v29  ;;  %v933_v6 = vpop.permute.xlu0 %932 }
 0x299   :  { %v7464_v47 = vadd.f32 %v844_v49, %v272_v42  ;;  %988 = vrot.lane.b32.xlu0 %v954_v24, %s6908_s23  ;;  %v966_v18 = vmul.f32 %v7458_v26, %v933_v6 }
 0x29a   :  { %9010 = vst [vmem:[#allocation43_spill] sm:$0xff] %v7462_v0  ;;  %4898 = vmatprep.mubr.f32.mxu1 %v1145_v52 }
 0x29b   :  { %v955_v15 = vmul.f32 %v7464_v47, %v911_v53  ;;  %v959_v57 = vmul.f32 %v7464_v47, %v919_v50  ;;  %v960_v53 = vmul.f32 %v6597_v21, %v921_v2  ;;  %v927_v8 = vpop.permute.xlu1 %926 }
 0x29c   :  { %v963_v60 = vmul.f32 %v7464_v47, %v927_v8 }
 0x29d   :  { %990 = vrot.lane.b32.xlu1 %v955_v15, %s6908_s23  ;;  %992 = vrot.lane.b32.xlu0 %v956_v28, %s6908_s23 }
 0x29f   :  { %v931_v31 = vpop.permute.xlu1 %930 }
 0x2a0   :  { %v965_v3 = vmul.f32 %v7449_v14, %v931_v31 }
 0x2a1   :  { %994 = vrot.lane.b32.xlu1 %v957_v56, %s6908_s23  ;;  %996 = vrot.lane.b32.xlu0 %v958_v46, %s6908_s23 }
 0x2a3   :  { %v935_v22 = vpop.permute.xlu1 %934 }
 0x2a4   :  { %v967_v54 = vmul.f32 %v7464_v47, %v935_v22 }
 0x2a5   :  { %998 = vrot.lane.b32.xlu1 %v959_v57, %s6908_s23  ;;  %1000 = vrot.lane.b32.xlu0 %v960_v53, %s6908_s23 }
 0x2a9   :  { %1002 = vrot.lane.b32.xlu1 %v961_v37, %s6908_s23  ;;  %1004 = vrot.lane.b32.xlu0 %v962_v4, %s6908_s23 }
 0x2ad   :  { %1006 = vrot.lane.b32.xlu1 %v963_v60, %s6908_s23  ;;  %1008 = vrot.lane.b32.xlu0 %v964_v19, %s6908_s23 }
 0x2b1   :  { %1010 = vrot.lane.b32.xlu1 %v965_v3, %s6908_s23  ;;  %1012 = vrot.lane.b32.xlu0 %v966_v18, %s6908_s23 }
 0x2b5   :  { %1014 = vrot.lane.b32.xlu1 %v967_v54, %s6908_s23 }
 0x303   :  { %v985_v21 = vpop.permute.xlu0 %984 }
 0x304   :  { %v1028_v42 = vsel %vm62_vm0, %v985_v21, 0 }
 0x305   :  { %v1061_v17 = vand.u32 4294901760, %v1028_v42 }
 0x307   :  { %v987_v5 = vpop.permute.xlu1 %986  ;;  %v7496_v24 = vsub.f32 %v1028_v42, %v1061_v17 }
 0x308   :  { %v1030_v49 = vsel %vm62_vm0, %v987_v5, 0 }
 0x309   :  { %v1064_v50 = vand.u32 4294901760, %v1030_v49  ;;  %v8864_v52 = vand.u32 4294901760, %v7496_v24 }
 0x30b   :  { %v7498_v40 = vpack.c.bf16 %v1064_v50, %v1061_v17  ;;  %v7500_v15 = vsub.f32 %v1030_v49, %v1064_v50  ;;  %v989_v2 = vpop.permute.xlu0 %988 }
 0x30c   :  { %v1032_v29 = vsel %vm62_vm0, %v989_v2, 0 }
 0x30d   :  { %v8865_v28 = vand.u32 4294901760, %v7500_v15  ;;  %5827 = vmatprep.subr.bf16.mxu1 %v7498_v40  ;;  %v7507_v56 = vpack.c.bf16 %v7500_v15, %v7496_v24  ;;  %v1067_v46 = vand.u32 4294901760, %v1032_v29 }
 0x30e   :  { %5829 = vmatpush3.bf16.xpose.msra.mxu1 %v7498_v40 }
 0x30f   :  { %v7515_v9 = vpack.c.bf16 %v8865_v28, %v8864_v52  ;;  %v991_v57 = vpop.permute.xlu1 %990  ;;  %v7517_v53 = vsub.f32 %v1032_v29, %v1067_v46  ;;  %v993_v37 = vpop.permute.xlu0 %992 }
 0x310   :  { %v1034_v8 = vsel %vm62_vm0, %v991_v57, 0  ;;  %v1036_v1 = vsel %vm62_vm0, %v993_v37, 0 }
 0x311   :  { %v1070_v4 = vand.u32 4294901760, %v1034_v8  ;;  %v1073_v60 = vand.u32 4294901760, %v1036_v1  ;;  %v8862_v3 = vand.u32 4294901760, %v7517_v53  ;;  %v9014_v33 = vand.u32 4294901760, %v7517_v53 }
 0x313   :  { %v7521_v19 = vpack.c.bf16 %v1070_v4, %v1067_v46  ;;  %v7523_v31 = vsub.f32 %v1034_v8, %v1070_v4  ;;  %v995_v6 = vpop.permute.xlu1 %994  ;;  %v997_v22 = vpop.permute.xlu0 %996  ;;  %v7534_v5 = vsub.f32 %v1036_v1, %v1073_v60 }
 0x314   :  { %v1038_v18 = vsel %vm62_vm0, %v995_v6, 0  ;;  %v1040_v42 = vsel %vm62_vm0, %v997_v22, 0 }
 0x315   :  { %v8863_v54 = vand.u32 4294901760, %v7523_v31  ;;  %v1076_v21 = vand.u32 4294901760, %v1038_v18  ;;  %5831 = vmatprep.subr.bf16.mxu1 %v7521_v19  ;;  %v7532_v17 = vpack.c.bf16 %v7523_v31, %v7517_v53  ;;  %v1079_v49 = vand.u32 4294901760, %v1040_v42 }
 0x316   :  { %5833 = vmatpush3.bf16.xpose.msra.mxu1 %v7521_v19  ;;  %v9016_v48 = vand.u32 4294901760, %v7534_v5 }
 0x317   :  { %v7537_v50 = vpack.c.bf16 %v1076_v21, %v1073_v60  ;;  %v7539_v2 = vsub.f32 %v1038_v18, %v1076_v21  ;;  %v999_v29 = vpop.permute.xlu1 %998  ;;  %v7545_v46 = vpack.c.bf16 %v8863_v54, %v8862_v3  ;;  %v1001_v8 = vpop.permute.xlu0 %1000  ;;  %v8868_v60 = vand.u32 4294901760, %v7534_v5 }
 0x318   :  { %v1042_v57 = vsel %vm62_vm0, %v999_v29, 0  ;;  %v1044_v1 = vsel %vm62_vm0, %v1001_v8, 0  ;;  %v7552_v6 = vsub.f32 %v1040_v42, %v1079_v49 }
 0x319   :  { %v8869_v37 = vand.u32 4294901760, %v7539_v2  ;;  %v1082_v4 = vand.u32 4294901760, %v1042_v57  ;;  %5835 = vmatprep.subr.bf16.mxu1 %v7537_v50  ;;  %v1085_v18 = vand.u32 4294901760, %v1044_v1  ;;  %v7556_v22 = vpack.c.bf16 %v7539_v2, %v7534_v5 }
 0x31b   :  { %v7558_v21 = vsub.f32 %v1042_v57, %v1082_v4  ;;  %v1003_v29 = vpop.permute.xlu1 %1002  ;;  %v1005_v3 = vpop.permute.xlu0 %1004  ;;  %v7565_v8 = vpack.c.bf16 %v8869_v37, %v8868_v60  ;;  %v7567_v54 = vpack.c.bf16 %v1082_v4, %v1079_v49  ;;  %v8876_v57 = vand.u32 4294901760, %v7552_v6 }
 0x31c   :  { %v1046_v32 = vsel %vm62_vm0, %v1003_v29, 0  ;;  %v1048_v28 = vsel %vm62_vm0, %v1005_v3, 0  ;;  %v7572_v45 = vsub.f32 %v1044_v1, %v1085_v18 }
 0x31d   :  { %v8877_v42 = vand.u32 4294901760, %v7558_v21  ;;  %v1088_v52 = vand.u32 4294901760, %v1046_v32  ;;  %v1091_v38 = vand.u32 4294901760, %v1048_v28  ;;  %v7577_v29 = vpack.c.bf16 %v7558_v21, %v7552_v6 }
 0x31e   :  { %5837 = vmatpush3.bf16.xpose.msra.mxu1 %v7537_v50 }
 0x31f   :  { %v7579_v60 = vsub.f32 %v1046_v32, %v1088_v52  ;;  %v1007_v49 = vpop.permute.xlu1 %1006  ;;  %5839 = vmatprep.subr.bf16.mxu1 %v7567_v54  ;;  %v1009_v37 = vpop.permute.xlu0 %1008  ;;  %v7587_v3 = vpack.c.bf16 %v8877_v42, %v8876_v57  ;;  %v8883_v32 = vand.u32 4294901760, %v7572_v45  ;;  %v7592_v27 = vsub.f32 %v1048_v28, %v1091_v38 }
 0x320   :  { %v1050_v4 = vsel %vm62_vm0, %v1007_v49, 0  ;;  %v1052_v63 = vsel %vm62_vm0, %v1009_v37, 0  ;;  %v7607_v0 = vpack.c.bf16 %v1088_v52, %v1085_v18 }
 0x321   :  { %v8884_v1 = vand.u32 4294901760, %v7579_v60  ;;  %v1094_v10 = vand.u32 4294901760, %v1050_v4  ;;  %v1097_v35 = vand.u32 4294901760, %v1052_v63  ;;  %v7596_v49 = vpack.c.bf16 %v7579_v60, %v7572_v45 }
 0x323   :  { %v7598_v13 = vsub.f32 %v1050_v4, %v1094_v10  ;;  %v1011_v51 = vpop.permute.xlu1 %1010  ;;  %v1013_v42 = vpop.permute.xlu0 %1012  ;;  %v7605_v37 = vpack.c.bf16 %v8884_v1, %v8883_v32  ;;  %v8888_v4 = vand.u32 4294901760, %v7592_v27  ;;  %v7612_v41 = vsub.f32 %v1052_v63, %v1097_v35 }
 0x324   :  { %v1054_v57 = vsel %vm62_vm0, %v1011_v51, 0  ;;  %v1056_v43 = vsel %vm62_vm0, %v1013_v42, 0 }
 0x325   :  { %v8889_v28 = vand.u32 4294901760, %v7598_v13  ;;  %v1100_v25 = vand.u32 4294901760, %v1054_v57  ;;  %v1103_v30 = vand.u32 4294901760, %v1056_v43  ;;  %v7617_v51 = vpack.c.bf16 %v7598_v13, %v7592_v27 }
 0x326   :  { %5841 = vmatpush3.bf16.xpose.msra.mxu1 %v7567_v54  ;;  %v8891_v23 = vand.u32 4294901760, %v7612_v41 }
 0x327   :  { %v7619_v32 = vsub.f32 %v1054_v57, %v1100_v25  ;;  %v1015_v52 = vpop.permute.xlu1 %1014  ;;  %5843 = vmatprep.subr.bf16.mxu1 %v7607_v0  ;;  %v7627_v63 = vpack.c.bf16 %v8889_v28, %v8888_v4  ;;  %v7630_v1 = vsub.f32 %v1056_v43, %v1103_v30  ;;  %v7645_v4 = vpack.c.bf16 %v1094_v10, %v1091_v38 }
 0x328   :  { %v1058_v18 = vsel %vm62_vm0, %v1015_v52, 0  ;;  %v7661_v10 = vpack.c.bf16 %v1100_v25, %v1097_v35  ;;  %v1020_v38 = vsel %vm62_vm0, %v7449_v14, 0  ;;  %v9011_v35 = vand.u32 4294901760, %v7500_v15 }
 0x329   :  { %v8892_v42 = vand.u32 4294901760, %v7619_v32  ;;  %v1106_v34 = vand.u32 4294901760, %v1058_v18  ;;  %v7634_v57 = vpack.c.bf16 %v7619_v32, %v7612_v41  ;;  %v8894_v43 = vand.u32 4294901760, %v7630_v1 }
 0x32a   :  { %v1192_v25 = vsub.f32 %v7500_v15, %v9011_v35  ;;  %v9013_v35 = vand.u32 4294901760, %v7523_v31 }
 0x32b   :  { %v7637_v36 = vsub.f32 %v1058_v18, %v1106_v34  ;;  %v7643_v52 = vpack.c.bf16 %v8892_v42, %v8891_v23  ;;  %v1023_v23 = vsel %vm62_vm0, %v7458_v26, 0  ;;  %v7669_v42 = vand.u32 4294901760, %v1020_v38 }
 0x32c   :  { %v7671_v12 = vand.u32 4294901760, %v1023_v23  ;;  %v9012_v26 = vand.u32 4294901760, %v7496_v24  ;;  %v1193_v44 = vand.u32 4294901760, %v1192_v25 }
 0x32d   :  { %v8895_v28 = vand.u32 4294901760, %v7637_v36  ;;  %v7651_v20 = vpack.c.bf16 %v7637_v36, %v7630_v1  ;;  %v7682_v14 = vsub.f32 %v1020_v38, %v7669_v42 }
 0x32e   :  { %5845 = vmatpush3.bf16.xpose.msra.mxu1 %v7607_v0  ;;  %v1185_v11 = vsub.f32 %v7496_v24, %v9012_v26  ;;  %v1206_v24 = vsub.f32 %v7523_v31, %v9013_v35 }
 0x32f   :  { %5847 = vmatprep.subr.bf16.mxu1 %v7645_v4  ;;  %v7659_v18 = vpack.c.bf16 %v8895_v28, %v8894_v43  ;;  %v1026_v43 = vsel %vm62_vm0, %v7464_v47, 0  ;;  %v7678_v28 = vpack.c.bf16 %v1106_v34, %v1103_v30  ;;  %v7691_v47 = vsub.f32 %v1023_v23, %v7671_v12 }
 0x330   :  { %v7688_v58 = vand.u32 4294901760, %v1026_v43  ;;  %v1186_v15 = vand.u32 4294901760, %v1185_v11  ;;  %v8901_v34 = vand.u32 4294901760, %v7682_v14  ;;  %v1199_v23 = vsub.f32 %v7517_v53, %v9014_v33 }
 0x331   :  { %v8903_v38 = vand.u32 4294901760, %v7691_v47  ;;  %v1207_v61 = vand.u32 4294901760, %v1206_v24  ;;  %v9015_v33 = vand.u32 4294901760, %v7539_v2 }
 0x332   :  { %v7695_v30 = vsub.f32 %v1026_v43, %v7688_v58  ;;  %v5858_v26 = vpack.c.bf16 %v1193_v44, %v1186_v15  ;;  %v1154_v11 = vsub.f32 %v7682_v14, %v8901_v34  ;;  %v1200_v44 = vand.u32 4294901760, %v1199_v23 }
 0x333   :  { %v1164_v25 = vsub.f32 %v7691_v47, %v8903_v38  ;;  %v1220_v53 = vsub.f32 %v7539_v2, %v9015_v33  ;;  %v1213_v38 = vsub.f32 %v7534_v5, %v9016_v48  ;;  %v9019_v5 = vand.u32 4294901760, %v7579_v60 }
 0x334   :  { %v8904_v43 = vand.u32 4294901760, %v7695_v30  ;;  %v1155_v31 = vand.u32 4294901760, %v1154_v11  ;;  %v5862_v34 = vpack.c.bf16 %v1207_v61, %v1200_v44  ;;  %v9018_v61 = vand.u32 4294901760, %v7552_v6 }
 0x335   :  { %v1165_v35 = vand.u32 4294901760, %v1164_v25  ;;  %v1221_v23 = vand.u32 4294901760, %v1220_v53  ;;  %v1214_v11 = vand.u32 4294901760, %v1213_v38  ;;  %v9017_v25 = vand.u32 4294901760, %v7558_v21 }
 0x336   :  { %5849 = vmatpush3.bf16.xpose.msra.mxu1 %v7645_v4  ;;  %v1174_v15 = vsub.f32 %v7695_v30, %v8904_v43  ;;  %v1248_v44 = vsub.f32 %v7579_v60, %v9019_v5  ;;  %v9020_v38 = vand.u32 4294901760, %v7572_v45  ;;  %v9021_v33 = vand.u32 4294901760, %v7598_v13 }
 0x337   :  { %5851 = vmatprep.subr.bf16.mxu1 %v7661_v10  ;;  %v1234_v43 = vsub.f32 %v7558_v21, %v9017_v25  ;;  %v5866_v2 = vpack.c.bf16 %v1221_v23, %v1214_v11  ;;  %v9023_v11 = vand.u32 4294901760, %v7619_v32  ;;  %v9026_v5 = vand.u32 4294901760, %v7630_v1 }
 0x338   :  { %v1175_v24 = vand.u32 4294901760, %v1174_v15  ;;  %v1249_v21 = vand.u32 4294901760, %v1248_v44 }
 0x339   :  { %v1283_v44 = vsub.f32 %v7630_v1, %v9026_v5 }
 0x33e   :  { %5853 = vmatpush3.bf16.xpose.msra.mxu1 %v7661_v10 }
 0x33f   :  { %5855 = vmatprep.subr.bf16.mxu1 %v7678_v28 }
 0x346   :  { %5857 = vmatpush3.bf16.xpose.msra.mxu1 %v7678_v28 }
 0x347   :  { %5859 = vmatprep.subr.bf16.mxu1 %v5858_v26 }
 0x34d   :  { %4899 = vmatmul.mubr.f32.vlgmr.msra.gmra.mrb[8].mxu1 %v1155_v31  ;;  %v1235_v31 = vand.u32 4294901760, %v1234_v43  ;;  %v9022_v43 = vand.u32 4294901760, %v7592_v27 }
 0x34e   :  { %4901 = vmatprep.mubr.f32.mxu1 %v1165_v35  ;;  %5861 = vmatpush3.bf16.xpose.msra.mxu1 %v5858_v26  ;;  %v1227_v26 = vsub.f32 %v7552_v6, %v9018_v61  ;;  %v1241_v35 = vsub.f32 %v7572_v45, %v9020_v38  ;;  %v1262_v6 = vsub.f32 %v7598_v13, %v9021_v33 }
 0x34f   :  { %5863 = vmatprep.subr.bf16.mxu1 %v5862_v34  ;;  %v1276_v45 = vsub.f32 %v7619_v32, %v9023_v11  ;;  %v848_v11 = vld [vmem:[#allocation7 + $0x8] sm:$0xff] }
 0x350   :  { %v1228_v48 = vand.u32 4294901760, %v1227_v26  ;;  %v1263_v60 = vand.u32 4294901760, %v1262_v6 }
 0x351   :  { %4902 = vmatmul.mubr.f32.gmra.mrb[10].mxu1 %v1175_v24  ;;  %v1255_v24 = vsub.f32 %v7592_v27, %v9022_v43  ;;  %v1277_v13 = vand.u32 4294901760, %v1276_v45 }
 0x352   :  { %4936 = vmatprep.mubr.f32.mxu1 %v7447_v16  ;;  %v5870_v15 = vpack.c.bf16 %v1235_v31, %v1228_v48  ;;  %v9025_v31 = vand.u32 4294901760, %v7637_v36 }
 0x353   :  { %v1256_v23 = vand.u32 4294901760, %v1255_v24 }
 0x354   :  { %v1290_v27 = vsub.f32 %v7637_v36, %v9025_v31  ;;  %v9027_v36 = vand.u32 4294901760, %v7454_v55 }
 0x355   :  { %v5878_v25 = vpack.c.bf16 %v1263_v60, %v1256_v23 }
 0x356   :  { %5865 = vmatpush3.bf16.xpose.msra.mxu1 %v5862_v34  ;;  %v1242_v34 = vand.u32 4294901760, %v1241_v35  ;;  %v1291_v32 = vand.u32 4294901760, %v1290_v27 }
 0x357   :  { %5867 = vmatprep.subr.bf16.mxu1 %v5866_v2 }
 0x358   :  { %v5874_v53 = vpack.c.bf16 %v1249_v21, %v1242_v34 }
 0x35e   :  { %5869 = vmatpush3.bf16.xpose.msra.mxu1 %v5866_v2  ;;  %v9024_v2 = vand.u32 4294901760, %v7612_v41 }
 0x35f   :  { %5871 = vmatprep.subr.bf16.mxu1 %v5870_v15 }
 0x360   :  { %v1269_v61 = vsub.f32 %v7612_v41, %v9024_v2  ;;  %v9029_v41 = vand.u32 4294901760, %v7691_v47  ;;  %v847_v2 = vld [vmem:[#allocation7] sm:$0xff] }
 0x362   :  { %v1270_v26 = vand.u32 4294901760, %v1269_v61 }
 0x364   :  { %v5882_v48 = vpack.c.bf16 %v1277_v13, %v1270_v26 }
 0x366   :  { %5873 = vmatpush3.bf16.xpose.msra.mxu1 %v5870_v15  ;;  %v1284_v15 = vand.u32 4294901760, %v1283_v44 }
 0x367   :  { %5875 = vmatprep.subr.bf16.mxu1 %v5874_v53 }
 0x368   :  { %v5886_v38 = vpack.c.bf16 %v1291_v32, %v1284_v15  ;;  %v850_v15 = vld [vmem:[#allocation7 + $0x18] sm:$0xff] }
 0x36e   :  { %5877 = vmatpush3.bf16.xpose.msra.mxu1 %v5874_v53 }
 0x36f   :  { %5879 = vmatprep.subr.bf16.mxu1 %v5878_v25 }
 0x376   :  { %5881 = vmatpush3.bf16.xpose.msra.mxu1 %v5878_v25 }
 0x377   :  { %5883 = vmatprep.subr.bf16.mxu1 %v5882_v48 }
 0x37e   :  { %5885 = vmatpush3.bf16.xpose.msra.mxu1 %v5882_v48  ;;  %v849_v48 = vld [vmem:[#allocation7 + $0x10] sm:$0xff] }
 0x37f   :  { %5887 = vmatprep.subr.bf16.mxu1 %v5886_v38 }
 0x386   :  { %5889 = vmatpush3.bf16.xpose.msra.mxu1 %v5886_v38 }
 0x387   :  { %5891 = vmatprep.subr.bf16.mxu1 %v7507_v56 }
 0x38d   :  { %4937 = vmatmul.mubr.f32.vlgmr.msra.gmra.mrb[8].mxu1 %v7669_v42 }
 0x38e   :  { %4939 = vmatprep.mubr.f32.mxu1 %v7671_v12  ;;  %5893 = vmatpush3.bf16.xpose.msra.mxu1 %v7507_v56 }
 0x38f   :  { %5895 = vmatprep.subr.bf16.mxu1 %v7532_v17 }
 0x391   :  { %4940 = vmatmul.mubr.f32.gmra.mrb[10].mxu1 %v7688_v58 }
 0x392   :  { %4974 = vmatprep.mubr.f32.mxu1 %v7454_v55  ;;  %v9030_v55 = vand.u32 4294901760, %v7695_v30 }
 0x396   :  { %5897 = vmatpush3.bf16.xpose.msra.mxu1 %v7532_v17  ;;  %v859_v17 = vld [vmem:[#allocation7 + $0x60] sm:$0xff] }
 0x397   :  { %5899 = vmatprep.subr.bf16.mxu1 %v7556_v22 }
 0x39e   :  { %5901 = vmatpush3.bf16.xpose.msra.mxu1 %v7556_v22  ;;  %v1871_v22 = vand.u32 4294901760, %v859_v17 }
 0x39f   :  { %5903 = vmatprep.subr.bf16.mxu1 %v7577_v29 }
 0x3a6   :  { %5905 = vmatpush3.bf16.xpose.msra.mxu1 %v7577_v29 }
 0x3a7   :  { %5907 = vmatprep.subr.bf16.mxu1 %v7596_v49 }
 0x3ae   :  { %5909 = vmatpush3.bf16.xpose.msra.mxu1 %v7596_v49  ;;  %v862_v49 = vld [vmem:[#allocation7 + $0x78] sm:$0xff] }
 0x3af   :  { %5911 = vmatprep.subr.bf16.mxu1 %v7617_v51 }
 0x3b6   :  { %5913 = vmatpush3.bf16.xpose.msra.mxu1 %v7617_v51 }
 0x3b7   :  { %5915 = vmatprep.subr.bf16.mxu1 %v7634_v57 }
 0x3be   :  { %5917 = vmatpush3.bf16.xpose.msra.mxu1 %v7634_v57 }
 0x3bf   :  { %5919 = vmatprep.subr.bf16.mxu1 %v7651_v20 }
 0x3c6   :  { %5921 = vmatpush3.bf16.xpose.msra.mxu1 %v7651_v20  ;;  %v9028_v20 = vand.u32 4294901760, %v7682_v14 }
 0x3c7   :  { %5923 = vmatprep.subr.bf16.mxu1 %v7498_v40 }
 0x3cd   :  { %4975 = vmatmul.mubr.f32.vlgmr.msra.gmra.mrb[8].mxu1 %v7682_v14 }
 0x3ce   :  { %4977 = vmatprep.mubr.f32.mxu1 %v7691_v47  ;;  %5925 = vmatpush3.bf16.xpose.msra.mxu1 %v7498_v40 }
 0x3cf   :  { %5927 = vmatprep.subr.bf16.mxu1 %v7521_v19 }
 0x3d1   :  { %4978 = vmatmul.mubr.f32.gmra.mrb[10].mxu1 %v7695_v30 }
 0x3d2   :  { %5012 = vmatprep.mubr.f32.mxu1 %v9027_v36  ;;  %v6785_v36 = vld [vmem:[#allocation7 + $0xc8] sm:$0xff] }
 0x3d6   :  { %5929 = vmatpush3.bf16.xpose.msra.mxu1 %v7521_v19 }
 0x3d7   :  { %5931 = vmatprep.subr.bf16.mxu1 %v7537_v50 }
 0x3de   :  { %5933 = vmatpush3.bf16.xpose.msra.mxu1 %v7537_v50 }
 0x3df   :  { %5935 = vmatprep.subr.bf16.mxu1 %v7567_v54 }
 0x3e6   :  { %5937 = vmatpush3.bf16.xpose.msra.mxu1 %v7567_v54 }
 0x3e7   :  { %5939 = vmatprep.subr.bf16.mxu1 %v7607_v0 }
 0x3ee   :  { %5941 = vmatpush3.bf16.xpose.msra.mxu1 %v7607_v0 }
 0x3ef   :  { %5943 = vmatprep.subr.bf16.mxu1 %v7645_v4 }
 0x3f6   :  { %5945 = vmatpush3.bf16.xpose.msra.mxu1 %v7645_v4 }
 0x3f7   :  { %5947 = vmatprep.subr.bf16.mxu1 %v7661_v10 }
 0x3fe   :  { %5949 = vmatpush3.bf16.xpose.msra.mxu1 %v7661_v10 }
 0x3ff   :  { %5951 = vmatprep.subr.bf16.mxu1 %v7678_v28 }
 0x406   :  { %5953 = vmatpush3.bf16.xpose.msra.mxu1 %v7678_v28 }
 0x407   :  { %5955 = vmatprep.subr.bf16.mxu1 %v7515_v9 }
 0x40d   :  { %5013 = vmatmul.mubr.f32.vlgmr.msra.gmra.mrb[8].mxu1 %v9028_v20  ;;  %v863_v20 = vld [vmem:[#allocation7 + $0x80] sm:$0xff] }
 0x40e   :  { %5015 = vmatprep.mubr.f32.mxu1 %v9029_v41  ;;  %5957 = vmatpush3.bf16.xpose.msra.mxu1 %v7515_v9  ;;  %v864_v41 = vld [vmem:[#allocation7 + $0x88] sm:$0xff] }
 0x40f   :  { %5959 = vmatprep.subr.bf16.mxu1 %v7545_v46 }
 0x411   :  { %5016 = vmatmul.mubr.f32.gmra.mrb[10].mxu1 %v9030_v55  ;;  %v1883_v55 = vand.u32 4294901760, %v863_v20 }
 0x412   :  { %5050 = vmatprep.mubr.f32.mxu1 %v7447_v16 }
 0x416   :  { %5961 = vmatpush3.bf16.xpose.msra.mxu1 %v7545_v46 }
 0x417   :  { %5963 = vmatprep.subr.bf16.mxu1 %v7565_v8 }
 0x41e   :  { %5965 = vmatpush3.bf16.xpose.msra.mxu1 %v7565_v8 }
 0x41f   :  { %5967 = vmatprep.subr.bf16.mxu1 %v7587_v3 }
 0x426   :  { %5969 = vmatpush3.bf16.xpose.msra.mxu1 %v7587_v3 }
 0x427   :  { %5971 = vmatprep.subr.bf16.mxu1 %v7605_v37 }
 0x42e   :  { %5973 = vmatpush3.bf16.xpose.msra.mxu1 %v7605_v37 }
 0x42f   :  { %5975 = vmatprep.subr.bf16.mxu1 %v7627_v63 }
 0x436   :  { %5977 = vmatpush3.bf16.xpose.msra.mxu1 %v7627_v63 }
 0x437   :  { %5979 = vmatprep.subr.bf16.mxu1 %v7643_v52 }
 0x43e   :  { %5981 = vmatpush3.bf16.xpose.msra.mxu1 %v7643_v52 }
 0x43f   :  { %5983 = vmatprep.subr.bf16.mxu1 %v7659_v18 }
 0x446   :  { %5985 = vmatpush3.bf16.xpose.msra.mxu1 %v7659_v18 }
 0x447   :  { %5987 = vmatprep.subr.bf16.mxu1 %v7498_v40 }
 0x44d   :  { %5051 = vmatmul.mubr.f32.vlgmr.msra.gmra.mrb[8].mxu1 %v7669_v42 }
 0x44e   :  { %5053 = vmatprep.mubr.f32.mxu1 %v7671_v12  ;;  %5989 = vmatpush3.bf16.xpose.msra.mxu1 %v7498_v40  ;;  %v857_v40 = vld [vmem:[#allocation7 + $0x50] sm:$0xff] }
 0x44f   :  { %5991 = vmatprep.subr.bf16.mxu1 %v7521_v19 }
 0x451   :  { %5054 = vmatmul.mubr.f32.gmra.mrb[10].mxu1 %v7688_v58 }
 0x452   :  { %5088 = vmatprep.mubr.f32.mxu1 %v7447_v16  ;;  %v855_v16 = vld [vmem:[#allocation7 + $0x40] sm:$0xff] }
 0x453   :  { %v1859_v56 = vand.u32 4294901760, %v855_v16 }
 0x455   :  { %v7841_v3 = vsub.f32 %v855_v16, %v1859_v56  ;;  %v1886_v16 = vand.u32 4294901760, %v864_v41 }
 0x456   :  { %5993 = vmatpush3.bf16.xpose.msra.mxu1 %v7521_v19  ;;  %v858_v19 = vld [vmem:[#allocation7 + $0x58] sm:$0xff] }
 0x457   :  { %5995 = vmatprep.subr.bf16.mxu1 %v7537_v50  ;;  %v1868_v46 = vand.u32 4294901760, %v858_v19  ;;  %v1982_v51 = vand.u32 4294901760, %v7841_v3 }
 0x45e   :  { %5997 = vmatpush3.bf16.xpose.msra.mxu1 %v7537_v50  ;;  %v860_v50 = vld [vmem:[#allocation7 + $0x68] sm:$0xff] }
 0x45f   :  { %5999 = vmatprep.subr.bf16.mxu1 %v7567_v54  ;;  %v1874_v8 = vand.u32 4294901760, %v860_v50 }
 0x461   :  { %v7857_v57 = vsub.f32 %v860_v50, %v1874_v8  ;;  %v7865_v47 = vpack.c.bf16 %v1874_v8, %v1871_v22  ;;  %v6787_v8 = vld [vmem:[#allocation7 + $0xd8] sm:$0xff] }
 0x463   :  { %v2017_v35 = vand.u32 4294901760, %v7857_v57 }
 0x466   :  { %6001 = vmatpush3.bf16.xpose.msra.mxu1 %v7567_v54  ;;  %v1865_v54 = vand.u32 4294901760, %v857_v40 }
 0x467   :  { %6003 = vmatprep.subr.bf16.mxu1 %v7607_v0 }
 0x468   :  { %v7847_v37 = vpack.c.bf16 %v1868_v46, %v1865_v54 }
 0x46e   :  { %6005 = vmatpush3.bf16.xpose.msra.mxu1 %v7607_v0  ;;  %v856_v0 = vld [vmem:[#allocation7 + $0x48] sm:$0xff] }
 0x46f   :  { %6007 = vmatprep.subr.bf16.mxu1 %v7645_v4  ;;  %v1862_v9 = vand.u32 4294901760, %v856_v0 }
 0x471   :  { %v7839_v29 = vpack.c.bf16 %v1862_v9, %v1859_v56  ;;  %v7843_v1 = vsub.f32 %v856_v0, %v1862_v9  ;;  %v6786_v0 = vld [vmem:[#allocation7 + $0xd0] sm:$0xff]  ;;  %v7911_v56 = vsub.f32 %v863_v20, %v1883_v55  ;;  %v7913_v9 = vsub.f32 %v864_v41, %v1886_v16  ;;  %v6789_v41 = vld [vmem:[#allocation7 + $0xc0] sm:$0xff] }
 0x473   :  { %v1989_v63 = vand.u32 4294901760, %v7843_v1  ;;  %v2045_v50 = vand.u32 4294901760, %v7913_v9 }
 0x475   :  { %v6146_v14 = vpack.c.bf16 %v1989_v63, %v1982_v51 }
 0x476   :  { %6009 = vmatpush3.bf16.xpose.msra.mxu1 %v7645_v4  ;;  %v7851_v4 = vsub.f32 %v859_v17, %v1871_v22  ;;  %v2038_v17 = vand.u32 4294901760, %v7911_v56 }
 0x477   :  { %6011 = vmatprep.subr.bf16.mxu1 %v7661_v10  ;;  %6147 = vmatprep.subr.bf16.mxu0 %v6146_v14 }
 0x478   :  { %v2010_v30 = vand.u32 4294901760, %v7851_v4  ;;  %6149 = vmatpush3.bf16.msra.mxu0 %v6146_v14  ;;  %v867_v14 = vld [vmem:[#allocation7 + $0xa0] sm:$0xff] }
 0x47a   :  { %v6154_v6 = vpack.c.bf16 %v2017_v35, %v2010_v30 }
 0x47e   :  { %6013 = vmatpush3.bf16.xpose.msra.mxu1 %v7661_v10  ;;  %v1880_v10 = vand.u32 4294901760, %v862_v49 }
 0x47f   :  { %6015 = vmatprep.subr.bf16.mxu1 %v7678_v28 }
 0x480   :  { %v7876_v33 = vsub.f32 %v862_v49, %v1880_v10 }
 0x482   :  { %v2031_v24 = vand.u32 4294901760, %v7876_v33 }
 0x486   :  { %6017 = vmatpush3.bf16.xpose.msra.mxu1 %v7678_v28  ;;  %v7849_v28 = vsub.f32 %v858_v19, %v1868_v46  ;;  %v865_v19 = vld [vmem:[#allocation7 + $0x90] sm:$0xff] }
 0x487   :  { %6019 = vmatprep.subr.bf16.mxu1 %v7839_v29  ;;  %v1889_v46 = vand.u32 4294901760, %v865_v19 }
 0x488   :  { %v2003_v52 = vand.u32 4294901760, %v7849_v28 }
 0x48d   :  { %5089 = vmatmul.mubr.f32.vlgmr.msra.gmra.mrb[8].mxu1 %v7669_v42 }
 0x48e   :  { %5091 = vmatprep.mubr.f32.mxu1 %v7671_v12  ;;  %v7845_v12 = vsub.f32 %v857_v40, %v1865_v54  ;;  %6021 = vmatpush3.bf16.msra.mxu1 %v7839_v29  ;;  %v7909_v40 = vpack.c.bf16 %v1886_v16, %v1883_v55  ;;  %v866_v54 = vld [vmem:[#allocation7 + $0x98] sm:$0xff] }
 0x48f   :  { %6023 = vmatprep.subr.bf16.mxu1 %v7847_v37  ;;  %v1892_v22 = vand.u32 4294901760, %v866_v54 }
 0x490   :  { %v1996_v42 = vand.u32 4294901760, %v7845_v12 }
 0x491   :  { %5092 = vmatmul.mubr.f32.gmra.mrb[10].mxu1 %v7688_v58  ;;  %v861_v58 = vld [vmem:[#allocation7 + $0x70] sm:$0xff]  ;;  %v7924_v49 = vpack.c.bf16 %v1892_v22, %v1889_v46 }
 0x492   :  { %v1877_v18 = vand.u32 4294901760, %v861_v58  ;;  %v6150_v21 = vpack.c.bf16 %v2003_v52, %v1996_v42  ;;  %6025 = vmatpush3.bf16.msra.mxu1 %v7847_v37 }
 0x493   :  { %6027 = vmatprep.subr.bf16.mxu1 %v7865_v47 }
 0x494   :  { %v7874_v34 = vsub.f32 %v861_v58, %v1877_v18  ;;  %6151 = vmatprep.subr.bf16.mxu0 %v6150_v21  ;;  %v7883_v53 = vpack.c.bf16 %v1880_v10, %v1877_v18  ;;  %v6162_v58 = vpack.c.bf16 %v2045_v50, %v2038_v17  ;;  %v7926_v18 = vsub.f32 %v865_v19, %v1889_v46  ;;  %v6790_v46 = vld [vmem:[#allocation7 + $0xf8] sm:$0xff] }
 0x495   :  { %6153 = vmatpush3.bf16.msra.mxu0 %v6150_v21  ;;  %v7928_v10 = vsub.f32 %v866_v54, %v1892_v22  ;;  %v868_v21 = vld [vmem:[#allocation7 + $0xa8] sm:$0xff] }
 0x496   :  { %v2024_v43 = vand.u32 4294901760, %v7874_v34  ;;  %6029 = vmatpush3.bf16.msra.mxu1 %v7865_v47  ;;  %6155 = vmatprep.subr.bf16.mxu0 %v6154_v6 }
 0x497   :  { %6031 = vmatprep.subr.bf16.mxu1 %v7883_v53 }
 0x498   :  { %v6158_v60 = vpack.c.bf16 %v2031_v24, %v2024_v43 }
 0x499   :  { %6157 = vmatpush3.bf16.msra.mxu0 %v6154_v6  ;;  %v869_v6 = vld [vmem:[#allocation7 + $0xb0] sm:$0xff] }
 0x49a   :  { %6033 = vmatpush3.bf16.msra.mxu1 %v7883_v53  ;;  %6159 = vmatprep.subr.bf16.mxu0 %v6158_v60 }
 0x49b   :  { %6035 = vmatprep.subr.bf16.mxu1 %v7909_v40 }
 0x49d   :  { %6161 = vmatpush3.bf16.msra.mxu0 %v6158_v60  ;;  %v2052_v60 = vand.u32 4294901760, %v7926_v18 }
 0x49e   :  { %6037 = vmatpush3.bf16.msra.mxu1 %v7909_v40  ;;  %6163 = vmatprep.subr.bf16.mxu0 %v6162_v58 }
 0x49f   :  { %6039 = vmatprep.subr.bf16.mxu1 %v7924_v49 }
 0x4a1   :  { %6165 = vmatpush3.bf16.msra.mxu0 %v6162_v58  ;;  %v6792_v58 = vld [vmem:[#allocation7 + $0x108] sm:$0xff] }
 0x4a2   :  { %6041 = vmatpush3.bf16.msra.mxu1 %v7924_v49 }
 0x560   :  { %v5090_v23 = vpop.f32.mrb[8].mxu1 }
 0x561   :  { %v1831_v45 = vmul.f32 0.35355338, %v5090_v23  ;;  %v1808_v25 = vpop.f32.mrb[9].mxu1  ;;  %v2059_v23 = vand.u32 4294901760, %v7928_v10 }
 0x562   :  { %v1830_v61 = vmul.f32 0.35355338, %v1808_v25  ;;  %v870_v25 = vld [vmem:[#allocation7 + $0xb8] sm:$0xff] }
 0x563   :  { %v7895_v13 = vadd.f32 %v1831_v45, %v848_v11  ;;  %v1895_v11 = vand.u32 4294901760, %v867_v14  ;;  %v1898_v45 = vand.u32 4294901760, %v868_v21 }
 0x564   :  { %v5093_v26 = vpop.f32.mrb[10].mxu1  ;;  %v7897_v31 = vadd.f32 %v1830_v61, %v847_v2  ;;  %v1901_v2 = vand.u32 4294901760, %v869_v6  ;;  %v1904_v61 = vand.u32 4294901760, %v870_v25 }
 0x565   :  { %1840 = vmax.xlane.f32.xlu1 %v7895_v13  ;;  %v1820_v27 = vpop.f32.mrb[11].mxu1  ;;  %v1833_v44 = vmul.f32 0.35355338, %v5093_v26  ;;  %v6166_v26 = vpack.c.bf16 %v2059_v23, %v2052_v60 }
 0x566   :  { %v1832_v5 = vmul.f32 0.35355338, %v1820_v27  ;;  %1838 = vmax.xlane.f32.xlu0 %v7897_v31  ;;  %v7938_v27 = vpack.c.bf16 %v1898_v45, %v1895_v11  ;;  %v7949_v20 = vsub.f32 %v870_v25, %v1904_v61  ;;  %v6794_v25 = vld [vmem:[#allocation7 + $0x118] sm:$0xff] }
 0x567   :  { %v7904_v38 = vadd.f32 %v1833_v44, %v850_v15  ;;  %v6788_v44 = vld [vmem:[#allocation7 + $0xe8] sm:$0xff]  ;;  %v7945_v15 = vpack.c.bf16 %v1904_v61, %v1901_v2  ;;  %6167 = vmatprep.subr.bf16.mxu0 %v6166_v26 }
 0x568   :  { %v7901_v32 = vadd.f32 %v1832_v5, %v849_v48  ;;  %v7940_v48 = vsub.f32 %v867_v14, %v1895_v11  ;;  %v7942_v5 = vsub.f32 %v868_v21, %v1898_v45  ;;  %6043 = vmatprep.subr.bf16.mxu1 %v7938_v27  ;;  %6169 = vmatpush3.bf16.msra.mxu0 %v6166_v26  ;;  %v2087_v19 = vand.u32 4294901760, %v7949_v20  ;;  %v6793_v14 = vld [vmem:[#allocation7 + $0xf0] sm:$0xff] }
 0x569   :  { %6045 = vmatpush3.bf16.msra.mxu1 %v7938_v27  ;;  %v1983_v21 = vsub.f32 %v7841_v3, %v1982_v51  ;;  %v6796_v51 = vld [vmem:[#allocation7 + $0x128] sm:$0xff]  ;;  %v6797_v26 = vld [vmem:[#allocation7 + $0x110] sm:$0xff] }
 0x56a   :  { %1842 = vmax.xlane.f32.xlu0 %v7901_v32  ;;  %v2066_v55 = vand.u32 4294901760, %v7940_v48  ;;  %v2073_v16 = vand.u32 4294901760, %v7942_v5  ;;  %6047 = vmatprep.subr.bf16.mxu1 %v7945_v15 }
 0x56b   :  { %v1984_v11 = vand.u32 4294901760, %v1983_v21  ;;  %v2060_v21 = vsub.f32 %v7928_v10, %v2059_v23  ;;  %v8007_v23 = vpack.c.bf16 %v7913_v9, %v7911_v56 }
 0x56c   :  { %v6170_v54 = vpack.c.bf16 %v2073_v16, %v2066_v55 }
 0x56d   :  { %6049 = vmatpush3.bf16.msra.mxu1 %v7945_v15 }
 0x56e   :  { %1844 = vmax.xlane.f32.xlu0 %v7904_v38  ;;  %6171 = vmatprep.subr.bf16.mxu0 %v6170_v54 }
 0x56f   :  { %6173 = vmatpush3.bf16.msra.mxu0 %v6170_v54  ;;  %v2046_v54 = vsub.f32 %v7913_v9, %v2045_v50  ;;  %v2067_v50 = vsub.f32 %v7940_v48, %v2066_v55  ;;  %v8011_v55 = vpack.c.bf16 %v7928_v10, %v7926_v18 }
 0x576   :  { %3540 = vrot.lane.b32.xlu1 %v6785_v36, %s6908_s23  ;;  %v7947_v36 = vsub.f32 %v869_v6, %v1901_v2  ;;  %v1990_v6 = vsub.f32 %v7843_v1, %v1989_v63  ;;  %v6795_v2 = vld [vmem:[#allocation7 + $0x100] sm:$0xff]  ;;  %v6798_v63 = vld [vmem:[#allocation7 + $0x138] sm:$0xff] }
 0x578   :  { %v1991_v45 = vand.u32 4294901760, %v1990_v6  ;;  %v2061_v6 = vand.u32 4294901760, %v2060_v21  ;;  %v1997_v21 = vsub.f32 %v7845_v12, %v1996_v42 }
 0x57a   :  { %3542 = vrot.lane.b32.xlu1 %v6786_v0, %s6908_s23  ;;  %v2080_v0 = vand.u32 4294901760, %v7947_v36  ;;  %v7973_v61 = vpack.c.bf16 %v1991_v45, %v1984_v11  ;;  %v2074_v45 = vsub.f32 %v7942_v5, %v2073_v16  ;;  %v8015_v16 = vpack.c.bf16 %v7942_v5, %v7940_v48 }
 0x57c   :  { %v6174_v22 = vpack.c.bf16 %v2087_v19, %v2080_v0  ;;  %6051 = vmatprep.subr.bf16.mxu1 %v7973_v61 }
 0x57e   :  { %3544 = vrot.lane.b32.xlu1 %v6787_v8, %s6908_s23  ;;  %v6791_v8 = vld [vmem:[#allocation7 + $0xe0] sm:$0xff]  ;;  %6175 = vmatprep.subr.bf16.mxu0 %v6174_v22 }
 0x57f   :  { %6177 = vmatpush3.bf16.msra.mxu0 %v6174_v22 }
 0x580   :  { %6179 = vmatprep.subr.bf16.mxu0 %v7839_v29 }
 0x582   :  { %3548 = vrot.lane.b32.xlu1 %v6788_v44, %s6908_s23  ;;  %v6799_v44 = vld [vmem:[#allocation7 + $0x120] sm:$0xff] }
 0x584   :  { %3538 = vrot.lane.b32.xlu0 %v6789_v41, %s6908_s23  ;;  %v2039_v41 = vsub.f32 %v7911_v56, %v2038_v17 }
 0x586   :  { %3552 = vrot.lane.b32.xlu1 %v6790_v46, %s6908_s23  ;;  %v6800_v46 = vld [vmem:[#allocation7 + $0x130] sm:$0xff]  ;;  %v2040_v22 = vand.u32 4294901760, %v2039_v41 }
 0x588   :  { %3546 = vrot.lane.b32.xlu0 %v6791_v8, %s6908_s23  ;;  %v2047_v8 = vand.u32 4294901760, %v2046_v54 }
 0x58a   :  { %3556 = vrot.lane.b32.xlu1 %v6792_v58, %s6908_s23  ;;  %v7987_v58 = vpack.c.bf16 %v2047_v8, %v2040_v22 }
 0x58c   :  { %3550 = vrot.lane.b32.xlu0 %v6793_v14, %s6908_s23  ;;  %v2053_v14 = vsub.f32 %v7926_v18, %v2052_v60  ;;  %v2088_v60 = vsub.f32 %v7949_v20, %v2087_v19 }
 0x58e   :  { %3560 = vrot.lane.b32.xlu1 %v6794_v25, %s6908_s23  ;;  %v2054_v17 = vand.u32 4294901760, %v2053_v14  ;;  %v2068_v25 = vand.u32 4294901760, %v2067_v50 }
 0x590   :  { %3554 = vrot.lane.b32.xlu0 %v6795_v2, %s6908_s23  ;;  %v7995_v11 = vpack.c.bf16 %v2061_v6, %v2054_v17  ;;  %v2075_v2 = vand.u32 4294901760, %v2074_v45  ;;  %v1998_v45 = vand.u32 4294901760, %v1997_v21 }
 0x592   :  { %3564 = vrot.lane.b32.xlu1 %v6796_v51, %s6908_s23  ;;  %v7999_v51 = vpack.c.bf16 %v2075_v2, %v2068_v25 }
 0x594   :  { %3558 = vrot.lane.b32.xlu0 %v6797_v26, %s6908_s23  ;;  %v2081_v26 = vsub.f32 %v7947_v36, %v2080_v0 }
 0x596   :  { %3568 = vrot.lane.b32.xlu1 %v6798_v63, %s6908_s23  ;;  %v2082_v63 = vand.u32 4294901760, %v2081_v26  ;;  %v2011_v26 = vsub.f32 %v7851_v4, %v2010_v30 }
 0x598   :  { %3562 = vrot.lane.b32.xlu0 %v6799_v44, %s6908_s23  ;;  %v2089_v44 = vand.u32 4294901760, %v2088_v60 }
 0x59a   :  { %v8003_v41 = vpack.c.bf16 %v2089_v44, %v2082_v63  ;;  %v2018_v63 = vsub.f32 %v7857_v57, %v2017_v35 }
 0x59c   :  { %3566 = vrot.lane.b32.xlu0 %v6800_v46, %s6908_s23 }
 0x5f2   :  { %v1841_v54 = vpop.xlane.xlu1 %1840 }
 0x5f3   :  { %v1847_v0 = vsub.f32 %v7895_v13, %v1841_v54  ;;  %v1839_v19 = vpop.xlane.xlu0 %1838 }
 0x5f4   :  { %v1846_v46 = vsub.f32 %v7897_v31, %v1839_v19 }
 0x5f5   :  { %v1852_v22 = vmul.f32 1.442695, %v1847_v0 }
 0x5f6   :  { %v1850_v8 = vmul.f32 1.442695, %v1846_v46 }
 0x5f7   :  { %6753 = vpow2.f32 %v1852_v22  ;;  %v1843_v14 = vpop.xlane.xlu0 %1842  ;;  %v2012_v22 = vand.u32 4294901760, %v2011_v26 }
 0x5f8   :  { %6755 = vpow2.f32 %v1850_v8  ;;  %v1848_v56 = vsub.f32 %v7901_v32, %v1843_v14  ;;  %v2004_v32 = vsub.f32 %v7849_v28, %v2003_v52  ;;  %v2019_v14 = vand.u32 4294901760, %v2018_v63 }
 0x5fa   :  { %v1854_v9 = vmul.f32 1.442695, %v1848_v56  ;;  %v2005_v25 = vand.u32 4294901760, %v2004_v32  ;;  %v2025_v56 = vsub.f32 %v7874_v34, %v2024_v43 }
 0x5fb   :  { %v1845_v18 = vpop.xlane.xlu0 %1844 }
 0x5fc   :  { %6757 = vpow2.f32 %v1854_v9  ;;  %v1849_v10 = vsub.f32 %v7904_v38, %v1845_v18  ;;  %v6054_v0 = vpack.c.bf16 %v2005_v25, %v1998_v45  ;;  %v2032_v9 = vsub.f32 %v7876_v33, %v2031_v24 }
 0x5fd   :  { %v2026_v21 = vand.u32 4294901760, %v2025_v56 }
 0x5fe   :  { %v1856_v48 = vmul.f32 1.442695, %v1849_v10  ;;  %v2033_v32 = vand.u32 4294901760, %v2032_v9 }
 0x600   :  { %6759 = vpow2.f32 %v1856_v48  ;;  %v6058_v48 = vpack.c.bf16 %v2019_v14, %v2012_v22  ;;  %v6062_v25 = vpack.c.bf16 %v2033_v32, %v2026_v21 }
 0x601   :  { %v8021_v5 = vpop.eup %6753 }
 0x602   :  { %v8023_v13 = vpop.eup %6755  ;;  %v8026_v31 = vand.u32 4294901760, %v8021_v5 }
 0x603   :  { %v1939_v17 = vand.u32 4294901760, %v8023_v13 }
 0x604   :  { %v8037_v38 = vsub.f32 %v8021_v5, %v8026_v31 }
 0x605   :  { %5278 = vmatprep.mubr.f32.mxu0 %v1939_v17  ;;  %v8040_v6 = vsub.f32 %v8023_v13, %v1939_v17 }
 0x606   :  { %v8042_v50 = vpop.eup %6757  ;;  %5279 = vmatmul.mubr.f32.vlgmr.msra.gmra.mrb[8].mxu0 %v8026_v31  ;;  %v1951_v42 = vand.u32 4294901760, %v8037_v38 }
 0x607   :  { %6181 = vmatpush3.bf16.msra.mxu0 %v7839_v29  ;;  %v8048_v52 = vand.u32 4294901760, %v8042_v50  ;;  %v1941_v2 = vand.u32 4294901760, %v8040_v6 }
 0x608   :  { %6183 = vmatprep.subr.bf16.mxu0 %v7847_v37  ;;  %v1952_v60 = vsub.f32 %v8037_v38, %v1951_v42 }
 0x609   :  { %5281 = vmatprep.mubr.f32.mxu0 %v8048_v52  ;;  %v1942_v44 = vsub.f32 %v8040_v6, %v1941_v2  ;;  %v8067_v54 = vsub.f32 %v8042_v50, %v8048_v52 }
 0x60a   :  { %v8069_v30 = vpop.eup %6759  ;;  %v1953_v8 = vand.u32 4294901760, %v1952_v60  ;;  %v2630_v60 = vmul.f32 0.1, %v8042_v50 }
 0x60b   :  { %6185 = vmatpush3.bf16.msra.mxu0 %v7847_v37  ;;  %v1943_v19 = vand.u32 4294901760, %v1942_v44  ;;  %v8073_v46 = vand.u32 4294901760, %v8069_v30  ;;  %v1961_v35 = vand.u32 4294901760, %v8067_v54  ;;  %v854_v44 = vld [vmem:[#allocation7 + $0x38] sm:$0xff] }
 0x60c   :  { %6187 = vmatprep.subr.bf16.mxu0 %v7865_v47 }
 0x60d   :  { %5126 = vmatprep.mubr.f32.mxu1 %v1943_v19  ;;  %5282 = vmatmul.mubr.f32.gmra.mrb[10].mxu0 %v8073_v46  ;;  %v1962_v18 = vsub.f32 %v8067_v54, %v1961_v35  ;;  %v8089_v10 = vsub.f32 %v8069_v30, %v8073_v46  ;;  %v853_v19 = vld [vmem:[#allocation7 + $0x30] sm:$0xff] }
 0x60e   :  { %5127 = vmatmul.mubr.f32.vlgmr.msra.gmra.mrb[12].mxu1 %v1953_v8  ;;  %5316 = vmatprep.mubr.f32.mxu0 %v1939_v17 }
 0x60f   :  { %6053 = vmatpush3.bf16.msra.mxu1 %v7973_v61  ;;  %6189 = vmatpush3.bf16.msra.mxu0 %v7865_v47  ;;  %v1963_v43 = vand.u32 4294901760, %v1962_v18  ;;  %v1971_v24 = vand.u32 4294901760, %v8089_v10 }
 0x610   :  { %6055 = vmatprep.subr.bf16.mxu1 %v6054_v0  ;;  %6191 = vmatprep.subr.bf16.mxu0 %v7883_v53 }
 0x611   :  { %5129 = vmatprep.mubr.f32.mxu1 %v1963_v43  ;;  %v1972_v45 = vsub.f32 %v8089_v10, %v1971_v24 }
 0x613   :  { %6057 = vmatpush3.bf16.msra.mxu1 %v6054_v0  ;;  %6193 = vmatpush3.bf16.msra.mxu0 %v7883_v53  ;;  %v1973_v61 = vand.u32 4294901760, %v1972_v45 }
 0x614   :  { %6059 = vmatprep.subr.bf16.mxu1 %v6058_v48  ;;  %6195 = vmatprep.subr.bf16.mxu0 %v7909_v40 }
 0x615   :  { %5130 = vmatmul.mubr.f32.gmra.mrb[14].mxu1 %v1973_v61 }
 0x616   :  { %5164 = vmatprep.mubr.f32.mxu1 %v1939_v17 }
 0x617   :  { %6061 = vmatpush3.bf16.msra.mxu1 %v6058_v48  ;;  %6197 = vmatpush3.bf16.msra.mxu0 %v7909_v40 }
 0x618   :  { %6063 = vmatprep.subr.bf16.mxu1 %v6062_v25  ;;  %6199 = vmatprep.subr.bf16.mxu0 %v7924_v49 }
 0x61b   :  { %6065 = vmatpush3.bf16.msra.mxu1 %v6062_v25  ;;  %6201 = vmatpush3.bf16.msra.mxu0 %v7924_v49 }
 0x61c   :  { %6067 = vmatprep.subr.bf16.mxu1 %v7987_v58  ;;  %6203 = vmatprep.subr.bf16.mxu0 %v7938_v27 }
 0x61f   :  { %6069 = vmatpush3.bf16.msra.mxu1 %v7987_v58  ;;  %6205 = vmatpush3.bf16.msra.mxu0 %v7938_v27  ;;  %v6082_v58 = vpack.c.bf16 %v7843_v1, %v7841_v3  ;;  %v6090_v3 = vpack.c.bf16 %v7857_v57, %v7851_v4  ;;  %v6094_v1 = vpack.c.bf16 %v7876_v33, %v7874_v34  ;;  %v9033_v4 = vld [vmem:[#allocation14_spill] sm:$0xff]  ;;  %v9034_v57 = vld [vmem:[#allocation15_spill] sm:$0xff]  ;;  %v9035_v33 = vld [vmem:[#allocation16_spill] sm:$0xff] }
 0x620   :  { %6071 = vmatprep.subr.bf16.mxu1 %v7995_v11  ;;  %6207 = vmatprep.subr.bf16.mxu0 %v7945_v15  ;;  %v6110_v34 = vpack.c.bf16 %v7949_v20, %v7947_v36 }
 0x623   :  { %6073 = vmatpush3.bf16.msra.mxu1 %v7995_v11  ;;  %6209 = vmatpush3.bf16.msra.mxu0 %v7945_v15  ;;  %v6086_v11 = vpack.c.bf16 %v7849_v28, %v7845_v12  ;;  %v9031_v12 = vld [vmem:[#allocation12_spill] sm:$0xff]  ;;  %v9032_v28 = vld [vmem:[#allocation13_spill] sm:$0xff] }
 0x624   :  { %6211 = vmatprep.subr.bf16.mxu0 %v7181_v7  ;;  %6075 = vmatprep.subr.bf16.mxu1 %v7999_v51 }
 0x626   :  { %5317 = vmatmul.mubr.f32.vlgmr.msra.gmra.mrb[8].mxu0 %v8026_v31 }
 0x627   :  { %6077 = vmatpush3.bf16.msra.mxu1 %v7999_v51  ;;  %5319 = vmatprep.mubr.f32.mxu0 %v8048_v52 }
 0x628   :  { %6213 = vmatpush3.bf16.msra.mxu0 %v7181_v7  ;;  %6079 = vmatprep.subr.bf16.mxu1 %v8003_v41 }
 0x629   :  { %6215 = vmatprep.subr.bf16.mxu0 %v7219_v62 }
 0x62a   :  { %5320 = vmatmul.mubr.f32.gmra.mrb[10].mxu0 %v8073_v46 }
 0x62b   :  { %6081 = vmatpush3.bf16.msra.mxu1 %v8003_v41 }
 0x62c   :  { %6217 = vmatpush3.bf16.msra.mxu0 %v7219_v62  ;;  %6083 = vmatprep.subr.bf16.mxu1 %v6082_v58 }
 0x62d   :  { %6219 = vmatprep.subr.bf16.mxu0 %v7223_v39 }
 0x62e   :  { %5165 = vmatmul.mubr.f32.vlgmr.msra.gmra.mrb[12].mxu1 %v8026_v31  ;;  %v2628_v31 = vmul.f32 0.1, %v8023_v13 }
 0x62f   :  { %5167 = vmatprep.mubr.f32.mxu1 %v8048_v52  ;;  %6085 = vmatpush3.bf16.msra.mxu1 %v6082_v58 }
 0x630   :  { %6221 = vmatpush3.bf16.msra.mxu0 %v7223_v39  ;;  %6087 = vmatprep.subr.bf16.mxu1 %v6086_v11 }
 0x631   :  { %6223 = vmatprep.subr.bf16.mxu0 %v7243_v59 }
 0x632   :  { %5168 = vmatmul.mubr.f32.gmra.mrb[14].mxu1 %v8073_v46 }
 0x633   :  { %6089 = vmatpush3.bf16.msra.mxu1 %v6086_v11  ;;  %5202 = vmatprep.mubr.f32.mxu1 %v8040_v6  ;;  %v851_v6 = vld [vmem:[#allocation7 + $0x20] sm:$0xff]  ;;  %v9036_v11 = vld [vmem:[#allocation17_spill] sm:$0xff] }
 0x634   :  { %6225 = vmatpush3.bf16.msra.mxu0 %v7243_v59  ;;  %6091 = vmatprep.subr.bf16.mxu1 %v6090_v3 }
 0x635   :  { %6227 = vmatprep.subr.bf16.mxu0 %v9031_v12 }
 0x637   :  { %6093 = vmatpush3.bf16.msra.mxu1 %v6090_v3 }
 0x638   :  { %6229 = vmatpush3.bf16.msra.mxu0 %v9031_v12  ;;  %6095 = vmatprep.subr.bf16.mxu1 %v6094_v1 }
 0x639   :  { %6231 = vmatprep.subr.bf16.mxu0 %v9032_v28 }
 0x63b   :  { %6097 = vmatpush3.bf16.msra.mxu1 %v6094_v1  ;;  %v9037_v1 = vld [vmem:[#allocation18_spill] sm:$0xff] }
 0x63c   :  { %6233 = vmatpush3.bf16.msra.mxu0 %v9032_v28  ;;  %6099 = vmatprep.subr.bf16.mxu1 %v8007_v23 }
 0x63d   :  { %6235 = vmatprep.subr.bf16.mxu0 %v9033_v4 }
 0x63f   :  { %6101 = vmatpush3.bf16.msra.mxu1 %v8007_v23  ;;  %v2629_v23 = vmul.f32 0.1, %v8021_v5 }
 0x640   :  { %6237 = vmatpush3.bf16.msra.mxu0 %v9033_v4  ;;  %6103 = vmatprep.subr.bf16.mxu1 %v8011_v55 }
 0x641   :  { %6239 = vmatprep.subr.bf16.mxu0 %v9034_v57 }
 0x643   :  { %6105 = vmatpush3.bf16.msra.mxu1 %v8011_v55 }
 0x644   :  { %6241 = vmatpush3.bf16.msra.mxu0 %v9034_v57  ;;  %6107 = vmatprep.subr.bf16.mxu1 %v8015_v16 }
 0x645   :  { %6243 = vmatprep.subr.bf16.mxu0 %v9035_v33 }
 0x647   :  { %6109 = vmatpush3.bf16.msra.mxu1 %v8015_v16  ;;  %v852_v16 = vld [vmem:[#allocation7 + $0x28] sm:$0xff] }
 0x648   :  { %6111 = vmatprep.subr.bf16.mxu1 %v6110_v34 }
 0x64b   :  { %6113 = vmatpush3.bf16.msra.mxu1 %v6110_v34  ;;  %v9038_v34 = vld [vmem:[#allocation19_spill] sm:$0xff] }
 0x64c   :  { %6115 = vmatprep.subr.bf16.mxu1 %v7839_v29 }
 0x64e   :  { %5203 = vmatmul.mubr.f32.vlgmr.msra.gmra.mrb[12].mxu1 %v8037_v38 }
 0x64f   :  { %5205 = vmatprep.mubr.f32.mxu1 %v8067_v54  ;;  %6117 = vmatpush3.bf16.msra.mxu1 %v7839_v29 }
 0x650   :  { %6119 = vmatprep.subr.bf16.mxu1 %v7847_v37 }
 0x652   :  { %5206 = vmatmul.mubr.f32.gmra.mrb[14].mxu1 %v8089_v10 }
 0x653   :  { %6121 = vmatpush3.bf16.msra.mxu1 %v7847_v37  ;;  %5240 = vmatprep.mubr.f32.mxu1 %v1941_v2  ;;  %v2631_v2 = vmul.f32 0.1, %v8069_v30 }
 0x654   :  { %6123 = vmatprep.subr.bf16.mxu1 %v7865_v47 }
 0x657   :  { %6125 = vmatpush3.bf16.msra.mxu1 %v7865_v47 }
 0x658   :  { %6127 = vmatprep.subr.bf16.mxu1 %v7883_v53 }
 0x65b   :  { %6129 = vmatpush3.bf16.msra.mxu1 %v7883_v53 }
 0x65c   :  { %6131 = vmatprep.subr.bf16.mxu1 %v7909_v40 }
 0x65f   :  { %6133 = vmatpush3.bf16.msra.mxu1 %v7909_v40 }
 0x660   :  { %6135 = vmatprep.subr.bf16.mxu1 %v7924_v49 }
 0x663   :  { %6137 = vmatpush3.bf16.msra.mxu1 %v7924_v49 }
 0x664   :  { %6139 = vmatprep.subr.bf16.mxu1 %v7938_v27 }
 0x667   :  { %6141 = vmatpush3.bf16.msra.mxu1 %v7938_v27 }
 0x668   :  { %6143 = vmatprep.subr.bf16.mxu1 %v7945_v15 }
 0x66b   :  { %6145 = vmatpush3.bf16.msra.mxu1 %v7945_v15 }
 0x66e   :  { %5241 = vmatmul.mubr.f32.vlgmr.msra.gmra.mrb[12].mxu1 %v1951_v42 }
 0x66f   :  { %5243 = vmatprep.mubr.f32.mxu1 %v1961_v35 }
 0x672   :  { %5244 = vmatmul.mubr.f32.gmra.mrb[14].mxu1 %v1971_v24 }
 0x6f9   :  { %v5318_v29 = vpop.f32.mrb[8].mxu0 }
 0x6fa   :  { %v2606_v37 = vpop.f32.mrb[9].mxu0 }
 0x6fd   :  { %v5321_v47 = vpop.f32.mrb[10].mxu0 }
 0x6fe   :  { %v2618_v53 = vpop.f32.mrb[11].mxu0 }
 0x741   :  { %v5242_v40 = vpop.f32.mrb[12].mxu1 }
 0x742   :  { %v6610_v49 = vadd.f32 %v5318_v29, %v5242_v40  ;;  %v2358_v27 = vpop.f32.mrb[13].mxu1  ;;  %v9039_v29 = vld [vmem:[#allocation20_spill] sm:$0xff]  ;;  %v9043_v40 = vld [vmem:[#allocation21_spill] sm:$0xff] }
 0x743   :  { %v6611_v36 = vadd.f32 %v2606_v37, %v2358_v27  ;;  %v9041_v37 = vld [vmem:[#allocation29_spill] sm:$0xff]  ;;  %v9044_v27 = vld [vmem:[#allocation22_spill] sm:$0xff] }
 0x744   :  { %6761 = vrcp.f32 %v6610_v49 }
 0x745   :  { %6763 = vrcp.f32 %v6611_v36  ;;  %v5245_v15 = vpop.f32.mrb[14].mxu1  ;;  %v8250_v36 = vpop.permute.xlu0 %3538 }
 0x746   :  { %v6612_v20 = vadd.f32 %v5321_v47, %v5245_v15  ;;  %v2374_v51 = vpop.f32.mrb[15].mxu1  ;;  %v8236_v47 = vpop.permute.xlu1 %3540 }
 0x747   :  { %v6613_v41 = vadd.f32 %v2618_v53, %v2374_v51  ;;  %v9042_v53 = vld [vmem:[#allocation33_spill] sm:$0xff] }
 0x748   :  { %6765 = vrcp.f32 %v6612_v20  ;;  %v9045_v20 = vld [vmem:[#allocation23_spill] sm:$0xff] }
 0x749   :  { %6767 = vrcp.f32 %v6613_v41  ;;  %v8258_v41 = vpop.permute.xlu0 %3546 }
 0x74a   :  { %v8241_v49 = vpop.permute.xlu1 %3542 }
 0x74e   :  { %v6762_v55 = vpop.eup %6761  ;;  %v8252_v15 = vpop.permute.xlu1 %3544 }
 0x74f   :  { %v6764_v17 = vpop.eup %6763  ;;  %v2635_v38 = vmul.f32 %v6762_v55, %v2629_v23  ;;  %v9046_v23 = vld [vmem:[#allocation24_spill] sm:$0xff]  ;;  %v8923_v55 = vand.u32 4294901760, %v8236_v47 }
 0x750   :  { %v2633_v42 = vmul.f32 %v6764_v17, %v2628_v31  ;;  %v9047_v31 = vld [vmem:[#allocation25_spill] sm:$0xff] }
 0x751   :  { %v2641_v52 = vadd.f32 %v2635_v38, %v852_v16  ;;  %v8926_v16 = vand.u32 4294901760, %v8250_v36  ;;  %v8268_v17 = vsub.f32 %v8236_v47, %v8923_v55  ;;  %v8922_v38 = vand.u32 4294901760, %v8241_v49 }
 0x752   :  { %v6766_v26 = vpop.eup %6765  ;;  %v2640_v63 = vadd.f32 %v2633_v42, %v851_v6  ;;  %v8256_v51 = vpop.permute.xlu1 %3548  ;;  %v8921_v42 = vand.u32 4294901760, %v8252_v15 }
 0x753   :  { %v6768_v54 = vpop.eup %6767  ;;  %v8186_v0 = vand.u32 4294901760, %v2641_v52  ;;  %v2639_v5 = vmul.f32 %v6766_v26, %v2631_v2  ;;  %v8274_v6 = vsub.f32 %v8250_v36, %v8926_v16  ;;  %v8279_v2 = vpop.permute.xlu0 %3550  ;;  %v9048_v26 = vld [vmem:[#allocation27_spill] sm:$0xff] }
 0x754   :  { %v2637_v46 = vmul.f32 %v6768_v54, %v2630_v60  ;;  %v8188_v35 = vand.u32 4294901760, %v2640_v63  ;;  %v8908_v60 = vand.u32 4294901760, %v8268_v17  ;;  %v8293_v54 = vsub.f32 %v8252_v15, %v8921_v42 }
 0x755   :  { %v8191_v13 = vsub.f32 %v2641_v52, %v8186_v0  ;;  %v2643_v22 = vadd.f32 %v2639_v5, %v854_v44  ;;  %v8907_v44 = vand.u32 4294901760, %v8274_v6 }
 0x756   :  { %v8194_v8 = vsub.f32 %v2640_v63, %v8188_v35  ;;  %v2642_v30 = vadd.f32 %v2637_v46, %v853_v19  ;;  %v8277_v52 = vpop.permute.xlu1 %3552  ;;  %v8287_v63 = vsub.f32 %v8241_v49, %v8922_v38  ;;  %v8917_v19 = vand.u32 4294901760, %v8256_v51 }
 0x757   :  { %v8935_v50 = vand.u32 4294901760, %v8191_v13  ;;  %v8197_v14 = vand.u32 4294901760, %v2643_v22  ;;  %v8299_v5 = vpack.c.bf16 %v8908_v60, %v8907_v44  ;;  %v8918_v46 = vand.u32 4294901760, %v8258_v41 }
 0x758   :  { %v2743_v56 = vand.u32 4294901760, %v8194_v8  ;;  %v8200_v9 = vand.u32 4294901760, %v2642_v30 }
 0x759   :  { %v2754_v18 = vsub.f32 %v8191_v13, %v8935_v50  ;;  %v8206_v10 = vsub.f32 %v2643_v22, %v8197_v14  ;;  %9049 = vst [vmem:[#allocation12_spill] sm:$0xff] %v8299_v5  ;;  %v9070_v50 = vld [vmem:[#allocation41_spill] sm:$0xff]  ;;  %v9073_v5 = vld [vmem:[#allocation31_spill] sm:$0xff] }
 0x75a   :  { %v2744_v43 = vsub.f32 %v8194_v8, %v2743_v56  ;;  %v8212_v24 = vsub.f32 %v2642_v30, %v8200_v9  ;;  %v8304_v22 = vpop.permute.xlu1 %3556  ;;  %v8306_v30 = vpop.permute.xlu0 %3554 }
 0x75b   :  { %v8929_v48 = vand.u32 4294901760, %v8206_v10  ;;  %v2755_v45 = vand.u32 4294901760, %v2754_v18  ;;  %v9050_v18 = vld [vmem:[#allocation28_spill] sm:$0xff] }
 0x75c   :  { %v2745_v21 = vand.u32 4294901760, %v2744_v43  ;;  %v8934_v32 = vand.u32 4294901760, %v8212_v24  ;;  %v8906_v43 = vand.u32 4294901760, %v8287_v63 }
 0x75d   :  { %v2774_v61 = vsub.f32 %v8206_v10, %v8929_v48 }
 0x75e   :  { %5354 = vmatprep.mubr.f32.mxu0 %v2745_v21  ;;  %v2764_v25 = vsub.f32 %v8212_v24, %v8934_v32  ;;  %v8905_v21 = vand.u32 4294901760, %v8293_v54 }
 0x75f   :  { %5355 = vmatmul.mubr.f32.vlgmr.msra.gmra.mrb[12].mxu0 %v2755_v45  ;;  %v2775_v3 = vand.u32 4294901760, %v2774_v61  ;;  %v8321_v61 = vsub.f32 %v8256_v51, %v8917_v19 }
 0x760   :  { %6245 = vmatpush3.bf16.msra.mxu0 %v9035_v33  ;;  %v2765_v58 = vand.u32 4294901760, %v2764_v25  ;;  %v9040_v33 = vld [vmem:[#allocation26_spill] sm:$0xff]  ;;  %v8315_v45 = vpack.c.bf16 %v8905_v21, %v8906_v43  ;;  %v8326_v25 = vsub.f32 %v8258_v41, %v8918_v46 }
 0x761   :  { %6247 = vmatprep.subr.bf16.mxu0 %v9036_v11 }
 0x762   :  { %5357 = vmatprep.mubr.f32.mxu0 %v2765_v58  ;;  %9051 = vst [vmem:[#allocation13_spill] sm:$0xff] %v8315_v45  ;;  %v9052_v58 = vld [vmem:[#allocation30_spill] sm:$0xff] }
 0x763   :  { %5358 = vmatmul.mubr.f32.gmra.mrb[14].mxu0 %v2775_v3  ;;  %v8912_v3 = vand.u32 4294901760, %v8279_v2 }
 0x764   :  { %6249 = vmatpush3.bf16.msra.mxu0 %v9036_v11  ;;  %5392 = vmatprep.mubr.f32.mxu0 %v8188_v35  ;;  %v8911_v11 = vand.u32 4294901760, %v8277_v52 }
 0x765   :  { %6251 = vmatprep.subr.bf16.mxu0 %v9037_v1 }
 0x768   :  { %6253 = vmatpush3.bf16.msra.mxu0 %v9037_v1  ;;  %v9053_v1 = vld [vmem:[#allocation40_spill] sm:$0xff] }
 0x769   :  { %6255 = vmatprep.subr.bf16.mxu0 %v9038_v34 }
 0x76c   :  { %6257 = vmatpush3.bf16.msra.mxu0 %v9038_v34  ;;  %v8332_v34 = vmul.f32 0.70710677, %v9053_v1 }
 0x76d   :  { %6259 = vmatprep.subr.bf16.mxu0 %v9039_v29 }
 0x76e   :  { %vm3514_vm1 = vcmp.ge.f32.partialorder %v8332_v34, 0.0 }
 0x770   :  { %6261 = vmatpush3.bf16.msra.mxu0 %v9039_v29  ;;  %v8334_v29 = vpop.permute.xlu1 %3560 }
 0x771   :  { %6263 = vmatprep.subr.bf16.mxu0 %v9040_v33 }
 0x774   :  { %6265 = vmatpush3.bf16.msra.mxu0 %v9040_v33  ;;  %v8336_v33 = vpop.permute.xlu0 %3558  ;;  %v8368_v21 = vpop.permute.xlu1 %3564 }
 0x775   :  { %6267 = vmatprep.subr.bf16.mxu0 %v9041_v37  ;;  %v8927_v19 = vand.u32 4294901760, %v8368_v21 }
 0x778   :  { %6269 = vmatpush3.bf16.msra.mxu0 %v9041_v37  ;;  %v8910_v37 = vand.u32 4294901760, %v8321_v61  ;;  %v8370_v43 = vpop.permute.xlu0 %3562  ;;  %v8411_v46 = vpop.permute.xlu1 %3568 }
 0x779   :  { %6271 = vmatprep.subr.bf16.mxu0 %v9042_v53 }
 0x77c   :  { %6273 = vmatpush3.bf16.msra.mxu0 %v9042_v53  ;;  %v8909_v53 = vand.u32 4294901760, %v8326_v25 }
 0x77d   :  { %6275 = vmatprep.subr.bf16.mxu0 %v9043_v40 }
 0x77f   :  { %5393 = vmatmul.mubr.f32.vlgmr.msra.gmra.mrb[12].mxu0 %v8186_v0 }
 0x780   :  { %5395 = vmatprep.mubr.f32.mxu0 %v8200_v9  ;;  %6277 = vmatpush3.bf16.msra.mxu0 %v9043_v40  ;;  %v8345_v40 = vsub.f32 %v8277_v52, %v8911_v11 }
 0x781   :  { %6279 = vmatprep.subr.bf16.mxu0 %v9044_v27 }
 0x782   :  { %9054 = vst [vmem:[#allocation14_spill] sm:$0xff] %v8345_v40  ;;  %v8916_v44 = vand.u32 4294901760, %v8345_v40 }
 0x783   :  { %5396 = vmatmul.mubr.f32.gmra.mrb[14].mxu0 %v8197_v14 }
 0x784   :  { %6281 = vmatpush3.bf16.msra.mxu0 %v9044_v27  ;;  %5430 = vmatprep.mubr.f32.mxu0 %v8194_v8  ;;  %v8350_v27 = vsub.f32 %v8279_v2, %v8912_v3  ;;  %v8928_v8 = vand.u32 4294901760, %v8370_v43 }
 0x785   :  { %6283 = vmatprep.subr.bf16.mxu0 %v9045_v20 }
 0x786   :  { %9055 = vst [vmem:[#allocation15_spill] sm:$0xff] %v8350_v27  ;;  %v8915_v60 = vand.u32 4294901760, %v8350_v27  ;;  %v8433_v55 = vsub.f32 %v8370_v43, %v8928_v8  ;;  %v9077_v27 = vand.u32 4294901760, %v8206_v10 }
 0x788   :  { %6285 = vmatpush3.bf16.msra.mxu0 %v9045_v20  ;;  %v8913_v20 = vand.u32 4294901760, %v8304_v22  ;;  %v8391_v3 = vpack.c.bf16 %v8916_v44, %v8915_v60  ;;  %9064 = vst [vmem:[#allocation21_spill] sm:$0xff] %v8433_v55  ;;  %v8936_v8 = vand.u32 4294901760, %v8433_v55  ;;  %v9074_v55 = vand.u32 4294901760, %v8191_v13 }
 0x789   :  { %6287 = vmatprep.subr.bf16.mxu0 %v9046_v23 }
 0x78a   :  { %9059 = vst [vmem:[#allocation19_spill] sm:$0xff] %v8391_v3  ;;  %v9072_v3 = vld [vmem:[#allocation43_spill] sm:$0xff] }
 0x78c   :  { %6289 = vmatpush3.bf16.msra.mxu0 %v9046_v23  ;;  %v8914_v23 = vand.u32 4294901760, %v8306_v30 }
 0x78d   :  { %6291 = vmatprep.subr.bf16.mxu0 %v9047_v31 }
 0x790   :  { %6293 = vmatpush3.bf16.msra.mxu0 %v9047_v31  ;;  %v8355_v31 = vand.u32 2147483647, %v8332_v34 }
 0x791   :  { %6295 = vmatprep.subr.bf16.mxu0 %v9048_v26 }
 0x792   :  { %v3438_v11 = vmul.f32 0.3275911, %v8355_v31 }
 0x794   :  { %6297 = vmatpush3.bf16.msra.mxu0 %v9048_v26  ;;  %v8362_v26 = vpack.c.bf16 %v8910_v37, %v8909_v53  ;;  %v8378_v53 = vsub.f32 %v8304_v22, %v8913_v20  ;;  %v8383_v37 = vsub.f32 %v8306_v30, %v8914_v23 }
 0x795   :  { %6299 = vmatprep.subr.bf16.mxu0 %v9050_v18 }
 0x796   :  { %9056 = vst [vmem:[#allocation16_spill] sm:$0xff] %v8362_v26  ;;  %9057 = vst [vmem:[#allocation17_spill] sm:$0xff] %v8378_v53  ;;  %v8925_v60 = vand.u32 4294901760, %v8378_v53  ;;  %v8924_v44 = vand.u32 4294901760, %v8383_v37 }
 0x797   :  { %9058 = vst [vmem:[#allocation18_spill] sm:$0xff] %v8383_v37 }
 0x798   :  { %6301 = vmatpush3.bf16.msra.mxu0 %v9050_v18  ;;  %v8919_v18 = vand.u32 4294901760, %v8334_v29 }
 0x799   :  { %6303 = vmatprep.subr.bf16.mxu0 %v9052_v58 }
 0x79a   :  { %v8399_v20 = vsub.f32 %v8334_v29, %v8919_v18  ;;  %v8413_v18 = vpop.permute.xlu0 %3566 }
 0x79c   :  { %6305 = vmatpush3.bf16.msra.mxu0 %v9052_v58  ;;  %v8920_v58 = vand.u32 4294901760, %v8336_v33  ;;  %9060 = vst [vmem:[#allocation20_spill] sm:$0xff] %v8399_v20  ;;  %v8931_v42 = vand.u32 4294901760, %v8399_v20  ;;  %v9076_v20 = vld [vmem:[#allocation32_spill] sm:$0xff] }
 0x79d   :  { %6307 = vmatprep.subr.bf16.mxu0 %v7181_v7 }
 0x79e   :  { %v8404_v23 = vsub.f32 %v8336_v33, %v8920_v58  ;;  %v8419_v58 = vpack.c.bf16 %v8925_v60, %v8924_v44  ;;  %v8932_v44 = vand.u32 4294901760, %v8411_v46  ;;  %v8933_v60 = vand.u32 4294901760, %v8413_v18 }
 0x79f   :  { %5431 = vmatmul.mubr.f32.vlgmr.msra.gmra.mrb[12].mxu0 %v8191_v13 }
 0x7a0   :  { %5433 = vmatprep.mubr.f32.mxu0 %v8212_v24  ;;  %6309 = vmatpush3.bf16.msra.mxu0 %v7181_v7  ;;  %9061 = vst [vmem:[#allocation26_spill] sm:$0xff] %v8404_v23  ;;  %9062 = vst [vmem:[#allocation29_spill] sm:$0xff] %v8419_v58  ;;  %v8930_v38 = vand.u32 4294901760, %v8404_v23  ;;  %v8450_v48 = vsub.f32 %v8411_v46, %v8932_v44 }
 0x7a1   :  { %6311 = vmatprep.subr.bf16.mxu0 %v7219_v62 }
 0x7a2   :  { %v8441_v16 = vpack.c.bf16 %v8931_v42, %v8930_v38  ;;  %9066 = vst [vmem:[#allocation23_spill] sm:$0xff] %v8450_v48  ;;  %v8943_v42 = vand.u32 4294901760, %v8450_v48 }
 0x7a3   :  { %5434 = vmatmul.mubr.f32.gmra.mrb[14].mxu0 %v8206_v10 }
 0x7a4   :  { %6313 = vmatpush3.bf16.msra.mxu0 %v7219_v62  ;;  %5468 = vmatprep.mubr.f32.mxu0 %v2743_v56  ;;  %v3442_v56 = vadd.f32 1.0, %v3438_v11  ;;  %v8428_v11 = vsub.f32 %v8368_v21, %v8927_v19  ;;  %9065 = vst [vmem:[#allocation22_spill] sm:$0xff] %v8441_v16 }
 0x7a5   :  { %6315 = vmatprep.subr.bf16.mxu0 %v7223_v39 }
 0x7a6   :  { %9063 = vst [vmem:[#allocation33_spill] sm:$0xff] %v8428_v11  ;;  %6769 = vrcp.f32 %v3442_v56  ;;  %v8937_v19 = vand.u32 4294901760, %v8428_v11  ;;  %v8455_v56 = vsub.f32 %v8413_v18, %v8933_v60  ;;  %v9075_v11 = vand.u32 4294901760, %v8212_v24  ;;  %v9078_v24 = vld [vmem:[#allocation34_spill] sm:$0xff] }
 0x7a8   :  { %6317 = vmatpush3.bf16.msra.mxu0 %v7223_v39  ;;  %9067 = vst [vmem:[#allocation24_spill] sm:$0xff] %v8455_v56  ;;  %v8461_v38 = vpack.c.bf16 %v8937_v19, %v8936_v8  ;;  %v8942_v44 = vand.u32 4294901760, %v8455_v56  ;;  %v8475_v8 = vmul.f32 0.70710677, %v9070_v50  ;;  %v9071_v19 = vld [vmem:[#allocation42_spill] sm:$0xff] }
 0x7a9   :  { %6319 = vmatprep.subr.bf16.mxu0 %v7243_v59 }
 0x7aa   :  { %9068 = vst [vmem:[#allocation25_spill] sm:$0xff] %v8461_v38  ;;  %v8471_v60 = vpack.c.bf16 %v8943_v42, %v8942_v44  ;;  %v8479_v38 = vmul.f32 0.70710677, %v9071_v19  ;;  %v8483_v58 = vand.u32 2147483647, %v8475_v8  ;;  %vm3515_vm2 = vcmp.ge.f32.partialorder %v8475_v8, 0.0 }
 0x7ab   :  { %v8486_v44 = vmul.f32 0.70710677, %v9072_v3 }
 0x7ac   :  { %6321 = vmatpush3.bf16.msra.mxu0 %v7243_v59  ;;  %9069 = vst [vmem:[#allocation27_spill] sm:$0xff] %v8471_v60  ;;  %v8490_v42 = vand.u32 2147483647, %v8479_v38  ;;  %v3439_v26 = vmul.f32 0.3275911, %v8483_v58  ;;  %vm3516_vm3 = vcmp.ge.f32.partialorder %v8479_v38, 0.0 }
 0x7ad   :  { %6323 = vmatprep.subr.bf16.mxu0 %v9031_v12  ;;  %v8495_v45 = vand.u32 2147483647, %v8486_v44  ;;  %vm3517_vm4 = vcmp.ge.f32.partialorder %v8486_v44, 0.0  ;;  %v9092_v44 = vand.u32 4294901760, %v8306_v30 }
 0x7ae   :  { %v3440_v56 = vmul.f32 0.3275911, %v8490_v42 }
 0x7af   :  { %v3441_v23 = vmul.f32 0.3275911, %v8495_v45 }
 0x7b0   :  { %6325 = vmatpush3.bf16.msra.mxu0 %v9031_v12  ;;  %v6770_v32 = vpop.eup %6769  ;;  %v3444_v37 = vadd.f32 1.0, %v3440_v56 }
 0x7b1   :  { %6327 = vmatprep.subr.bf16.mxu0 %v9032_v28  ;;  %v3454_v16 = vmul.f32 1.0614054, %v6770_v32  ;;  %v3445_v13 = vadd.f32 1.0, %v3441_v23 }
 0x7b3   :  { %v3458_v60 = vadd.f32 -1.4531521, %v3454_v16  ;;  %v3443_v16 = vadd.f32 1.0, %v3439_v26 }
 0x7b4   :  { %6329 = vmatpush3.bf16.msra.mxu0 %v9032_v28 }
 0x7b5   :  { %6331 = vmatprep.subr.bf16.mxu0 %v9033_v4  ;;  %v3462_v48 = vmul.f32 %v6770_v32, %v3458_v60  ;;  %v3490_v60 = vsub.f32 0.0, %v8355_v31  ;;  %6771 = vrcp.f32 %v3443_v16 }
 0x7b6   :  { %6773 = vrcp.f32 %v3444_v37  ;;  %v9081_v37 = vld [vmem:[#allocation37_spill] sm:$0xff] }
 0x7b7   :  { %v3466_v53 = vadd.f32 1.4214138, %v3462_v48  ;;  %6775 = vrcp.f32 %v3445_v13  ;;  %v9079_v48 = vld [vmem:[#allocation35_spill] sm:$0xff] }
 0x7b8   :  { %6333 = vmatpush3.bf16.msra.mxu0 %v9033_v4 }
 0x7b9   :  { %6335 = vmatprep.subr.bf16.mxu0 %v9034_v57 }
 0x7bc   :  { %6337 = vmatpush3.bf16.msra.mxu0 %v9034_v57 }
 0x7bd   :  { %6339 = vmatprep.subr.bf16.mxu0 %v9073_v5 }
 0x7bf   :  { %5469 = vmatmul.mubr.f32.vlgmr.msra.gmra.mrb[12].mxu0 %v9074_v55  ;;  %v3470_v55 = vmul.f32 %v6770_v32, %v3466_v53  ;;  %v8517_v26 = vpop.eup %6771 }
 0x7c0   :  { %5471 = vmatprep.mubr.f32.mxu0 %v9075_v11  ;;  %6341 = vmatpush3.bf16.msra.mxu0 %v9073_v5  ;;  %v3494_v5 = vmul.f32 %v3490_v60, %v8355_v31  ;;  %v8519_v11 = vpop.eup %6773  ;;  %v3455_v53 = vmul.f32 1.0614054, %v8517_v26  ;;  %v9082_v60 = vld [vmem:[#allocation38_spill] sm:$0xff] }
 0x7c1   :  { %6343 = vmatprep.subr.bf16.mxu0 %v9076_v20  ;;  %v3474_v10 = vadd.f32 -0.28449672, %v3470_v55  ;;  %v8524_v31 = vpop.eup %6775  ;;  %v3456_v16 = vmul.f32 1.0614054, %v8519_v11 }
 0x7c2   :  { %v3459_v13 = vadd.f32 -1.4531521, %v3455_v53 }
 0x7c3   :  { %5472 = vmatmul.mubr.f32.gmra.mrb[14].mxu0 %v9077_v27  ;;  %v3498_v27 = vmul.f32 1.442695, %v3494_v5  ;;  %v3478_v23 = vmul.f32 %v6770_v32, %v3474_v10  ;;  %v3460_v5 = vadd.f32 -1.4531521, %v3456_v16 }
 0x7c4   :  { %6345 = vmatpush3.bf16.msra.mxu0 %v9076_v20  ;;  %5506 = vmatprep.mubr.f32.mxu0 %v8188_v35  ;;  %v9080_v20 = vld [vmem:[#allocation36_spill] sm:$0xff] }
 0x7c5   :  { %6347 = vmatprep.subr.bf16.mxu0 %v9078_v24  ;;  %6777 = vpow2.f32 %v3498_v27  ;;  %v3482_v56 = vadd.f32 0.2548296, %v3478_v23  ;;  %v3463_v27 = vmul.f32 %v8517_v26, %v3459_v13  ;;  %v3464_v40 = vmul.f32 %v8519_v11, %v3460_v5 }
 0x7c7   :  { %v3486_v55 = vmul.f32 %v6770_v32, %v3482_v56  ;;  %v3491_v56 = vsub.f32 0.0, %v8483_v58  ;;  %v3468_v16 = vadd.f32 1.4214138, %v3464_v40  ;;  %v3493_v40 = vsub.f32 0.0, %v8495_v45 }
 0x7c8   :  { %6349 = vmatpush3.bf16.msra.mxu0 %v9078_v24  ;;  %v3457_v24 = vmul.f32 1.0614054, %v8524_v31 }
 0x7c9   :  { %6351 = vmatprep.subr.bf16.mxu0 %v9079_v48  ;;  %v3495_v5 = vmul.f32 %v3491_v56, %v8483_v58 }
 0x7cc   :  { %6353 = vmatpush3.bf16.msra.mxu0 %v9079_v48  ;;  %v9083_v48 = vld [vmem:[#allocation39_spill] sm:$0xff] }
 0x7cd   :  { %6355 = vmatprep.subr.bf16.mxu0 %v9080_v20 }
 0x7cf   :  { %v6778_v10 = vpop.eup %6777 }
 0x7d0   :  { %6357 = vmatpush3.bf16.msra.mxu0 %v9080_v20  ;;  %v3461_v20 = vadd.f32 -1.4531521, %v3457_v24  ;;  %v3506_v23 = vmul.f32 %v6778_v10, %v3486_v55 }
 0x7d1   :  { %6359 = vmatprep.subr.bf16.mxu0 %v9081_v37 }
 0x7d2   :  { %v3465_v53 = vmul.f32 %v8524_v31, %v3461_v20  ;;  %v3510_v32 = vsub.f32 1.0, %v3506_v23  ;;  %v3500_v20 = vmul.f32 1.442695, %v3495_v5 }
 0x7d4   :  { %6361 = vmatpush3.bf16.msra.mxu0 %v9081_v37  ;;  %v3467_v37 = vadd.f32 1.4214138, %v3463_v27  ;;  %v3469_v24 = vadd.f32 1.4214138, %v3465_v53  ;;  %v3518_v55 = vsub.f32 0.0, %v3510_v32  ;;  %6779 = vpow2.f32 %v3500_v20 }
 0x7d5   :  { %6363 = vmatprep.subr.bf16.mxu0 %v9082_v60  ;;  %v9085_v20 = vand.u32 4294901760, %v8236_v47  ;;  %v9089_v47 = vand.u32 4294901760, %v8256_v51  ;;  %v9090_v51 = vand.u32 4294901760, %v8279_v2  ;;  %v9093_v2 = vand.u32 4294901760, %v8304_v22 }
 0x7d6   :  { %v3471_v13 = vmul.f32 %v8517_v26, %v3467_v37  ;;  %v3473_v27 = vmul.f32 %v8524_v31, %v3469_v24  ;;  %v3522_v58 = vsel %vm3514_vm1, %v3510_v32, %v3518_v55  ;;  %v3497_v37 = vmul.f32 %v3493_v40, %v8495_v45 }
 0x7d8   :  { %6365 = vmatpush3.bf16.msra.mxu0 %v9082_v60  ;;  %v3492_v60 = vsub.f32 0.0, %v8490_v42  ;;  %v3504_v56 = vmul.f32 1.442695, %v3497_v37 }
 0x7d9   :  { %6367 = vmatprep.subr.bf16.mxu0 %v9083_v48 }
 0x7da   :  { %v3496_v10 = vmul.f32 %v3492_v60, %v8490_v42  ;;  %v3477_v42 = vadd.f32 -0.28449672, %v3473_v27 }
 0x7dc   :  { %6369 = vmatpush3.bf16.msra.mxu0 %v9083_v48  ;;  %v3472_v48 = vmul.f32 %v8519_v11, %v3468_v16  ;;  %v3502_v53 = vmul.f32 1.442695, %v3496_v10  ;;  %v3526_v16 = vmul.f32 0.5, %v9053_v1 }
 0x7dd   :  { %6371 = vmatprep.subr.bf16.mxu0 %v7181_v7 }
 0x7de   :  { %v3476_v23 = vadd.f32 -0.28449672, %v3472_v48  ;;  %6781 = vpow2.f32 %v3502_v53 }
 0x7df   :  { %5507 = vmatmul.mubr.f32.vlgmr.msra.gmra.mrb[12].mxu0 %v8186_v0  ;;  %6783 = vpow2.f32 %v3504_v56 }
 0x7e0   :  { %5509 = vmatprep.mubr.f32.mxu0 %v8200_v9  ;;  %6373 = vmatpush3.bf16.msra.mxu0 %v7181_v7  ;;  %v3475_v7 = vadd.f32 -0.28449672, %v3471_v13  ;;  %v3480_v34 = vmul.f32 %v8519_v11, %v3476_v23 }
 0x7e1   :  { %6375 = vmatprep.subr.bf16.mxu0 %v7219_v62 }
 0x7e2   :  { %v3484_v60 = vadd.f32 0.2548296, %v3480_v34 }
 0x7e3   :  { %5510 = vmatmul.mubr.f32.gmra.mrb[14].mxu0 %v8197_v14 }
 0x7e4   :  { %6377 = vmatpush3.bf16.msra.mxu0 %v7219_v62  ;;  %5544 = vmatprep.mubr.f32.mxu0 %v8188_v35  ;;  %v3530_v62 = vadd.f32 1.0, %v3522_v58  ;;  %v3479_v35 = vmul.f32 %v8517_v26, %v3475_v7  ;;  %v3488_v55 = vmul.f32 %v8519_v11, %v3484_v60  ;;  %v9084_v58 = vand.u32 4294901760, %v8250_v36 }
 0x7e5   :  { %6379 = vmatprep.subr.bf16.mxu0 %v7223_v39  ;;  %v3529_v60 = vmul.f32 0.5, %v9072_v3 }
 0x7e6   :  { %v3534_v45 = vmul.f32 %v3530_v62, %v3526_v16  ;;  %v3483_v32 = vadd.f32 0.2548296, %v3479_v35  ;;  %v8582_v23 = vpack.c.bf16 %v9085_v20, %v9084_v58  ;;  %v9086_v62 = vand.u32 4294901760, %v8241_v49 }
 0x7e7   :  { %v9087_v35 = vand.u32 4294901760, %v8252_v15  ;;  %v3527_v16 = vmul.f32 0.5, %v9070_v50  ;;  %v9102_v20 = vand.u32 4294901760, %v8287_v63 }
 0x7e8   :  { %6381 = vmatpush3.bf16.msra.mxu0 %v7223_v39  ;;  %v3481_v39 = vmul.f32 %v8524_v31, %v3477_v42  ;;  %v8565_v13 = vand.u32 4294901760, %v3534_v45  ;;  %v3487_v24 = vmul.f32 %v8517_v26, %v3483_v32 }
 0x7e9   :  { %6383 = vmatprep.subr.bf16.mxu0 %v7243_v59  ;;  %v8593_v36 = vpack.c.bf16 %v9087_v35, %v9086_v62  ;;  %v9104_v35 = vand.u32 4294901760, %v8321_v61 }
 0x7ea   :  { %v3485_v1 = vadd.f32 0.2548296, %v3481_v39  ;;  %v8572_v48 = vsub.f32 %v3534_v45, %v8565_v13  ;;  %v8624_v39 = vpack.c.bf16 %v9093_v2, %v9092_v44 }
 0x7ec   :  { %6385 = vmatpush3.bf16.msra.mxu0 %v7243_v59  ;;  %v6780_v59 = vpop.eup %6779 }
 0x7ed   :  { %6387 = vmatprep.subr.bf16.mxu0 %v9031_v12  ;;  %v6782_v5 = vpop.eup %6781  ;;  %v3507_v40 = vmul.f32 %v6780_v59, %v3487_v24  ;;  %v9094_v24 = vand.u32 4294901760, %v8336_v33  ;;  %v9096_v59 = vand.u32 4294901760, %v8370_v43 }
 0x7ee   :  { %v3508_v10 = vmul.f32 %v6782_v5, %v3488_v55  ;;  %v6784_v7 = vpop.eup %6783  ;;  %v9097_v5 = vand.u32 4294901760, %v8368_v21 }
 0x7ef   :  { %v3511_v26 = vsub.f32 1.0, %v3507_v40  ;;  %v9098_v40 = vand.u32 4294901760, %v8268_v17 }
 0x7f0   :  { %6389 = vmatpush3.bf16.msra.mxu0 %v9031_v12  ;;  %v3489_v12 = vmul.f32 %v8524_v31, %v3485_v1  ;;  %v3512_v27 = vsub.f32 1.0, %v3508_v10  ;;  %v9095_v1 = vand.u32 4294901760, %v8334_v29  ;;  %v8650_v33 = vpack.c.bf16 %v9097_v5, %v9096_v59  ;;  %v9112_v5 = vld [vmem:[#allocation18_spill] sm:$0xff] }
 0x7f1   :  { %6391 = vmatprep.subr.bf16.mxu0 %v9032_v28  ;;  %v3519_v31 = vsub.f32 0.0, %v3511_v26  ;;  %v9099_v10 = vand.u32 4294901760, %v8274_v6 }
 0x7f2   :  { %v3509_v11 = vmul.f32 %v6784_v7, %v3489_v12  ;;  %v3520_v53 = vsub.f32 0.0, %v3512_v27  ;;  %v8635_v55 = vpack.c.bf16 %v9095_v1, %v9094_v24  ;;  %v3718_v12 = vsub.f32 %v8268_v17, %v9098_v40  ;;  %v9110_v24 = vld [vmem:[#allocation17_spill] sm:$0xff] }
 0x7f3   :  { %v3523_v49 = vsel %vm3515_vm2, %v3511_v26, %v3519_v31  ;;  %v3711_v7 = vsub.f32 %v8274_v6, %v9099_v10  ;;  %v9100_v26 = vand.u32 4294901760, %v8413_v18  ;;  %v3725_v31 = vsub.f32 %v8287_v63, %v9102_v20 }
 0x7f4   :  { %6393 = vmatpush3.bf16.msra.mxu0 %v9032_v28  ;;  %v3669_v28 = vand.u32 4294901760, %v8572_v48  ;;  %v3719_v62 = vand.u32 4294901760, %v3718_v12  ;;  %v9111_v1 = vand.u32 4294901760, %v9110_v24  ;;  %v9113_v40 = vand.u32 4294901760, %v9112_v5 }
 0x7f5   :  { %6395 = vmatprep.subr.bf16.mxu0 %v9033_v4 }
 0x7f6   :  { %v3670_v37 = vsub.f32 %v8572_v48, %v3669_v28  ;;  %v3774_v59 = vsub.f32 %v9110_v24, %v9111_v1  ;;  %v3767_v12 = vsub.f32 %v9112_v5, %v9113_v40 }
 0x7f8   :  { %6397 = vmatpush3.bf16.msra.mxu0 %v9033_v4  ;;  %v3513_v4 = vsub.f32 1.0, %v3509_v11  ;;  %v3671_v34 = vand.u32 4294901760, %v3670_v37  ;;  %v9101_v11 = vand.u32 4294901760, %v8411_v46 }
 0x7f9   :  { %6399 = vmatprep.subr.bf16.mxu0 %v9034_v57 }
 0x7fa   :  { %v3521_v15 = vsub.f32 0.0, %v3513_v4 }
 0x7fc   :  { %6401 = vmatpush3.bf16.msra.mxu0 %v9034_v57  ;;  %v9088_v57 = vand.u32 4294901760, %v8258_v41  ;;  %v9091_v41 = vand.u32 4294901760, %v8277_v52  ;;  %v3525_v56 = vsel %vm3517_vm4, %v3513_v4, %v3521_v15  ;;  %v9103_v4 = vand.u32 4294901760, %v8293_v54 }
 0x7fd   :  { %6403 = vmatprep.subr.bf16.mxu0 %v8582_v23  ;;  %v3533_v32 = vadd.f32 1.0, %v3525_v56 }
 0x7fe   :  { %v8603_v42 = vpack.c.bf16 %v9089_v47, %v9088_v57  ;;  %v8614_v8 = vpack.c.bf16 %v9091_v41, %v9090_v51  ;;  %v3732_v37 = vsub.f32 %v8293_v54, %v9103_v4  ;;  %v3746_v57 = vsub.f32 %v8321_v61, %v9104_v35  ;;  %v9116_v4 = vld [vmem:[#allocation26_spill] sm:$0xff] }
 0x7ff   :  { %5545 = vmatmul.mubr.f32.vlgmr.msra.gmra.mrb[12].mxu0 %v8186_v0  ;;  %v3524_v0 = vsel %vm3516_vm3, %v3512_v27, %v3520_v53  ;;  %v8671_v27 = vpack.c.bf16 %v9101_v11, %v9100_v26  ;;  %v3712_v53 = vand.u32 4294901760, %v3711_v7  ;;  %v9114_v11 = vld [vmem:[#allocation20_spill] sm:$0xff]  ;;  %v3775_v35 = vand.u32 4294901760, %v3774_v59 }
 0x800   :  { %5547 = vmatprep.mubr.f32.mxu0 %v8200_v9  ;;  %6405 = vmatpush3.bf16.msra.mxu0 %v8582_v23  ;;  %v3531_v9 = vadd.f32 1.0, %v3523_v49  ;;  %v3532_v38 = vadd.f32 1.0, %v3524_v0  ;;  %v9105_v49 = vand.u32 4294901760, %v8326_v25  ;;  %v3726_v0 = vand.u32 4294901760, %v3725_v31 }
 0x801   :  { %6407 = vmatprep.subr.bf16.mxu0 %v8593_v36  ;;  %v9115_v20 = vand.u32 4294901760, %v9114_v11 }
 0x802   :  { %v3535_v45 = vmul.f32 %v3531_v9, %v3527_v16  ;;  %v3739_v15 = vsub.f32 %v8326_v25, %v9105_v49  ;;  %v3733_v9 = vand.u32 4294901760, %v3732_v37  ;;  %v9117_v37 = vand.u32 4294901760, %v9116_v4 }
 0x803   :  { %5548 = vmatmul.mubr.f32.gmra.mrb[14].mxu0 %v8197_v14  ;;  %v3528_v14 = vmul.f32 0.5, %v9071_v19  ;;  %v3537_v19 = vmul.f32 %v3533_v32, %v3529_v60  ;;  %v3747_v60 = vand.u32 4294901760, %v3746_v57  ;;  %v3788_v31 = vsub.f32 %v9114_v11, %v9115_v20  ;;  %v9118_v57 = vld [vmem:[#allocation33_spill] sm:$0xff] }
 0x804   :  { %6409 = vmatpush3.bf16.msra.mxu0 %v8593_v36  ;;  %5582 = vmatprep.mubr.f32.mxu0 %v3671_v34  ;;  %v8629_v50 = vand.u32 4294901760, %v3535_v45  ;;  %v6434_v34 = vpack.c.bf16 %v3719_v62, %v3712_v53  ;;  %v6438_v2 = vpack.c.bf16 %v3733_v9, %v3726_v0  ;;  %v3781_v53 = vsub.f32 %v9116_v4, %v9117_v37 }
 0x805   :  { %6411 = vmatprep.subr.bf16.mxu0 %v8603_v42  ;;  %v3536_v52 = vmul.f32 %v3532_v38, %v3528_v14  ;;  %v8644_v3 = vand.u32 4294901760, %v3537_v19  ;;  %v9106_v38 = vld [vmem:[#allocation14_spill] sm:$0xff] }
 0x806   :  { %v8642_v30 = vsub.f32 %v3535_v45, %v8629_v50  ;;  %v9107_v56 = vand.u32 4294901760, %v9106_v38  ;;  %v9108_v45 = vld [vmem:[#allocation15_spill] sm:$0xff] }
 0x807   :  { %v8638_v22 = vand.u32 4294901760, %v3536_v52  ;;  %v8665_v21 = vsub.f32 %v3537_v19, %v8644_v3  ;;  %v9109_v32 = vand.u32 4294901760, %v9108_v45 }
 0x808   :  { %6413 = vmatpush3.bf16.msra.mxu0 %v8603_v42  ;;  %v3679_v43 = vand.u32 4294901760, %v8642_v30  ;;  %v3760_v16 = vsub.f32 %v9106_v38, %v9107_v56  ;;  %v9122_v56 = vld [vmem:[#allocation23_spill] sm:$0xff] }
 0x809   :  { %6415 = vmatprep.subr.bf16.mxu0 %v8614_v8  ;;  %v8654_v29 = vsub.f32 %v3536_v52, %v8638_v22  ;;  %v3699_v18 = vand.u32 4294901760, %v8665_v21  ;;  %v3753_v44 = vsub.f32 %v9108_v45, %v9109_v32  ;;  %v3740_v52 = vand.u32 4294901760, %v3739_v15  ;;  %v9120_v15 = vld [vmem:[#allocation21_spill] sm:$0xff]  ;;  %v9124_v32 = vld [vmem:[#allocation24_spill] sm:$0xff] }
 0x80a   :  { %v3680_v46 = vsub.f32 %v8642_v30, %v3679_v43  ;;  %v3761_v26 = vand.u32 4294901760, %v3760_v16  ;;  %v9123_v16 = vand.u32 4294901760, %v9122_v56 }
 0x80b   :  { %v3689_v58 = vand.u32 4294901760, %v8654_v29  ;;  %v3700_v41 = vsub.f32 %v8665_v21, %v3699_v18  ;;  %v6442_v10 = vpack.c.bf16 %v3747_v60, %v3740_v52  ;;  %v3754_v7 = vand.u32 4294901760, %v3753_v44 }
 0x80c   :  { %6417 = vmatpush3.bf16.msra.mxu0 %v8614_v8  ;;  %v3681_v51 = vand.u32 4294901760, %v3680_v46  ;;  %v3768_v46 = vand.u32 4294901760, %v3767_v12  ;;  %v9125_v44 = vand.u32 4294901760, %v9124_v32 }
 0x80d   :  { %6419 = vmatprep.subr.bf16.mxu0 %v8624_v39  ;;  %v3690_v47 = vsub.f32 %v8654_v29, %v3689_v58  ;;  %v3701_v19 = vand.u32 4294901760, %v3700_v41  ;;  %v6446_v62 = vpack.c.bf16 %v3761_v26, %v3754_v7  ;;  %v3789_v41 = vand.u32 4294901760, %v3788_v31 }
 0x80e   :  { %v6450_v9 = vpack.c.bf16 %v3775_v35, %v3768_v46  ;;  %v6470_v7 = vpack.c.bf16 %v8293_v54, %v8287_v63  ;;  %v6474_v26 = vpack.c.bf16 %v8321_v61, %v8326_v25  ;;  %v6486_v63 = vpack.c.bf16 %v9114_v11, %v9116_v4  ;;  %v9126_v25 = vld [vmem:[#allocation12_spill] sm:$0xff] }
 0x80f   :  { %v3691_v14 = vand.u32 4294901760, %v3690_v47  ;;  %v9119_v47 = vand.u32 4294901760, %v9118_v57  ;;  %v6490_v54 = vpack.c.bf16 %v9118_v57, %v9120_v15  ;;  %v6494_v61 = vpack.c.bf16 %v9122_v56, %v9124_v32 }
 0x810   :  { %6421 = vmatpush3.bf16.msra.mxu0 %v8624_v39 }
 0x811   :  { %6423 = vmatprep.subr.bf16.mxu0 %v8635_v55  ;;  %v3802_v49 = vsub.f32 %v9118_v57, %v9119_v47 }
 0x814   :  { %6425 = vmatpush3.bf16.msra.mxu0 %v8635_v55 }
 0x815   :  { %6427 = vmatprep.subr.bf16.mxu0 %v8650_v33 }
 0x818   :  { %6429 = vmatpush3.bf16.msra.mxu0 %v8650_v33 }
 0x819   :  { %6431 = vmatprep.subr.bf16.mxu0 %v8671_v27 }
 0x81c   :  { %6433 = vmatpush3.bf16.msra.mxu0 %v8671_v27 }
 0x81d   :  { %6435 = vmatprep.subr.bf16.mxu0 %v6434_v34 }
 0x81f   :  { %5583 = vmatmul.mubr.f32.vlgmr.msra.gmra.mrb[12].mxu0 %v3681_v51  ;;  %v3782_v51 = vand.u32 4294901760, %v3781_v53 }
 0x820   :  { %5585 = vmatprep.mubr.f32.mxu0 %v3691_v14  ;;  %6437 = vmatpush3.bf16.msra.mxu0 %v6434_v34  ;;  %v9121_v34 = vand.u32 4294901760, %v9120_v15  ;;  %v3816_v14 = vsub.f32 %v9122_v56, %v9123_v16 }
 0x821   :  { %6439 = vmatprep.subr.bf16.mxu0 %v6438_v2  ;;  %v6454_v52 = vpack.c.bf16 %v3789_v41, %v3782_v51 }
 0x822   :  { %v3795_v0 = vsub.f32 %v9120_v15, %v9121_v34  ;;  %v3817_v1 = vand.u32 4294901760, %v3816_v14 }
 0x823   :  { %5586 = vmatmul.mubr.f32.gmra.mrb[14].mxu0 %v3701_v19  ;;  %v3803_v19 = vand.u32 4294901760, %v3802_v49 }
 0x824   :  { %6441 = vmatpush3.bf16.msra.mxu0 %v6438_v2  ;;  %5620 = vmatprep.mubr.f32.mxu0 %v8565_v13  ;;  %v3809_v2 = vsub.f32 %v9124_v32, %v9125_v44  ;;  %v3796_v60 = vand.u32 4294901760, %v3795_v0 }
 0x825   :  { %6443 = vmatprep.subr.bf16.mxu0 %v6442_v10 }
 0x826   :  { %v3810_v59 = vand.u32 4294901760, %v3809_v2  ;;  %v6458_v40 = vpack.c.bf16 %v3803_v19, %v3796_v60 }
 0x828   :  { %6445 = vmatpush3.bf16.msra.mxu0 %v6442_v10  ;;  %v6462_v12 = vpack.c.bf16 %v3817_v1, %v3810_v59  ;;  %v6466_v10 = vpack.c.bf16 %v8268_v17, %v8274_v6  ;;  %v6478_v17 = vpack.c.bf16 %v9106_v38, %v9108_v45  ;;  %v6482_v6 = vpack.c.bf16 %v9110_v24, %v9112_v5  ;;  %v6803_v38 = vld [vmem:[#allocation2 + $0x18] sm:$0xff]  ;;  %v6804_v24 = vld [vmem:[#allocation2 + $0x10] sm:$0xff] }
 0x829   :  { %6447 = vmatprep.subr.bf16.mxu0 %v6446_v62 }
 0x82c   :  { %6449 = vmatpush3.bf16.msra.mxu0 %v6446_v62 }
 0x82d   :  { %6451 = vmatprep.subr.bf16.mxu0 %v6450_v9 }
 0x830   :  { %6453 = vmatpush3.bf16.msra.mxu0 %v6450_v9 }
 0x831   :  { %6455 = vmatprep.subr.bf16.mxu0 %v6454_v52 }
 0x834   :  { %6457 = vmatpush3.bf16.msra.mxu0 %v6454_v52 }
 0x835   :  { %6459 = vmatprep.subr.bf16.mxu0 %v6458_v40 }
 0x838   :  { %6461 = vmatpush3.bf16.msra.mxu0 %v6458_v40 }
 0x839   :  { %6463 = vmatprep.subr.bf16.mxu0 %v6462_v12 }
 0x83c   :  { %6465 = vmatpush3.bf16.msra.mxu0 %v6462_v12 }
 0x83d   :  { %6467 = vmatprep.subr.bf16.mxu0 %v6466_v10 }
 0x83f   :  { %5621 = vmatmul.mubr.f32.vlgmr.msra.gmra.mrb[12].mxu0 %v8629_v50 }
 0x840   :  { %5623 = vmatprep.mubr.f32.mxu0 %v8638_v22  ;;  %6469 = vmatpush3.bf16.msra.mxu0 %v6466_v10 }
 0x841   :  { %6471 = vmatprep.subr.bf16.mxu0 %v6470_v7 }
 0x843   :  { %5624 = vmatmul.mubr.f32.gmra.mrb[14].mxu0 %v8644_v3 }
 0x844   :  { %6473 = vmatpush3.bf16.msra.mxu0 %v6470_v7  ;;  %5658 = vmatprep.mubr.f32.mxu0 %v8572_v48  ;;  %v9127_v48 = vld [vmem:[#allocation13_spill] sm:$0xff] }
 0x845   :  { %6475 = vmatprep.subr.bf16.mxu0 %v6474_v26 }
 0x848   :  { %6477 = vmatpush3.bf16.msra.mxu0 %v6474_v26 }
 0x849   :  { %6479 = vmatprep.subr.bf16.mxu0 %v6478_v17 }
 0x84c   :  { %6481 = vmatpush3.bf16.msra.mxu0 %v6478_v17 }
 0x84d   :  { %6483 = vmatprep.subr.bf16.mxu0 %v6482_v6 }
 0x850   :  { %6485 = vmatpush3.bf16.msra.mxu0 %v6482_v6 }
 0x851   :  { %6487 = vmatprep.subr.bf16.mxu0 %v6486_v63 }
 0x854   :  { %6489 = vmatpush3.bf16.msra.mxu0 %v6486_v63 }
 0x855   :  { %6491 = vmatprep.subr.bf16.mxu0 %v6490_v54 }
 0x858   :  { %6493 = vmatpush3.bf16.msra.mxu0 %v6490_v54 }
 0x859   :  { %6495 = vmatprep.subr.bf16.mxu0 %v6494_v61 }
 0x85c   :  { %6497 = vmatpush3.bf16.msra.mxu0 %v6494_v61 }
 0x85d   :  { %6499 = vmatprep.subr.bf16.mxu0 %v8582_v23 }
 0x85f   :  { %5659 = vmatmul.mubr.f32.vlgmr.msra.gmra.mrb[12].mxu0 %v8642_v30  ;;  %v9129_v30 = vld [vmem:[#allocation19_spill] sm:$0xff] }
 0x860   :  { %5661 = vmatprep.mubr.f32.mxu0 %v8654_v29  ;;  %6501 = vmatpush3.bf16.msra.mxu0 %v8582_v23  ;;  %v9130_v29 = vld [vmem:[#allocation29_spill] sm:$0xff] }
 0x861   :  { %6503 = vmatprep.subr.bf16.mxu0 %v8593_v36 }
 0x863   :  { %5662 = vmatmul.mubr.f32.gmra.mrb[14].mxu0 %v8665_v21  ;;  %v9132_v21 = vld [vmem:[#allocation25_spill] sm:$0xff] }
 0x864   :  { %6505 = vmatpush3.bf16.msra.mxu0 %v8593_v36  ;;  %5696 = vmatprep.mubr.f32.mxu0 %v3669_v28  ;;  %v9128_v28 = vld [vmem:[#allocation16_spill] sm:$0xff] }
 0x865   :  { %6507 = vmatprep.subr.bf16.mxu0 %v8603_v42 }
 0x868   :  { %6509 = vmatpush3.bf16.msra.mxu0 %v8603_v42 }
 0x869   :  { %6511 = vmatprep.subr.bf16.mxu0 %v8614_v8 }
 0x86c   :  { %6513 = vmatpush3.bf16.msra.mxu0 %v8614_v8 }
 0x86d   :  { %6515 = vmatprep.subr.bf16.mxu0 %v8624_v39 }
 0x870   :  { %6517 = vmatpush3.bf16.msra.mxu0 %v8624_v39 }
 0x871   :  { %6519 = vmatprep.subr.bf16.mxu0 %v8635_v55 }
 0x874   :  { %6521 = vmatpush3.bf16.msra.mxu0 %v8635_v55 }
 0x875   :  { %6523 = vmatprep.subr.bf16.mxu0 %v8650_v33 }
 0x878   :  { %6525 = vmatpush3.bf16.msra.mxu0 %v8650_v33 }
 0x879   :  { %6527 = vmatprep.subr.bf16.mxu0 %v8671_v27 }
 0x87c   :  { %6529 = vmatpush3.bf16.msra.mxu0 %v8671_v27 }
 0x87d   :  { %6531 = vmatprep.subr.bf16.mxu0 %v9126_v25 }
 0x87f   :  { %5697 = vmatmul.mubr.f32.vlgmr.msra.gmra.mrb[12].mxu0 %v3679_v43  ;;  %v9131_v43 = vld [vmem:[#allocation22_spill] sm:$0xff] }
 0x880   :  { %5699 = vmatprep.mubr.f32.mxu0 %v3689_v58  ;;  %6533 = vmatpush3.bf16.msra.mxu0 %v9126_v25  ;;  %v9133_v58 = vld [vmem:[#allocation27_spill] sm:$0xff] }
 0x881   :  { %6535 = vmatprep.subr.bf16.mxu0 %v9127_v48 }
 0x883   :  { %5700 = vmatmul.mubr.f32.gmra.mrb[14].mxu0 %v3699_v18 }
 0x884   :  { %6537 = vmatpush3.bf16.msra.mxu0 %v9127_v48  ;;  %5734 = vmatprep.mubr.f32.mxu0 %v8565_v13 }
 0x885   :  { %6539 = vmatprep.subr.bf16.mxu0 %v9128_v28 }
 0x888   :  { %6541 = vmatpush3.bf16.msra.mxu0 %v9128_v28 }
 0x889   :  { %6543 = vmatprep.subr.bf16.mxu0 %v9129_v30 }
 0x88c   :  { %6545 = vmatpush3.bf16.msra.mxu0 %v9129_v30 }
 0x88d   :  { %6547 = vmatprep.subr.bf16.mxu0 %v9130_v29 }
 0x890   :  { %6549 = vmatpush3.bf16.msra.mxu0 %v9130_v29 }
 0x891   :  { %6551 = vmatprep.subr.bf16.mxu0 %v9131_v43 }
 0x894   :  { %6553 = vmatpush3.bf16.msra.mxu0 %v9131_v43 }
 0x895   :  { %6555 = vmatprep.subr.bf16.mxu0 %v9132_v21 }
 0x898   :  { %6557 = vmatpush3.bf16.msra.mxu0 %v9132_v21 }
 0x899   :  { %6559 = vmatprep.subr.bf16.mxu0 %v9133_v58 }
 0x89c   :  { %6561 = vmatpush3.bf16.msra.mxu0 %v9133_v58 }
 0x89d   :  { %6563 = vmatprep.subr.bf16.mxu0 %v8582_v23 }
 0x89f   :  { %5735 = vmatmul.mubr.f32.vlgmr.msra.gmra.mrb[12].mxu0 %v8629_v50 }
 0x8a0   :  { %5737 = vmatprep.mubr.f32.mxu0 %v8638_v22  ;;  %6565 = vmatpush3.bf16.msra.mxu0 %v8582_v23  ;;  %v6801_v23 = vld [vmem:[#allocation2 + $0x8] sm:$0xff] }
 0x8a1   :  { %6567 = vmatprep.subr.bf16.mxu0 %v8593_v36 }
 0x8a3   :  { %5738 = vmatmul.mubr.f32.gmra.mrb[14].mxu0 %v8644_v3 }
 0x8a4   :  { %6569 = vmatpush3.bf16.msra.mxu0 %v8593_v36  ;;  %5772 = vmatprep.mubr.f32.mxu0 %v8565_v13  ;;  %v887_v13 = vld [vmem:[#allocation5 + $0x41] ss:$0 sm:$0xff] }
 0x8a5   :  { %6571 = vmatprep.subr.bf16.mxu0 %v8603_v42  ;;  %v6614_v36 = vadd.f32 %v6801_v23, %v887_v13  ;;  %v6620_v5 = vadd.f32 %v6804_v24, %v887_v13 }
 0x8a8   :  { %6573 = vmatpush3.bf16.msra.mxu0 %v8603_v42  ;;  %v6802_v42 = vld [vmem:[#allocation2] sm:$0xff] }
 0x8a9   :  { %6575 = vmatprep.subr.bf16.mxu0 %v8614_v8 }
 0x8ac   :  { %6577 = vmatpush3.bf16.msra.mxu0 %v8614_v8  ;;  %v6616_v8 = vadd.f32 %v6802_v42, %v887_v13 }
 0x8ad   :  { %6579 = vmatprep.subr.bf16.mxu0 %v8624_v39 }
 0x8b0   :  { %6581 = vmatpush3.bf16.msra.mxu0 %v8624_v39 }
 0x8b1   :  { %6583 = vmatprep.subr.bf16.mxu0 %v8635_v55 }
 0x8b4   :  { %6585 = vmatpush3.bf16.msra.mxu0 %v8635_v55 }
 0x8b5   :  { %6587 = vmatprep.subr.bf16.mxu0 %v8650_v33 }
 0x8b8   :  { %6589 = vmatpush3.bf16.msra.mxu0 %v8650_v33  ;;  %v6618_v33 = vadd.f32 %v6803_v38, %v887_v13 }
 0x8b9   :  { %6591 = vmatprep.subr.bf16.mxu0 %v8671_v27 }
 0x8bc   :  { %6593 = vmatpush3.bf16.msra.mxu0 %v8671_v27 }
 0x8bf   :  { %5773 = vmatmul.mubr.f32.vlgmr.msra.gmra.mrb[12].mxu0 %v8629_v50 }
 0x8c0   :  { %5775 = vmatprep.mubr.f32.mxu0 %v8638_v22 }
 0x8c3   :  { %5776 = vmatmul.mubr.f32.gmra.mrb[14].mxu0 %v8644_v3 }
 0x992   :  { %v5774_v39 = vpop.f32.mrb[12].mxu0 }
 0x993   :  { %v6615_v55 = vadd.f32 %v6614_v36, %v5774_v39  ;;  %v4334_v18 = vpop.f32.mrb[13].mxu0 }
 0x994   :  { %v6617_v45 = vadd.f32 %v6616_v8, %v4334_v18 }
 0x995   :  { %4365 = vst.msk [vmem:[#allocation8 + $0x8] sm:$0xff] %vm62_vm0, %v6615_v55 }
 0x996   :  { %4364 = vst.msk [vmem:[#allocation8] sm:$0xff] %vm62_vm0, %v6617_v45  ;;  %v5777_v50 = vpop.f32.mrb[14].mxu0 }
 0x997   :  { %v6619_v22 = vadd.f32 %v6618_v33, %v5777_v50  ;;  %v4346_v3 = vpop.f32.mrb[15].mxu0 }
 0x998   :  { %v6621_v27 = vadd.f32 %v6620_v5, %v4346_v3 }
 0x999   :  { %4367 = vst.msk [vmem:[#allocation8 + $0x18] sm:$0xff] %vm62_vm0, %v6619_v22 }
 0x99a   :  { %4366 = vst.msk [vmem:[#allocation8 + $0x10] sm:$0xff] %vm62_vm0, %v6621_v27 }
 0x99b   :  { %6882 = shalt.err (!%p6879_p0)
}
 0x99c   :  { %s6883_s29 = scalar_lea.hbm %s8840_s3, 512 }
 0x99d   :  { %p6884_p1 = scmp.ne.s32.totalorder %s8840_s3, %s6883_s29  ;;  %p6887_p2 = scmp.lt.u32.totalorder %s6883_s29, %s8840_s3 }
 0x99f   :  { %p6889_p3 = pnand %p6887_p2, %p6884_p1 }
 0x9a1   :  { %6892 = shalt.err (!%p6889_p3)
}
 0x9a2   :  { %4379 = dma.vmem_to_hbm [thread:$0]  %s4374_s25, 512, %s8840_s3, [#allocation4], %s6903_s1, %s6903_s1, %s6904_s9  }
 0x9a3   :  { %6897 = dma.done.wait [#allocation4], 512  }
 0x9a4   :  { %6898 = vsyncadd [#allocation4], 4294966784 }
 0x9a5   :  { %4383 = vsyncpa [#allocation3], 1 }
 0x9a6   :  { %4384 = vsyncpa [#allocation6], 1 }
 0x9a7   :  { %4385 = vsyncpa [#allocation4], 1 }

</bundles_post_ra>
